<compile_context>
chip_gen: v5e
topology: v5e:2x2
jax: 0.10.0
libtpu: 0.0.40
codegen_flags: <defaults>
</compile_context>

<pallas_src>
import functools
import math

import jax
import jax.numpy as jnp
from jax import lax
from jax.experimental import pallas as pl
from jax.experimental.pallas import tpu as pltpu

EPS = 1e-5


# ---------------------------------------------------------------------------
# Pass 1: per-(batch, N-tile) conv1/conv2/conv3 + running global max-pool.
# ---------------------------------------------------------------------------
def _stn_conv_pool_kernel(x_ref,
                          w1_ref, b1_ref,
                          w2_ref, b2_ref,
                          w3_ref, b3_ref,
                          pool_ref,
                          *, n_valid, tile_n, need_mask, epilogue_dtype):
    nt = pl.program_id(1)

    # Output block is resident across the N-tile (reduction) axis: init once.
    @pl.when(nt == 0)
    def _():
        pool_ref[...] = jnp.full_like(pool_ref, -jnp.inf)

    # x block: (1, k, tN) f32 in PyTorch NCW layout.
    x = x_ref[0]                                                 # (k, tN) f32

    # conv1 (k -> 64) + folded bn1 + relu.  f32 MXU pass on the channel-major
    # block (contract axis 0 of both) -- tiny flops, no bf16 relayout of x.
    h = lax.dot_general(x, w1_ref[...],
                        dimension_numbers=(((0,), (0,)), ((), ())),
                        preferred_element_type=jnp.float32)      # (tN, 64)
    h = jnp.maximum(h + b1_ref[...], 0.0)

    # conv2 (64 -> 128) + folded bn2 + relu (scale folded into bf16 weights).
    h = jnp.dot(h.astype(jnp.bfloat16), w2_ref[...],
                preferred_element_type=jnp.float32)              # (tN, 128)
    h = jnp.maximum(h + b2_ref[...], 0.0)

    # conv3 (128 -> 1024): f32 MXU accumulation; bias/ReLU/mask/max epilogue
    # in `epilogue_dtype` (bf16 on v6e/v7x halves VALU + vld/vst pressure on
    # the largest intermediate, f32 on v5e which has no bf16 VPU).
    h = jnp.dot(h.astype(jnp.bfloat16), w3_ref[...],
                preferred_element_type=jnp.float32)              # (tN, 1024)
    h = h.astype(epilogue_dtype)
    h = jnp.maximum(h + b3_ref[...], 0.0)

    if need_mask:
        # Zero padded tail rows before the max (safe: valid post-ReLU >= 0).
        idx = nt * tile_n + lax.broadcasted_iota(jnp.int32, (tile_n, 1), 0)
        h = jnp.where(idx < n_valid, h, jnp.zeros_like(h))

    # Running max over the points of this tile (torch.max(x, 2)).
    tile_max = jnp.max(h, axis=0, keepdims=True)                 # (1, 1024)
    pool_ref[0] = jnp.maximum(pool_ref[0], tile_max.astype(jnp.float32))


# ---------------------------------------------------------------------------
# Pass 2: fc1/fc2/fc3 on the whole (B, 1024) pooled slab (M = B, not 1).
# ---------------------------------------------------------------------------
def _stn_fc_kernel(g_ref,
                   w4_ref, b4_ref,
                   w5_ref, b5_ref,
                   w6_ref, b6_ref,
                   out_ref):
    g = g_ref[...].astype(jnp.bfloat16)                          # (B, 1024)

    # fc1 (1024 -> 512) + folded bn4 + relu
    f = jnp.dot(g, w4_ref[...], preferred_element_type=jnp.float32)
    f = jnp.maximum(f + b4_ref[...], 0.0)                        # (B, 512)

    # fc2 (512 -> 256) + folded bn5 + relu
    f = jnp.dot(f.astype(jnp.bfloat16), w5_ref[...],
                preferred_element_type=jnp.float32)
    f = jnp.maximum(f + b5_ref[...], 0.0)                        # (B, 256)

    # fc3 (256 -> k*k) + bias + flattened identity (folded into b6)
    out = jnp.dot(f.astype(jnp.bfloat16), w6_ref[...],
                  preferred_element_type=jnp.float32)            # (B, k*k)
    out_ref[...] = out + b6_ref[...]


# ---------------------------------------------------------------------------
# Wrapper
# ---------------------------------------------------------------------------
def _round_up(n, m):
    return ((n + m - 1) // m) * m


def _tpu_generation():
    """Best-effort TPU generation detection; defaults to v6-like behaviour."""
    try:
        kind = jax.devices()[0].device_kind.lower()
    except Exception:
        return 6
    for g in (7, 6, 5, 4, 3):
        if f"v{g}" in kind:
            return g
    return 6


def stnkd_forward(x_bkn, params):
    """x_bkn: (B, k, N) float32 (PyTorch NCW layout).  Returns (B, k, k) f32."""
    B, k, N = x_bkn.shape
    (w1, s1, b1, w2, s2, b2, w3, s3, b3,
     w4, s4, b4, w5, s5, b5, w6, b6) = params

    gen = _tpu_generation()
    if gen >= 7:
        # v7x: 64 MiB physical / 32 MiB scoped VMEM -> keep tiles modest.
        max_tile, vmem_bytes = 2048, 32 * 1024 * 1024
        epilogue_dtype = jnp.bfloat16
    elif gen == 6:
        max_tile, vmem_bytes = 4096, 64 * 1024 * 1024
        epilogue_dtype = jnp.bfloat16
    else:
        # v5e (and older): 128 MiB VMEM but no bf16 VPU -> f32 epilogue.
        max_tile, vmem_bytes = 4096, 64 * 1024 * 1024
        epilogue_dtype = jnp.float32

    # Fold BN scales into the weights in f32, then cast MXU operands to bf16.
    w1f = w1 * s1                                   # stays f32 (conv1 pass)
    w2f = (w2 * s2).astype(jnp.bfloat16)
    w3f = (w3 * s3).astype(jnp.bfloat16)
    w4f = (w4 * s4).astype(jnp.bfloat16)
    w5f = (w5 * s5).astype(jnp.bfloat16)
    w6f = w6.astype(jnp.bfloat16)
    b3c = b3.astype(epilogue_dtype)

    x = x_bkn.astype(jnp.float32)

    # cdiv-style N tiling: pad N to a multiple of the (128-aligned) tile and
    # mask the padded tail inside the kernel.  VMEM use is independent of N.
    tn = min(max_tile, _round_up(N, 128))
    n_pad = _round_up(N, tn)
    if n_pad != N:
        x = jnp.pad(x, ((0, 0), (0, 0), (0, n_pad - N)))
    n_tiles = n_pad // tn
    need_mask = n_pad != N

    conv_consts = (w1f, b1, w2f, b2, w3f, b3c)

    def const_spec(a):
        nd = a.ndim
        return pl.BlockSpec(a.shape, lambda b_, n_, _nd=nd: (0,) * _nd)

    conv_flops = 2 * B * n_pad * (k * 64 + 64 * 128 + 128 * 1024)
    conv_bytes = (int(x.size) * 4
                  + sum(int(a.size) * a.dtype.itemsize for a in conv_consts)
                  + B * 1024 * 4)

    conv_kernel = functools.partial(
        _stn_conv_pool_kernel,
        n_valid=N, tile_n=tn, need_mask=need_mask,
        epilogue_dtype=epilogue_dtype)

    pooled = pl.pallas_call(
        conv_kernel,
        out_shape=jax.ShapeDtypeStruct((B, 1, 1024), jnp.float32),
        grid=(B, n_tiles),
        in_specs=[pl.BlockSpec((1, k, tn), lambda b_, n_: (b_, 0, n_))]
                 + [const_spec(a) for a in conv_consts],
        out_specs=pl.BlockSpec((1, 1, 1024), lambda b_, n_: (b_, 0, 0)),
        compiler_params=pltpu.CompilerParams(
            dimension_semantics=("parallel", "arbitrary"),
            vmem_limit_bytes=vmem_bytes),
        cost_estimate=pl.CostEstimate(flops=conv_flops, transcendentals=0,
                                      bytes_accessed=conv_bytes),
    )(x, *conv_consts)

    fc_consts = (w4f, b4, w5f, b5, w6f, b6)
    fc_flops = 2 * B * (1024 * 512 + 512 * 256 + 256 * k * k)
    fc_bytes = (B * 1024 * 4
                + sum(int(a.size) * a.dtype.itemsize for a in fc_consts)
                + B * k * k * 4)

    out = pl.pallas_call(
        _stn_fc_kernel,
        out_shape=jax.ShapeDtypeStruct((B, k * k), jnp.float32),
        cost_estimate=pl.CostEstimate(flops=fc_flops, transcendentals=0,
                                      bytes_accessed=fc_bytes),
    )(pooled.reshape(B, 1024), *fc_consts)

    return out.reshape(B, k, k)


# ---------------------------------------------------------------------------
# Parameters (deterministic synthetic, matching STNkd(k) layer shapes)
# ---------------------------------------------------------------------------
def init_params(key, k):
    """Conv/FC weights stored pre-transposed as (Cin, Cout); BatchNorm
    (inference) and layer biases reduced to per-channel (scale, bias) rows.
    The wrapper folds scale into the weights before casting to bf16."""
    keys = iter(jax.random.split(key, 64))

    def bn_folded_layer(cin, cout):
        w_t = jax.random.normal(next(keys), (cin, cout), jnp.float32) / math.sqrt(cin)
        bias_conv = jax.random.normal(next(keys), (cout,), jnp.float32) * 0.02
        gamma = jax.random.uniform(next(keys), (cout,), jnp.float32, 0.5, 1.5)
        beta = jax.random.normal(next(keys), (cout,), jnp.float32) * 0.1
        mean = jax.random.normal(next(keys), (cout,), jnp.float32) * 0.1
        var = jax.random.uniform(next(keys), (cout,), jnp.float32, 0.5, 1.5)
        scale = gamma / jnp.sqrt(var + EPS)
        bias = beta + (bias_conv - mean) * scale
        return w_t, scale.reshape(1, cout), bias.reshape(1, cout)

    w1, s1, b1 = bn_folded_layer(k, 64)        # conv1 + bn1
    w2, s2, b2 = bn_folded_layer(64, 128)      # conv2 + bn2
    w3, s3, b3 = bn_folded_layer(128, 1024)    # conv3 + bn3
    w4, s4, b4 = bn_folded_layer(1024, 512)    # fc1   + bn4
    w5, s5, b5 = bn_folded_layer(512, 256)     # fc2   + bn5

    # fc3: no BN; its bias plus the flattened identity matrix are pre-added.
    w6 = jax.random.normal(next(keys), (256, k * k), jnp.float32) / math.sqrt(256)
    b_fc3 = jax.random.normal(next(keys), (k * k,), jnp.float32) * 0.02
    iden = jnp.eye(k, dtype=jnp.float32).reshape(k * k)
    b6 = (b_fc3 + iden).reshape(1, k * k)

    return (w1, s1, b1, w2, s2, b2, w3, s3, b3,
            w4, s4, b4, w5, s5, b5, w6, b6)


def stnkd_reference(x_bkn, params):
    """Pure-JAX f32 reference (unfolded scale/bias form; same math)."""
    (w1, s1, b1, w2, s2, b2, w3, s3, b3,
     w4, s4, b4, w5, s5, b5, w6, b6) = params
    B, k, _ = x_bkn.shape
    h = jnp.transpose(x_bkn, (0, 2, 1)).astype(jnp.float32)     # (B, N, k)
    h = jnp.maximum((h @ w1) * s1 + b1, 0.0)
    h = jnp.maximum((h @ w2) * s2 + b2, 0.0)
    h = jnp.maximum((h @ w3) * s3 + b3, 0.0)
    g = jnp.max(h, axis=1)                                       # (B, 1024)
    f = jnp.maximum((g @ w4) * s4 + b4, 0.0)
    f = jnp.maximum((f @ w5) * s5 + b5, 0.0)
    out = (f @ w6) + b6
    return out.reshape(B, k, k)


if __name__ == "__main__":
    key = jax.random.PRNGKey(0)
    k_key, x_key = jax.random.split(key)

    B, K, N = 4, 16, 256                        # small STNkd(k=16), 256 points
    params = init_params(k_key, K)
    x = jax.random.normal(x_key, (B, K, N), jnp.float32)   # PyTorch NCW layout

    out = stnkd_forward(x, params)
    jax.block_until_ready(out)
    assert out.shape == (B, K, K), out.shape

    ref = stnkd_reference(x, params)
    max_err = float(jnp.max(jnp.abs(out - ref)))
    tol = 5e-2 * (float(jnp.max(jnp.abs(ref))) + 1.0)   # bf16-matmul tolerance
    assert max_err <= tol, (max_err, tol)

    # Also exercise the padded / masked tail path (N not a multiple of 128).
    N2 = 200
    x2 = jax.random.normal(jax.random.PRNGKey(7), (B, K, N2), jnp.float32)
    out2 = stnkd_forward(x2, params)
    jax.block_until_ready(out2)
    ref2 = stnkd_reference(x2, params)
    err2 = float(jnp.max(jnp.abs(out2 - ref2)))
    tol2 = 5e-2 * (float(jnp.max(jnp.abs(ref2))) + 1.0)
    assert err2 <= tol2, (err2, tol2)

    print("KERNEL_OK")
</pallas_src>

<mosaic_0001>
module attributes {stable_mosaic.version = 11 : i64} {
  func.func @_stn_conv_pool_kernel(%arg0: i32, %arg1: i32, %arg2: memref<1x16x256xf32, #tpu.memory_space<vmem>>, %arg3: memref<16x64xf32, #tpu.memory_space<vmem>>, %arg4: memref<1x64xf32, #tpu.memory_space<vmem>>, %arg5: memref<64x128xbf16, #tpu.memory_space<vmem>>, %arg6: memref<1x128xf32, #tpu.memory_space<vmem>>, %arg7: memref<128x1024xbf16, #tpu.memory_space<vmem>>, %arg8: memref<1x1024xbf16, #tpu.memory_space<vmem>>, %arg9: memref<1x1x1024xf32, #tpu.memory_space<vmem>>) attributes {dimension_semantics = [#tpu.dimension_semantics<parallel>, #tpu.dimension_semantics<arbitrary>], iteration_bounds = array<i64: 4, 1>, scalar_prefetch = 0 : i64, scratch_operands = 0 : i64, tpu.core_type = #tpu.core_type<tc>, window_params = [{transform_indices = @transform_0, window_bounds = array<i64: 1, 16, 256>}, {pipeline_mode = #tpu.pipeline_mode<synchronous>, transform_indices = @transform_1, window_bounds = array<i64: 16, 64>}, {pipeline_mode = #tpu.pipeline_mode<synchronous>, transform_indices = @transform_2, window_bounds = array<i64: 1, 64>}, {pipeline_mode = #tpu.pipeline_mode<synchronous>, transform_indices = @transform_3, window_bounds = array<i64: 64, 128>}, {pipeline_mode = #tpu.pipeline_mode<synchronous>, transform_indices = @transform_4, window_bounds = array<i64: 1, 128>}, {pipeline_mode = #tpu.pipeline_mode<synchronous>, transform_indices = @transform_5, window_bounds = array<i64: 128, 1024>}, {pipeline_mode = #tpu.pipeline_mode<synchronous>, transform_indices = @transform_6, window_bounds = array<i64: 1, 1024>}, {transform_indices = @transform_7, window_bounds = array<i64: 1, 1, 1024>}]} {
    %c0_i32 = arith.constant 0 : i32
    %0 = arith.cmpi eq, %arg1, %c0_i32 : i32
    %1 = arith.extui %0 : i1 to i32
    %c0_i32_0 = arith.constant 0 : i32
    %2 = arith.cmpi ne, %1, %c0_i32_0 : i32
    scf.if %2 {
      %cst_27 = arith.constant 0xFF800000 : f32
      %38 = vector.broadcast %cst_27 : f32 to vector<1x1x1024xf32>
      %c0_28 = arith.constant 0 : index
      %c0_29 = arith.constant 0 : index
      %c0_30 = arith.constant 0 : index
      %39 = vector.load %arg9[%c0_28, %c0_29, %c0_30] : memref<1x1x1024xf32, #tpu.memory_space<vmem>>, vector<1x1x1024xf32>
      tpu.vector_store %arg9[%c0_28, %c0_29, %c0_30], %38 {strides = array<i32>} : memref<1x1x1024xf32, #tpu.memory_space<vmem>>, vector<1x1x1024xf32>,
    } else {
    }
    %c0 = arith.constant 0 : index
    %c0_1 = arith.constant 0 : index
    %c0_2 = arith.constant 0 : index
    %3 = vector.load %arg2[%c0, %c0_1, %c0_2] : memref<1x16x256xf32, #tpu.memory_space<vmem>>, vector<1x16x256xf32>
    %4 = vector.shape_cast %3 : vector<1x16x256xf32> to vector<16x256xf32>
    %c0_3 = arith.constant 0 : index
    %c0_4 = arith.constant 0 : index
    %5 = vector.load %arg3[%c0_3, %c0_4] : memref<16x64xf32, #tpu.memory_space<vmem>>, vector<16x64xf32>
    %cst = arith.constant dense<0.000000e+00> : vector<256x64xf32>
    %6 = tpu.matmul %4, %5, %cst {dimension_numbers = #tpu.dot_dimension_numbers<[0], [0], [1], [1], [0, 1, 1, 1], [], []>} : vector<16x256xf32>, vector<16x64xf32>, vector<256x64xf32> -> vector<256x64xf32>
    %c0_5 = arith.constant 0 : index
    %c0_6 = arith.constant 0 : index
    %7 = vector.load %arg4[%c0_5, %c0_6] : memref<1x64xf32, #tpu.memory_space<vmem>>, vector<1x64xf32>
    %8 = vector.broadcast %7 : vector<1x64xf32> to vector<256x64xf32>
    %9 = arith.addf %6, %8 : vector<256x64xf32>
    %cst_7 = arith.constant 0.000000e+00 : f32
    %10 = vector.broadcast %cst_7 : f32 to vector<256x64xf32>
    %11 = arith.maximumf %9, %10 : vector<256x64xf32>
    %12 = arith.truncf %11 : vector<256x64xf32> to vector<256x64xbf16>
    %c0_8 = arith.constant 0 : index
    %c0_9 = arith.constant 0 : index
    %13 = vector.load %arg5[%c0_8, %c0_9] : memref<64x128xbf16, #tpu.memory_space<vmem>>, vector<64x128xbf16>
    %cst_10 = arith.constant dense<0.000000e+00> : vector<256x128xf32>
    %14 = tpu.matmul %12, %13, %cst_10 {dimension_numbers = #tpu.dot_dimension_numbers<[1], [0], [0], [1], [0, 0, 1, 1], [], []>} : vector<256x64xbf16>, vector<64x128xbf16>, vector<256x128xf32> -> vector<256x128xf32>
    %c0_11 = arith.constant 0 : index
    %c0_12 = arith.constant 0 : index
    %15 = vector.load %arg6[%c0_11, %c0_12] : memref<1x128xf32, #tpu.memory_space<vmem>>, vector<1x128xf32>
    %16 = vector.broadcast %15 : vector<1x128xf32> to vector<256x128xf32>
    %17 = arith.addf %14, %16 : vector<256x128xf32>
    %cst_13 = arith.constant 0.000000e+00 : f32
    %18 = vector.broadcast %cst_13 : f32 to vector<256x128xf32>
    %19 = arith.maximumf %17, %18 : vector<256x128xf32>
    %20 = arith.truncf %19 : vector<256x128xf32> to vector<256x128xbf16>
    %c0_14 = arith.constant 0 : index
    %c0_15 = arith.constant 0 : index
    %21 = vector.load %arg7[%c0_14, %c0_15] : memref<128x1024xbf16, #tpu.memory_space<vmem>>, vector<128x1024xbf16>
    %cst_16 = arith.constant dense<0.000000e+00> : vector<256x1024xf32>
    %22 = tpu.matmul %20, %21, %cst_16 {dimension_numbers = #tpu.dot_dimension_numbers<[1], [0], [0], [1], [0, 0, 1, 1], [], []>} : vector<256x128xbf16>, vector<128x1024xbf16>, vector<256x1024xf32> -> vector<256x1024xf32>
    %23 = arith.truncf %22 : vector<256x1024xf32> to vector<256x1024xbf16>
    %c0_17 = arith.constant 0 : index
    %c0_18 = arith.constant 0 : index
    %24 = vector.load %arg8[%c0_17, %c0_18] : memref<1x1024xbf16, #tpu.memory_space<vmem>>, vector<1x1024xbf16>
    %25 = vector.broadcast %24 : vector<1x1024xbf16> to vector<256x1024xbf16>
    %26 = arith.addf %23, %25 : vector<256x1024xbf16>
    %cst_19 = arith.constant 0.000000e+00 : bf16
    %27 = vector.broadcast %cst_19 : bf16 to vector<256x1024xbf16>
    %28 = arith.maximumf %26, %27 : vector<256x1024xbf16>
    %cst_20 = arith.constant dense<0xFF80> : vector<1024xbf16>
    %29 = vector.multi_reduction <maximumf>, %28, %cst_20 [0] : vector<256x1024xbf16> to vector<1024xbf16>
    %30 = vector.shape_cast %29 : vector<1024xbf16> to vector<1x1024xbf16>
    %c0_21 = arith.constant 0 : index
    %c0_22 = arith.constant 0 : index
    %c0_23 = arith.constant 0 : index
    %31 = vector.load %arg9[%c0_21, %c0_22, %c0_23] : memref<1x1x1024xf32, #tpu.memory_space<vmem>>, vector<1x1x1024xf32>
    %32 = vector.shape_cast %31 : vector<1x1x1024xf32> to vector<1x1024xf32>
    %33 = arith.extf %30 : vector<1x1024xbf16> to vector<1x1024xf32>
    %34 = arith.maximumf %32, %33 : vector<1x1024xf32>
    %c0_24 = arith.constant 0 : index
    %c0_25 = arith.constant 0 : index
    %c0_26 = arith.constant 0 : index
    %35 = vector.load %arg9[%c0_24, %c0_25, %c0_26] : memref<1x1x1024xf32, #tpu.memory_space<vmem>>, vector<1x1x1024xf32>
    %36 = vector.shape_cast %35 : vector<1x1x1024xf32> to vector<1x1024xf32>
    %37 = vector.shape_cast %34 : vector<1x1024xf32> to vector<1x1x1024xf32>
    tpu.vector_store %arg9[%c0_24, %c0_25, %c0_26], %37 {strides = array<i32>} : memref<1x1x1024xf32, #tpu.memory_space<vmem>>, vector<1x1x1024xf32>,
    return
  }
  func.func @transform_0(%arg0: i32, %arg1: i32) -> (i32, i32, i32) {
    %c0_i32 = arith.constant 0 : i32
    %c0_i32_0 = arith.constant 0 : i32
    return %arg0, %c0_i32, %arg1 : i32, i32, i32
  }
  func.func @transform_1(%arg0: i32, %arg1: i32) -> (i32, i32) {
    %c0_i32 = arith.constant 0 : i32
    %c0_i32_0 = arith.constant 0 : i32
    %c0_i32_1 = arith.constant 0 : i32
    return %c0_i32, %c0_i32_0 : i32, i32
  }
  func.func @transform_2(%arg0: i32, %arg1: i32) -> (i32, i32) {
    %c0_i32 = arith.constant 0 : i32
    %c0_i32_0 = arith.constant 0 : i32
    %c0_i32_1 = arith.constant 0 : i32
    return %c0_i32, %c0_i32_0 : i32, i32
  }
  func.func @transform_3(%arg0: i32, %arg1: i32) -> (i32, i32) {
    %c0_i32 = arith.constant 0 : i32
    %c0_i32_0 = arith.constant 0 : i32
    %c0_i32_1 = arith.constant 0 : i32
    return %c0_i32, %c0_i32_0 : i32, i32
  }
  func.func @transform_4(%arg0: i32, %arg1: i32) -> (i32, i32) {
    %c0_i32 = arith.constant 0 : i32
    %c0_i32_0 = arith.constant 0 : i32
    %c0_i32_1 = arith.constant 0 : i32
    return %c0_i32, %c0_i32_0 : i32, i32
  }
  func.func @transform_5(%arg0: i32, %arg1: i32) -> (i32, i32) {
    %c0_i32 = arith.constant 0 : i32
    %c0_i32_0 = arith.constant 0 : i32
    %c0_i32_1 = arith.constant 0 : i32
    return %c0_i32, %c0_i32_0 : i32, i32
  }
  func.func @transform_6(%arg0: i32, %arg1: i32) -> (i32, i32) {
    %c0_i32 = arith.constant 0 : i32
    %c0_i32_0 = arith.constant 0 : i32
    %c0_i32_1 = arith.constant 0 : i32
    return %c0_i32, %c0_i32_0 : i32, i32
  }
  func.func @transform_7(%arg0: i32, %arg1: i32) -> (i32, i32, i32) {
    %c0_i32 = arith.constant 0 : i32
    %c0_i32_0 = arith.constant 0 : i32
    %c0_i32_1 = arith.constant 0 : i32
    return %arg0, %c0_i32, %c0_i32_0 : i32, i32, i32
  }
}

</mosaic_0001>

<bundles_post_ra>
// kernel: tpu_custom_call.1
= control target key start
LH: loop header
LB: loop body
LE: loop exit
PB: predicated region body
PF: predicated region fallthrough
CT: control target
= control target key end

     0   :  { %s5926_s0 = inlined_call_operand.hbm [shape: f32[4,16,256], index: 0, kind: input, shape index: {}]   ;;  %s5927_s1 = inlined_call_operand.hbm [shape: f32[16,64], index: 1, kind: input, shape index: {}]   ;;  %s5928_s2 = inlined_call_operand.vmem [shape: f32[1,64], index: 2, kind: input, shape index: {}]   ;;  %s5929_s3 = inlined_call_operand.hbm [shape: bf16[64,128], index: 3, kind: input, shape index: {}]   ;;  %s5930_s4 = inlined_call_operand.vmem [shape: f32[1,128], index: 4, kind: input, shape index: {}]   ;;  %s5931_s5 = inlined_call_operand.hbm [shape: bf16[128,1024], index: 5, kind: input, shape index: {}]   ;;  %s5932_s6 = inlined_call_operand.hbm [shape: bf16[1,1024], index: 6, kind: input, shape index: {}]   ;;  %s5933_s7 = inlined_call_operand.hbm [shape: f32[4,1,1024], index: 7, kind: output, shape index: {}]  }
   0x1   :  { %5935 = sst [smem:[#allocation17_spill]] %s5927_s1 }
   0x2   :  { %5936 = sst [smem:[#allocation18_spill]] %s5929_s3 }
   0x3   :  { %5937 = sst [smem:[#allocation19_spill]] %s5931_s5 }
   0x4   :  { %5938 = sst [smem:[#allocation20_spill]] %s5932_s6 }
   0x5   :  { %12 = vsyncpa [#allocation3], 0 }
   0x6   :  { %14 = vsyncpa [#allocation3 + $0x1], 0 }
   0x7   :  { %15 = vsyncpa [#allocation6], 0 }
   0x8   :  { %16 = vsyncpa [#allocation9], 0 }
   0x9   :  { %17 = vsyncpa [#allocation4], 0 }
   0xa   :  { %19 = vsyncpa [#allocation4 + $0x1], 0  ;;  %s5053_s24 = smov 0   ;;  %s5055_s25 = smov 0  }
   0xb   :  { %s5057_s26 = smov 0   ;;  %s5059_s27 = smov 0  }
   0xc   :  { %s5061_s28 = smov 0   ;;  %s5063_s29 = smov 0  }
   0xd LB: > { %s4219_s30 = sadd.s32 4294967295, %s4999_s29   ;;  %s4220_s8 = sadd.s32 4294967294, %s4999_s29   ;;  %s4999_s29 = sphi %s5063_s29, %s25_s29   ;;  %s4995_s28 = sphi %s5061_s28, %s5957_s28   ;;  %s4991_s27 = sphi %s5059_s27, %s5956_s27   ;;  %s4987_s26 = sphi %s5057_s26, %s5955_s26   ;;  %s4983_s25 = sphi %s5055_s25, %s5954_s25   ;;  %s4979_s24 = sphi %s5053_s24, %s5953_s24  }
   0xe   : > { %p59_p0 = scmp.ne.s32.totalorder %s4983_s25, %s4979_s24  ;;  %p5087_p1 = scmp.eq.s32.totalorder %s4219_s30, 0 }
   0xf   : > { %p5091_p2 = scmp.eq.s32.totalorder %s4219_s30, 3  ;;  %p215_p3 = scmp.eq.s32.totalorder %s4220_s8, 3 }
  0x10   : > { %p5097_p4 = por %p5087_p1, %p59_p0  ;;  %p4221_p5 = scmp.ge.s32.totalorder %s4999_s29, 1 }
  0x11   : > { %p5102_p6 = por %p215_p3, %p59_p0  ;;  %p222_p7 = scmp.lt.s32.totalorder %s4999_s29, 5 }
  0x12   : > { %s5943_s1 = sld [smem:[#allocation17_spill]]  ;;  %s5001_s17 = smov [#allocation5]  }
  0x13   : > { %p5110_p8 = pnand %p4221_p5, %p222_p7  ;;  %s235_s18 = sshll.u32 %s5001_s17, 4  ;;  %s236_s18 = int_to_ptr.vmem [resolvable:$true] %s235_s18 }
  0x14   : > { %s5946_s5 = sld [smem:[#allocation19_spill]]  ;;  %s5002_s23 = smov 128  }
  0x15   : > { %p4664_p9 = pneg %p5110_p8  ;;  %s5003_s30 = smov 8  }
  0x16   : > { %s5004_s8 = smov [#allocation8]   ;;  %s5005_s14 = smov 512  }
  0x17   : > { %p5118_p10 = pnand %p4664_p9, %p5087_p1  ;;  %s269_s13 = sshll.u32 %s5004_s8, 4  ;;  %s270_s13 = int_to_ptr.vmem [resolvable:$true] %s269_s13 }
  0x18   : > { %s233_s15 = sshll.u32 %s5943_s1, 4  ;;  %s5006_s17 = smov 32   ;;  %s234_s15 = int_to_ptr.hbm [resolvable:$true] %s233_s15 }
  0x19   : > { %4667 = dma.hbm_to_vmem [thread:$0]  (!%p5118_p10), %s234_s15, 256, %s236_s18, [#allocation6], %s5002_s23, %s5002_s23, %s5003_s30  }
  0x1a   : > { %s267_s22 = sshll.u32 %s5946_s5, 4  ;;  %s5947_s3 = sld [smem:[#allocation18_spill]]  ;;  %s268_s22 = int_to_ptr.hbm [resolvable:$true] %s267_s22 }
  0x1b   : > { %4673 = dma.hbm_to_vmem [thread:$0]  (!%p5118_p10), %s268_s22, 8192, %s270_s13, [#allocation9], %s5005_s14, %s5005_s14, %s5006_s17  }
  0x1c   : > { %s5007_s5 = smov [#allocation7]   ;;  %s5948_s6 = sld [smem:[#allocation20_spill]] }
  0x1d   : > { %s252_s15 = sshll.u32 %s5007_s5, 4  ;;  %s5008_s8 = smov 64   ;;  %s253_s15 = int_to_ptr.vmem [resolvable:$true] %s252_s15 }
  0x1e   : > { %s5009_s22 = smov 4   ;;  %s5010_s1 = smov [#allocation10]  }
  0x1f   : > { %s284_s13 = sshll.u32 %s5010_s1, 4  ;;  %s37_s5 = sadd.s32 1, %s4995_s28  ;;  %s285_s13 = int_to_ptr.vmem [resolvable:$true] %s284_s13 }
  0x20   : > { %s250_s21 = sshll.u32 %s5947_s3, 4  ;;  %s46_s14 = sadd.s32 1, %s4987_s26  ;;  %s251_s21 = int_to_ptr.hbm [resolvable:$true] %s250_s21 }
  0x21   : > { %4670 = dma.hbm_to_vmem [thread:$0]  (!%p5118_p10), %s251_s21, 512, %s253_s15, [#allocation6], %s5008_s8, %s5008_s8, %s5009_s22  }
  0x22   : > { %s282_s30 = sshll.u32 %s5948_s6, 4  ;;  %p39_p11 = scmp.ge.s32.totalorder %s37_s5, 4  ;;  %s283_s30 = int_to_ptr.hbm [resolvable:$true] %s282_s30 }
  0x23   : > { %4676 = dma.hbm_to_vmem [thread:$0]  (!%p5118_p10), %s283_s30, 128, %s285_s13, [#allocation9]  }
  0x24   : > { %p53_p12 = scmp.ne.s32.totalorder %s4987_s26, %s4983_s25  ;;  %p54_p13 = scmp.eq.s32.totalorder %s4999_s29, 0 }
  0x25   : > { %p4689_p0 = scmp.lt.s32.totalorder %s4999_s29, 4  ;;  %s5959_s5 = smov (%p39_p11, %s37_s5), 0 }
  0x26   : > { %5949 = sst [smem:[#allocation16_spill]] %s5959_s5  ;;  %p5147_p3 = por %p54_p13, %p53_p12 }
  0x27   : > { %p5153_p5 = por %p5091_p2, %p53_p12  ;;  %s41_s20 = ssub.s32 %s4995_s28, %s5959_s5 }
  0x28   : > { %s295_s21 = sand.u32 1, %s4987_s26   ;;  %p44_p7 = scmp.eq.s32.totalorder %s41_s20, 0 }
  0x29   : > { %s4227_s15 = sshll.u32 %s295_s21, 5  ;;  %s4561_s18 = sshll.u32 %s4995_s28, 5 }
  0x2a   : > { %s5162_s23 = scalar_select %p44_p7, %s4987_s26, %s46_s14  }
  0x2b   : > { %s306_s22 = scalar_lea.hbm %s5926_s0, %s4561_s18  ;;  %s299_s13 = scalar_lea.vmem [#allocation2], %s4227_s15 }
  0x2c   : > { %s307_s1 = sshll.u32 %s306_s22, 4  ;;  %s309_s3 = sshll.u32 %s299_s13, 4  ;;  %s308_s1 = int_to_ptr.hbm [resolvable:$true] %s307_s1  ;;  %s310_s3 = int_to_ptr.vmem [resolvable:$true] %s309_s3 }
  0x2d   : > { %p4678_p2 = pnand %p4689_p0, %p5147_p3  ;;  %s296_s10 = scalar_lea.sflag [#allocation3], %s295_s21 }
  0x2e   : > { %s5011_s6 = smov 256   ;;  %s5012_s5 = smov 16  }
  0x2f   : > { %4680 = dma.hbm_to_vmem [thread:$0]  (!%p4678_p2), %s308_s1, 512, %s310_s3, %s296_s10, %s5011_s6, %s5011_s6, %s5012_s5  }
  0x30   : > { %321 = sbr.rel (%p5110_p8) target bundleno = 1196 (0x4ac), region = 48  ;;  %s5174_s14 = sand.u32 (!%p5110_p8), 1, %s4983_s25  }
  0x31   : > { %s4231_s20 = sshll.u32 (!%p5110_p8), %s5174_s14, 5  ;;  %s324_s15 = scalar_lea.sflag (!%p5110_p8), [#allocation3], %s5174_s14 }
  0x32   : > { %s327_s18 = scalar_lea.vmem (!%p5110_p8), [#allocation2], %s4231_s20 }
  0x35   : > { %4962 = dma.done.wait (%p5097_p4), %s324_s15, 512  }
  0x36   : > { %4964 = vsyncadd (%p5097_p4), %s324_s15, 4294966784 }
  0x37   : > { %4966 = dma.done.wait (%p5087_p1), [#allocation6], 768  }
  0x38   : > { %4968 = vsyncadd (%p5087_p1), [#allocation6], 4294966528 }
  0x39   : > { %4970 = dma.done.wait (%p5087_p1), [#allocation9], 8320  }
  0x3a   : > { %4972 = vsyncadd (%p5087_p1), [#allocation9], 4294958976  ;;  %v386_v0 = vld [vmem:[%s327_s18] sm:$0xff]  ;;  %v387_v1 = vld [vmem:[%s327_s18 + $0x8] sm:$0xff]  ;;  %vm460_vm0 = vcmask 130048   ;;  %vm754_vm1 = vcmask 523264  }
  0x3b   : > { %396 = vxpose.xlu0.b32.start [1/2] (short) %v386_v0, 128  ;;  %428 = vxpose.xlu1.b32.start [1/2] (short) %v387_v1, 128  ;;  %v391_v2 = vld [vmem:[#allocation5 + $0x8] sm:$0xff]  ;;  %v390_v3 = vld [vmem:[#allocation5] sm:$0xff]  ;;  %v388_v4 = vld [vmem:[%s327_s18 + $0x10] sm:$0xff]  ;;  %vm4067_vm2 = vcmask 1040384   ;;  %vm4069_vm3 = vcmask 1042434   ;;  %vm4071_vm4 = vcmask 1041408  }
  0x3c   : > { %571 = vmatpush.msra.mxu0 %v391_v2  ;;  %4630 = vmatpush.msra.mxu3 %v391_v2  ;;  %v389_v5 = vld [vmem:[%s327_s18 + $0x18] sm:$0xff]  ;;  %v4565_v30 = vld [vmem:[#allocation7 + $0x18] sm:$0xff]  ;;  %v4564_v33 = vld [vmem:[#allocation7 + $0x10] sm:$0xff]  ;;  %s4236_s16 = sshll.u32 %s5174_s14, 3  ;;  %s4558_s5 = sshll.u32 %s4991_s27, 3  ;;  %vm4073_vm5 = vcmask 1044484  }
  0x3d   : > { %807 = vmatpush.bf16.msra.mxu1 %v4565_v30  ;;  %4632 = vmatpush.bf16.msra.mxu2 %v4565_v30  ;;  %v4563_v34 = vld [vmem:[#allocation7 + $0x8] sm:$0xff]  ;;  %v4562_v37 = vld [vmem:[#allocation7] sm:$0xff]  ;;  %vm4075_vm6 = vcmask 1046534   ;;  %s4095_s30 = scalar_lea.hbm %s5933_s7, %s4558_s5  ;;  %vm4077_vm7 = vcmask 1045508   ;;  %vm4079_vm8 = vcmask 1043456   ;;  %s378_s8 = scalar_lea.vmem [#allocation11], %s4236_s16 }
  0x3e   : > { %572 = vmatpush.msra.mxu0 %v390_v3  ;;  %4631 = vmatpush.msra.mxu3 %v390_v3  ;;  %v5226_v43 = vld [vmem:[%s5928_s2] ss:$0 sm:$0xff]  ;;  %v4622_v44 = vld [vmem:[#allocation8 + $0x1c4] sm:$0xf]  ;;  %v4623_v55 = vld [vmem:[#allocation8 + $0x1cc] sm:$0xf] }
  0x3f   : > { %v4529_v45 = vld [vmem:[#allocation8 + $0x1e0] sm:$0xf0]  ;;  %v4535_v53 = vld [vmem:[#allocation8 + $0x1c8] sm:$0xf]  ;;  %v4537_v58 = vld [vmem:[#allocation8 + $0x1e8] sm:$0xf0] }
  0x40   : > { %v4532_v46 = vor.u32 %v4622_v44, %v4529_v45  ;;  %v4627_v54 = vld [vmem:[#allocation8 + $0x1e4] sm:$0xf0]  ;;  %v4540_v59 = vor.u32 %v4623_v55, %v4537_v58  ;;  %v4614_v61 = vld [vmem:[#allocation8 + $0x184] sm:$0xf]  ;;  %s4097_s27 = sshll.u32 %s378_s8, 4  ;;  %s4099_s22 = sshll.u32 %s4095_s30, 4  ;;  %s4098_s27 = int_to_ptr.vmem [resolvable:$true] %s4097_s27  ;;  %s4100_s22 = int_to_ptr.hbm [resolvable:$true] %s4099_s22 }
  0x41   : > { %808 = vmatpush.bf16.msra.mxu1 %v4564_v33  ;;  %4633 = vmatpush.bf16.msra.mxu2 %v4564_v33  ;;  %v4536_v57 = vor.u32 %v4627_v54, %v4535_v53  ;;  %v4497_v62 = vld [vmem:[#allocation8 + $0x1a0] sm:$0xf0]  ;;  %v4610_v54 = vld [vmem:[#allocation8 + $0x15c] sm:$0xf0]  ;;  %s4085_s1 = scalar_lea.sflag [#allocation4], %s5174_s14  ;;  %s4923_s13 = sshra.s32 %s4100_s22, 4  ;;  %s4924_s13 = int_to_ptr.hbm [resolvable:$true] %s4923_s13 }
  0x42   : > { %1413 = vmatpush.bf16.msrb.mxu3 %v4532_v46  ;;  %v4500_v63 = vor.u32 %v4614_v61, %v4497_v62  ;;  %s4925_s10 = scalar_lea.hbm %s4924_s13, 8  ;;  %s4929_s18 = scalar_lea.hbm %s5933_s7, 32 }
  0x43   : > { %397 = vxpose.xlu0.b32.end [2/2] (short) %v388_v4, 128  ;;  %429 = vxpose.xlu1.b32.end [2/2] (short) %v389_v5, 128  ;;  %p4926_p1 = scmp.ne.s32.totalorder %s4924_s13, %s4925_s10  ;;  %p4930_p9 = scmp.lt.s32.totalorder %s4924_s13, %s5933_s7 }
  0x44   : > { %1502 = vmatpush.bf16.msrb.mxu0 %v4536_v57  ;;  %p4931_p10 = scmp.lt.s32.totalorder %s4929_s18, %s4925_s10 }
  0x45   : > { %809 = vmatpush.bf16.msra.mxu1 %v4563_v34  ;;  %4634 = vmatpush.bf16.msra.mxu2 %v4563_v34  ;;  %v4495_v34 = vld [vmem:[#allocation8 + $0x180] sm:$0xf]  ;;  %p4927_p4 = pnand %p4926_p1, %p5153_p5 }
  0x46   : > { %1414 = vmatpush.bf16.msrb.mxu3 %v4500_v63  ;;  %p4932_p11 = por %p4931_p10, %p4930_p9 }
  0x47   : > { %p4928_p8 = pneg %p4927_p4 }
  0x49   : > { %810 = vmatpush.bf16.msra.mxu1 %v4562_v37  ;;  %4635 = vmatpush.bf16.msra.mxu2 %v4562_v37  ;;  %p4933_p12 = pnand %p4932_p11, %p4928_p8 }
  0x4d   : > { %1591 = vmatpush.bf16.msrb.mxu1 %v4540_v59 }
  0xdf   : > { %v412_v6 = vpop.trf.xlu0  ;;  %v5190_v7 = vpop.trf.xlu1 }
  0xe0   : > { %4237 = vmatmul.msk.f32.vlgmr.msra.gmra.mxu0 %vm460_vm0, %v412_v6 }
  0xe7   : > { %v413_v8 = vpop.trf.xlu0  ;;  %v445_v9 = vpop.trf.xlu1 }
  0xe8   : > { %4238 = vmatmul.msk.f32.gmra.mxu0 %vm460_vm0, %v413_v8  ;;  %4254 = vmatmul.msk.f32.vlgmr.msra.gmra.mxu3 %vm460_vm0, %v445_v9  ;;  %v4503_v8 = vld [vmem:[#allocation8 + $0x188] sm:$0xf] }
  0xe9   : > { %v4619_v9 = vld [vmem:[#allocation8 + $0x1a4] sm:$0xf0] }
  0xef   : > { %v414_v10 = vpop.trf.xlu0  ;;  %v446_v11 = vpop.trf.xlu1 }
  0xf0   : > { %4239 = vmatmul.msk.f32.gmra.mxu0 %vm460_vm0, %v414_v10  ;;  %4255 = vmatmul.msk.f32.gmra.mxu3 %vm460_vm0, %v446_v11  ;;  %v4527_v10 = vld [vmem:[#allocation8 + $0x1c0] sm:$0xf] }
  0xf7   : > { %v415_v12 = vpop.trf.xlu0  ;;  %v447_v13 = vpop.trf.xlu1 }
  0xf8   : > { %4240 = vmatmul.msk.f32.gmra.mxu0 %vm460_vm0, %v415_v12  ;;  %4256 = vmatmul.msk.f32.gmra.mxu3 %vm460_vm0, %v447_v13  ;;  %v4504_v12 = vor.u32 %v4619_v9, %v4503_v8  ;;  %v4626_v13 = vld [vmem:[#allocation8 + $0x1dc] sm:$0xf0]  ;;  %v4401_v8 = vld [vmem:[#allocation8 + $0xe0] sm:$0xf0] }
  0xfa   : > { %1503 = vmatpush.bf16.msrb.mxu0 %v4504_v12 }
  0xff   : > { %v416_v14 = vpop.trf.xlu0  ;;  %v448_v15 = vpop.trf.xlu1 }
 0x100   : > { %4241 = vmatmul.msk.f32.gmra.mxu0 %vm460_vm0, %v416_v14  ;;  %4257 = vmatmul.msk.f32.gmra.mxu3 %vm460_vm0, %v448_v15 }
 0x107   : > { %v417_v16 = vpop.trf.xlu0  ;;  %v449_v17 = vpop.trf.xlu1 }
 0x108   : > { %4242 = vmatmul.msk.f32.gmra.mxu0 %vm460_vm0, %v417_v16  ;;  %4258 = vmatmul.msk.f32.gmra.mxu3 %vm460_vm0, %v449_v17  ;;  %v4528_v16 = vor.u32 %v4626_v13, %v4527_v10  ;;  %v4615_v17 = vld [vmem:[#allocation8 + $0x18c] sm:$0xf] }
 0x109   : > { %v4599_v13 = vld [vmem:[#allocation8 + $0x10c] sm:$0xf] }
 0x10a   : > { %1324 = vmatpush.bf16.msrb.mxu2 %v4528_v16  ;;  %v4431_v16 = vld [vmem:[#allocation8 + $0x100] sm:$0xf] }
 0x10f   : > { %v418_v18 = vpop.trf.xlu0  ;;  %v450_v19 = vpop.trf.xlu1 }
 0x110   : > { %4243 = vmatmul.msk.f32.gmra.mxu0 %vm460_vm0, %v418_v18  ;;  %4259 = vmatmul.msk.f32.gmra.mxu3 %vm460_vm0, %v450_v19  ;;  %v4505_v18 = vld [vmem:[#allocation8 + $0x1a8] sm:$0xf0] }
 0x117   : > { %v419_v20 = vpop.trf.xlu0  ;;  %v451_v21 = vpop.trf.xlu1 }
 0x118   : > { %4244 = vmatmul.msk.f32.gmra.mxu0 %vm460_vm0, %v419_v20  ;;  %4260 = vmatmul.msk.f32.gmra.mxu3 %vm460_vm0, %v451_v21  ;;  %v4508_v20 = vor.u32 %v4615_v17, %v4505_v18  ;;  %v4602_v17 = vld [vmem:[#allocation8 + $0x11c] sm:$0xf0] }
 0x119   : > { %v4432_v18 = vor.u32 %v4602_v17, %v4431_v16 }
 0x11a   : > { %1592 = vmatpush.bf16.msrb.mxu1 %v4508_v20 }
 0x11f   : > { %v420_v22 = vpop.trf.xlu0  ;;  %v452_v23 = vpop.trf.xlu1 }
 0x120   : > { %4245 = vmatmul.msk.f32.gmra.mxu0 %vm460_vm0, %v420_v22  ;;  %4261 = vmatmul.msk.f32.gmra.mxu3 %vm460_vm0, %v452_v23  ;;  %v4606_v23 = vld [vmem:[#allocation8 + $0x144] sm:$0xf] }
 0x127   : > { %v421_v24 = vpop.trf.xlu0  ;;  %v453_v25 = vpop.trf.xlu1 }
 0x128   : > { %4246 = vmatmul.msk.f32.gmra.mxu0 %vm460_vm0, %v421_v24  ;;  %4262 = vmatmul.msk.f32.gmra.mxu3 %vm460_vm0, %v453_v25  ;;  %v4465_v24 = vld [vmem:[#allocation8 + $0x160] sm:$0xf0] }
 0x129   : > { %v4468_v25 = vor.u32 %v4606_v23, %v4465_v24 }
 0x12b   : > { %1415 = vmatpush.bf16.msrb.mxu3 %v4468_v25 }
 0x12f   : > { %v422_v26 = vpop.trf.xlu0  ;;  %v454_v27 = vpop.trf.xlu1 }
 0x130   : > { %4247 = vmatmul.msk.f32.gmra.mxu0 %vm460_vm0, %v422_v26  ;;  %4263 = vmatmul.msk.f32.gmra.mxu3 %vm460_vm0, %v454_v27 }
 0x137   : > { %v423_v28 = vpop.trf.xlu0  ;;  %v455_v29 = vpop.trf.xlu1 }
 0x138   : > { %4248 = vmatmul.msk.f32.gmra.mxu0 %vm460_vm0, %v423_v28  ;;  %4264 = vmatmul.msk.f32.gmra.mxu3 %vm460_vm0, %v455_v29 }
 0x13f   : > { %v424_v31 = vpop.trf.xlu0  ;;  %v456_v32 = vpop.trf.xlu1 }
 0x140   : > { %4249 = vmatmul.msk.f32.gmra.mxu0 %vm460_vm0, %v424_v31  ;;  %4265 = vmatmul.msk.f32.gmra.mxu3 %vm460_vm0, %v456_v32 }
 0x147   : > { %v425_v35 = vpop.trf.xlu0  ;;  %v457_v36 = vpop.trf.xlu1 }
 0x148   : > { %4250 = vmatmul.msk.f32.gmra.mxu0 %vm460_vm0, %v425_v35  ;;  %4266 = vmatmul.msk.f32.gmra.mxu3 %vm460_vm0, %v457_v36  ;;  %v4618_v35 = vld [vmem:[#allocation8 + $0x19c] sm:$0xf0]  ;;  %v4471_v36 = vld [vmem:[#allocation8 + $0x148] sm:$0xf] }
 0x14f   : > { %v426_v38 = vpop.trf.xlu0  ;;  %v458_v39 = vpop.trf.xlu1 }
 0x150   : > { %4251 = vmatmul.msk.f32.gmra.mxu0 %vm460_vm0, %v426_v38  ;;  %4267 = vmatmul.msk.f32.gmra.mxu3 %vm460_vm0, %v458_v39  ;;  %v4496_v38 = vor.u32 %v4618_v35, %v4495_v34  ;;  %v4611_v39 = vld [vmem:[#allocation8 + $0x164] sm:$0xf0] }
 0x152   : > { %1325 = vmatpush.bf16.msrb.mxu2 %v4496_v38 }
 0x157   : > { %v427_v40 = vpop.trf.xlu0  ;;  %v459_v41 = vpop.trf.xlu1 }
 0x158   : > { %4252 = vmatmul.msk.f32.gmra.mxu0 %vm460_vm0, %v427_v40  ;;  %4268 = vmatmul.msk.f32.gmra.mxu3 %vm460_vm0, %v459_v41 }
 0x15d   : > { %v574_v42 = vpop.f32.mrf.mxu0 }
 0x15e   : > { %v575_v47 = vadd.f32 %v5226_v43, %v574_v42  ;;  %v4472_v42 = vor.u32 %v4611_v39, %v4471_v36  ;;  %v4399_v39 = vld [vmem:[#allocation8 + $0xc0] sm:$0xf] }
 0x160   : > { %4253 = vmatmul.msk.f32.gmra.mxu0 %vm460_vm0, %v5190_v7  ;;  %v670_v50 = vmax.f32 %v575_v47, 0.0  ;;  %v4598_v47 = vld [vmem:[#allocation8 + $0x104] sm:$0xf] }
 0x161   : > { %1504 = vmatpush.bf16.msrb.mxu0 %v4472_v42  ;;  %v4591_v42 = vld [vmem:[#allocation8 + $0xcc] sm:$0xf] }
 0x165   : > { %v577_v48 = vpop.f32.mrf.mxu0 }
 0x166   : > { %v578_v49 = vadd.f32 %v5226_v43, %v577_v48  ;;  %v4433_v48 = vld [vmem:[#allocation8 + $0x120] sm:$0xf0] }
 0x168   : > { %v671_v51 = vmax.f32 %v578_v49, 0.0  ;;  %v4436_v49 = vor.u32 %v4598_v47, %v4433_v48 }
 0x16a   : > { %v702_v52 = vpack.c.bf16 %v671_v51, %v670_v50  ;;  %v4607_v50 = vld [vmem:[#allocation8 + $0x14c] sm:$0xf]  ;;  %1416 = vmatpush.bf16.msrb.mxu3 %v4436_v49 }
 0x16b   : > { %v5232_v56 = vpop.f32.mrf.mxu3  ;;  %v4473_v51 = vld [vmem:[#allocation8 + $0x168] sm:$0xf0] }
 0x16c   : > { %4285 = vmatmul.msk.bf16.vlgmr.msra.gmra.mxu1 %vm754_vm1, %v702_v52  ;;  %v4463_v52 = vld [vmem:[#allocation8 + $0x140] sm:$0xf]  ;;  %v4476_v53 = vor.u32 %v4607_v50, %v4473_v51 }
 0x16d   : > { %v580_v60 = vpop.f32.mrf.mxu0  ;;  %v4464_v57 = vor.u32 %v4610_v54, %v4463_v52  ;;  %v4574_v54 = vld [vmem:[#allocation8 + $0x44] sm:$0xf] }
 0x16e   : > { %v581_v1 = vadd.f32 %v5226_v43, %v580_v60  ;;  %1593 = vmatpush.bf16.msrb.mxu1 %v4476_v53 }
 0x16f   : > { %1326 = vmatpush.bf16.msrb.mxu2 %v4464_v57  ;;  %v4375_v57 = vld [vmem:[#allocation8 + $0x88] sm:$0xf] }
 0x170   : > { %v672_v4 = vmax.f32 %v581_v1, 0.0  ;;  %v4439_v1 = vld [vmem:[#allocation8 + $0x108] sm:$0xf] }
 0x173   : > { %v628_v0 = vpop.f32.mrf.mxu3  ;;  %1327 = vmatpush.bf16.msrb.mxu2 %v4432_v18 }
 0x174   : > { %v629_v6 = vadd.f32 %v5226_v43, %v628_v0 }
 0x175   : > { %v583_v2 = vpop.f32.mrf.mxu0 }
 0x176   : > { %v584_v3 = vadd.f32 %v5226_v43, %v583_v2  ;;  %v688_v14 = vmax.f32 %v629_v6, 0.0  ;;  %v4603_v2 = vld [vmem:[#allocation8 + $0x124] sm:$0xf0] }
 0x178   : > { %v673_v5 = vmax.f32 %v584_v3, 0.0 }
 0x17a   : > { %v703_v7 = vpack.c.bf16 %v673_v5, %v672_v4  ;;  %v4440_v4 = vor.u32 %v4603_v2, %v4439_v1 }
 0x17b   : > { %v631_v11 = vpop.f32.mrf.mxu3 }
 0x17c   : > { %4286 = vmatmul.msk.bf16.gmra.mxu1 %vm754_vm1, %v703_v7  ;;  %v632_v15 = vadd.f32 %v5226_v43, %v631_v11  ;;  %v4590_v7 = vld [vmem:[#allocation8 + $0xc4] sm:$0xf]  ;;  %1505 = vmatpush.bf16.msrb.mxu0 %v4440_v4  ;;  %v4586_v4 = vld [vmem:[#allocation8 + $0x9c] sm:$0xf0] }
 0x17d   : > { %v586_v19 = vpop.f32.mrf.mxu0  ;;  %v4404_v10 = vor.u32 %v4590_v7, %v4401_v8  ;;  %v4377_v7 = vld [vmem:[#allocation8 + $0xa8] sm:$0xf0] }
 0x17e   : > { %v689_v21 = vmax.f32 %v632_v15, 0.0  ;;  %v587_v27 = vadd.f32 %v5226_v43, %v586_v19 }
 0x17f   : > { %1417 = vmatpush.bf16.msrb.mxu3 %v4404_v10 }
 0x180   : > { %v711_v22 = vpack.c.bf16 %v689_v21, %v688_v14  ;;  %v674_v30 = vmax.f32 %v587_v27, 0.0  ;;  %v4441_v14 = vld [vmem:[#allocation8 + $0x128] sm:$0xf0]  ;;  %v4407_v27 = vld [vmem:[#allocation8 + $0xc8] sm:$0xf] }
 0x181   : > { %v4444_v15 = vor.u32 %v4599_v13, %v4441_v14 }
 0x182   : > { %4294 = vmatmul.msk.bf16.vlgmr.msra.gmra.mxu2 %vm754_vm1, %v711_v22 }
 0x183   : > { %v634_v26 = vpop.f32.mrf.mxu3  ;;  %1594 = vmatpush.bf16.msrb.mxu1 %v4444_v15 }
 0x184   : > { %v635_v32 = vadd.f32 %v5226_v43, %v634_v26 }
 0x185   : > { %v589_v28 = vpop.f32.mrf.mxu0 }
 0x186   : > { %v590_v29 = vadd.f32 %v5226_v43, %v589_v28  ;;  %v690_v40 = vmax.f32 %v635_v32, 0.0  ;;  %v4595_v28 = vld [vmem:[#allocation8 + $0xe4] sm:$0xf0]  ;;  %v4369_v32 = vld [vmem:[#allocation8 + $0xa0] sm:$0xf0] }
 0x188   : > { %v675_v31 = vmax.f32 %v590_v29, 0.0  ;;  %v4582_v29 = vld [vmem:[#allocation8 + $0x84] sm:$0xf] }
 0x189   : > { %v4372_v35 = vor.u32 %v4582_v29, %v4369_v32  ;;  %v4303_v32 = vld [vmem:[#allocation8] sm:$0xf] }
 0x18a   : > { %v704_v33 = vpack.c.bf16 %v675_v31, %v674_v30  ;;  %v4408_v31 = vor.u32 %v4595_v28, %v4407_v27  ;;  %v4579_v27 = vld [vmem:[#allocation8 + $0x64] sm:$0xf0] }
 0x18b   : > { %v637_v37 = vpop.f32.mrf.mxu3  ;;  %1418 = vmatpush.bf16.msrb.mxu3 %v4372_v35 }
 0x18c   : > { %4287 = vmatmul.msk.bf16.gmra.mxu1 %vm754_vm1, %v704_v33  ;;  %v638_v41 = vadd.f32 %v5226_v43, %v637_v37  ;;  %1506 = vmatpush.bf16.msrb.mxu0 %v4408_v31 }
 0x18d   : > { %v592_v44 = vpop.f32.mrf.mxu0 }
 0x18e   : > { %v691_v45 = vmax.f32 %v638_v41, 0.0  ;;  %v593_v58 = vadd.f32 %v5226_v43, %v592_v44  ;;  %v4409_v44 = vld [vmem:[#allocation8 + $0xe8] sm:$0xf0] }
 0x190   : > { %v712_v46 = vpack.c.bf16 %v691_v45, %v690_v40  ;;  %v676_v61 = vmax.f32 %v593_v58, 0.0  ;;  %v4594_v40 = vld [vmem:[#allocation8 + $0xdc] sm:$0xf0]  ;;  %v4412_v45 = vor.u32 %v4591_v42, %v4409_v44 }
 0x191   : > { %v4400_v41 = vor.u32 %v4594_v40, %v4399_v39  ;;  %v4345_v39 = vld [vmem:[#allocation8 + $0x68] sm:$0xf0] }
 0x192   : > { %4295 = vmatmul.msk.bf16.gmra.mxu2 %vm754_vm1, %v712_v46  ;;  %1595 = vmatpush.bf16.msrb.mxu1 %v4412_v45 }
 0x193   : > { %v640_v55 = vpop.f32.mrf.mxu3  ;;  %1328 = vmatpush.bf16.msrb.mxu2 %v4400_v41 }
 0x194   : > { %v641_v63 = vadd.f32 %v5226_v43, %v640_v55  ;;  %v4337_v55 = vld [vmem:[#allocation8 + $0x60] sm:$0xf0] }
 0x195   : > { %v595_v59 = vpop.f32.mrf.mxu0 }
 0x196   : > { %v596_v60 = vadd.f32 %v5226_v43, %v595_v59  ;;  %v692_v5 = vmax.f32 %v641_v63, 0.0  ;;  %v4340_v59 = vor.u32 %v4574_v54, %v4337_v55 }
 0x198   : > { %v677_v62 = vmax.f32 %v596_v60, 0.0  ;;  %v4587_v60 = vld [vmem:[#allocation8 + $0xa4] sm:$0xf0]  ;;  %1419 = vmatpush.bf16.msrb.mxu3 %v4340_v59 }
 0x199   : > { %v4376_v63 = vor.u32 %v4587_v60, %v4375_v57 }
 0x19a   : > { %v705_v0 = vpack.c.bf16 %v677_v62, %v676_v61 }
 0x19b   : > { %v643_v3 = vpop.f32.mrf.mxu3  ;;  %1507 = vmatpush.bf16.msrb.mxu0 %v4376_v63 }
 0x19c   : > { %4288 = vmatmul.msk.bf16.gmra.mxu1 %vm754_vm1, %v705_v0  ;;  %v644_v6 = vadd.f32 %v5226_v43, %v643_v3  ;;  %v4367_v3 = vld [vmem:[#allocation8 + $0x80] sm:$0xf] }
 0x19d   : > { %v598_v9 = vpop.f32.mrf.mxu0 }
 0x19e   : > { %v693_v11 = vmax.f32 %v644_v6, 0.0  ;;  %v599_v20 = vadd.f32 %v5226_v43, %v598_v9  ;;  %v4583_v6 = vld [vmem:[#allocation8 + $0x8c] sm:$0xf] }
 0x19f   : > { %v4380_v8 = vor.u32 %v4583_v6, %v4377_v7 }
 0x1a0   : > { %v713_v12 = vpack.c.bf16 %v693_v11, %v692_v5  ;;  %v678_v23 = vmax.f32 %v599_v20, 0.0  ;;  %v4368_v5 = vor.u32 %v4586_v4, %v4367_v3  ;;  %v4566_v20 = vld [vmem:[#allocation8 + $0x4] sm:$0xf]  ;;  %v4543_v4 = vld [vmem:[#allocation8 + $0x1d0] sm:$0xf] }
 0x1a1   : > { %1596 = vmatpush.bf16.msrb.mxu1 %v4380_v8  ;;  %v5283_v8 = vld [vmem:[%s5930_s4] ss:$0 sm:$0xff] }
 0x1a2   : > { %4296 = vmatmul.msk.bf16.gmra.mxu2 %vm754_vm1, %v713_v12 }
 0x1a3   : > { %v646_v19 = vpop.f32.mrf.mxu3  ;;  %1329 = vmatpush.bf16.msrb.mxu2 %v4368_v5  ;;  %v4628_v5 = vld [vmem:[#allocation8 + $0x1ec] sm:$0xf0] }
 0x1a4   : > { %v647_v25 = vadd.f32 %v5226_v43, %v646_v19  ;;  %v4544_v7 = vor.u32 %v4628_v5, %v4543_v4 }
 0x1a5   : > { %v601_v21 = vpop.f32.mrf.mxu0 }
 0x1a6   : > { %v602_v22 = vadd.f32 %v5226_v43, %v601_v21  ;;  %v694_v33 = vmax.f32 %v647_v25, 0.0  ;;  %v4305_v21 = vld [vmem:[#allocation8 + $0x20] sm:$0xf0]  ;;  %v4578_v25 = vld [vmem:[#allocation8 + $0x5c] sm:$0xf0] }
 0x1a8   : > { %v679_v24 = vmax.f32 %v602_v22, 0.0  ;;  %v4335_v22 = vld [vmem:[#allocation8 + $0x40] sm:$0xf] }
 0x1a9   : > { %v4336_v29 = vor.u32 %v4578_v25, %v4335_v22 }
 0x1aa   : > { %v706_v26 = vpack.c.bf16 %v679_v24, %v678_v23  ;;  %v4308_v24 = vor.u32 %v4566_v20, %v4305_v21  ;;  %v4625_v20 = vld [vmem:[#allocation8 + $0x1dc] sm:$0xf] }
 0x1ab   : > { %v649_v30 = vpop.f32.mrf.mxu3  ;;  %1330 = vmatpush.bf16.msrb.mxu2 %v4336_v29  ;;  %v4553_v21 = vld [vmem:[#allocation8 + $0x1f8] sm:$0xf0] }
 0x1ac   : > { %4289 = vmatmul.msk.bf16.gmra.mxu1 %vm754_vm1, %v706_v26  ;;  %v650_v34 = vadd.f32 %v5226_v43, %v649_v30  ;;  %v4343_v26 = vld [vmem:[#allocation8 + $0x48] sm:$0xf]  ;;  %1420 = vmatpush.bf16.msrb.mxu3 %v4308_v24  ;;  %v5294_v22 = vor.u32 %v4625_v20, %v4553_v21 }
 0x1ad   : > { %v604_v36 = vpop.f32.mrf.mxu0  ;;  %v4344_v30 = vor.u32 %v4579_v27, %v4343_v26 }
 0x1ae   : > { %v695_v37 = vmax.f32 %v650_v34, 0.0  ;;  %v605_v47 = vadd.f32 %v5226_v43, %v604_v36  ;;  %v4311_v34 = vld [vmem:[#allocation8 + $0x8] sm:$0xf] }
 0x1af   : > { %1508 = vmatpush.bf16.msrb.mxu0 %v4344_v30 }
 0x1b0   : > { %v714_v38 = vpack.c.bf16 %v695_v37, %v694_v33  ;;  %v680_v50 = vmax.f32 %v605_v47, 0.0  ;;  %v4570_v33 = vld [vmem:[#allocation8 + $0x1c] sm:$0xf0]  ;;  %v4571_v37 = vld [vmem:[#allocation8 + $0x24] sm:$0xf0] }
 0x1b1   : > { %v4304_v36 = vor.u32 %v4570_v33, %v4303_v32  ;;  %v4312_v41 = vor.u32 %v4571_v37, %v4311_v34  ;;  %v4313_v47 = vld [vmem:[#allocation8 + $0x28] sm:$0xf0]  ;;  %v4620_v32 = vld [vmem:[#allocation8 + $0x1ac] sm:$0xf0] }
 0x1b2   : > { %4297 = vmatmul.msk.bf16.gmra.mxu2 %vm754_vm1, %v714_v38  ;;  %v4575_v38 = vld [vmem:[#allocation8 + $0x4c] sm:$0xf] }
 0x1b3   : > { %v652_v46 = vpop.f32.mrf.mxu3  ;;  %v4348_v42 = vor.u32 %v4575_v38, %v4345_v39  ;;  %1331 = vmatpush.bf16.msrb.mxu2 %v4304_v36  ;;  %1509 = vmatpush.bf16.msrb.mxu0 %v4312_v41  ;;  %v4621_v36 = vld [vmem:[#allocation8 + $0x1b4] sm:$0xf0] }
 0x1b4   : > { %v653_v52 = vadd.f32 %v5226_v43, %v652_v46  ;;  %v4567_v46 = vld [vmem:[#allocation8 + $0xc] sm:$0xf] }
 0x1b5   : > { %v607_v48 = vpop.f32.mrf.mxu0  ;;  %1597 = vmatpush.bf16.msrb.mxu1 %v4348_v42 }
 0x1b6   : > { %v608_v49 = vadd.f32 %v5226_v43, %v607_v48  ;;  %v696_v61 = vmax.f32 %v653_v52, 0.0  ;;  %v4624_v52 = vld [vmem:[#allocation8 + $0x1d4] sm:$0xf] }
 0x1b7   : > { %1680 = vmatpush.bf16.msra.mxu2 %v4544_v7 }
 0x1b8   : > { %v681_v51 = vmax.f32 %v608_v49, 0.0 }
 0x1ba   : > { %v707_v53 = vpack.c.bf16 %v681_v51, %v680_v50  ;;  %v4316_v51 = vor.u32 %v4567_v46, %v4313_v47 }
 0x1bb   : > { %v655_v58 = vpop.f32.mrf.mxu3 }
 0x1bc   : > { %4290 = vmatmul.msk.bf16.gmra.mxu1 %vm754_vm1, %v707_v53  ;;  %v656_v62 = vadd.f32 %v5226_v43, %v655_v58  ;;  %v4545_v53 = vld [vmem:[#allocation8 + $0x1f0] sm:$0xf0] }
 0x1bd   : > { %v610_v0 = vpop.f32.mrf.mxu0  ;;  %v4548_v55 = vor.u32 %v4624_v52, %v4545_v53  ;;  %1598 = vmatpush.bf16.msrb.mxu1 %v4316_v51  ;;  %v4608_v52 = vld [vmem:[#allocation8 + $0x154] sm:$0xf] }
 0x1be   : > { %v697_v1 = vmax.f32 %v656_v62, 0.0  ;;  %v611_v10 = vadd.f32 %v5226_v43, %v610_v0  ;;  %v626_v0 = vadd.f32 %v5226_v43, %v5232_v56  ;;  %v4481_v53 = vld [vmem:[#allocation8 + $0x170] sm:$0xf0] }
 0x1bf   : > { %1769 = vmatpush.bf16.msra.mxu3 %v4548_v55  ;;  %v4484_v55 = vor.u32 %v4608_v52, %v4481_v53 }
 0x1c0   : > { %v715_v2 = vpack.c.bf16 %v697_v1, %v696_v61  ;;  %v682_v14 = vmax.f32 %v611_v10, 0.0  ;;  %v4629_v10 = vld [vmem:[#allocation8 + $0x1f4] sm:$0xf0] }
 0x1c1   : > { %1947 = vmatpush.bf16.msra.mxu1 %v5294_v22 }
 0x1c2   : > { %4298 = vmatmul.msk.bf16.gmra.mxu2 %vm754_vm1, %v715_v2  ;;  %v687_v2 = vmax.f32 %v626_v0, 0.0 }
 0x1c3   : > { %v658_v9 = vpop.f32.mrf.mxu3 }
 0x1c4   : > { %v659_v13 = vadd.f32 %v5226_v43, %v658_v9  ;;  %v4551_v9 = vld [vmem:[#allocation8 + $0x1d8] sm:$0xf] }
 0x1c5   : > { %v613_v11 = vpop.f32.mrf.mxu0 }
 0x1c6   : > { %v614_v12 = vadd.f32 %v5226_v43, %v613_v11  ;;  %v698_v17 = vmax.f32 %v659_v13, 0.0  ;;  %v4552_v11 = vor.u32 %v4629_v10, %v4551_v9  ;;  %v4479_v10 = vld [vmem:[#allocation8 + $0x150] sm:$0xf] }
 0x1c8   : > { %v683_v15 = vmax.f32 %v614_v12, 0.0  ;;  %1858 = vmatpush.bf16.msra.mxu0 %v4552_v11  ;;  %v4612_v11 = vld [vmem:[#allocation8 + $0x16c] sm:$0xf0] }
 0x1ca   : > { %v708_v16 = vpack.c.bf16 %v683_v15, %v682_v14 }
 0x1cb   : > { %v661_v18 = vpop.f32.mrf.mxu3 }
 0x1cc   : > { %4291 = vmatmul.msk.bf16.gmra.mxu1 %vm754_vm1, %v708_v16  ;;  %v662_v19 = vadd.f32 %v5226_v43, %v661_v18  ;;  %v4513_v18 = vld [vmem:[#allocation8 + $0x1b0] sm:$0xf0] }
 0x1cd   : > { %v616_v23 = vpop.f32.mrf.mxu0 }
 0x1ce   : > { %v699_v28 = vmax.f32 %v662_v19, 0.0  ;;  %v617_v40 = vadd.f32 %v5226_v43, %v616_v23 }
 0x1d0   : > { %v716_v31 = vpack.c.bf16 %v699_v28, %v698_v17  ;;  %v684_v48 = vmax.f32 %v617_v40, 0.0  ;;  %v4616_v17 = vld [vmem:[#allocation8 + $0x194] sm:$0xf] }
 0x1d1   : > { %v4516_v19 = vor.u32 %v4616_v17, %v4513_v18 }
 0x1d2   : > { %4299 = vmatmul.msk.bf16.gmra.mxu2 %vm754_vm1, %v716_v31  ;;  %v4511_v31 = vld [vmem:[#allocation8 + $0x190] sm:$0xf] }
 0x1d3   : > { %v664_v35 = vpop.f32.mrf.mxu3  ;;  %1770 = vmatpush.bf16.msra.mxu3 %v4516_v19  ;;  %v4512_v34 = vor.u32 %v4620_v32, %v4511_v31  ;;  %v4600_v31 = vld [vmem:[#allocation8 + $0x114] sm:$0xf] }
 0x1d4   : > { %v665_v50 = vadd.f32 %v5226_v43, %v664_v35  ;;  %v4519_v35 = vld [vmem:[#allocation8 + $0x198] sm:$0xf]  ;;  %v4449_v32 = vld [vmem:[#allocation8 + $0x130] sm:$0xf0] }
 0x1d5   : > { %v619_v44 = vpop.f32.mrf.mxu0  ;;  %1681 = vmatpush.bf16.msra.mxu2 %v4512_v34  ;;  %v4520_v38 = vor.u32 %v4621_v36, %v4519_v35  ;;  %v4452_v34 = vor.u32 %v4600_v31, %v4449_v32  ;;  %v4609_v35 = vld [vmem:[#allocation8 + $0x15c] sm:$0xf] }
 0x1d6   : > { %v620_v45 = vadd.f32 %v5226_v43, %v619_v44  ;;  %v700_v58 = vmax.f32 %v665_v50, 0.0  ;;  %v4489_v36 = vld [vmem:[#allocation8 + $0x178] sm:$0xf0] }
 0x1d7   : > { %1859 = vmatpush.bf16.msra.mxu0 %v4520_v38  ;;  %1771 = vmatpush.bf16.msra.mxu3 %v4484_v55  ;;  %v5345_v38 = vor.u32 %v4609_v35, %v4489_v36  ;;  %v4604_v55 = vld [vmem:[#allocation8 + $0x12c] sm:$0xf0] }
 0x1d8   : > { %v685_v49 = vmax.f32 %v620_v45, 0.0 }
 0x1da   : > { %v709_v54 = vpack.c.bf16 %v685_v49, %v684_v48 }
 0x1db   : > { %v667_v57 = vpop.f32.mrf.mxu3  ;;  %1772 = vmatpush.bf16.msra.mxu3 %v4452_v34 }
 0x1dc   : > { %4292 = vmatmul.msk.bf16.gmra.mxu1 %vm754_vm1, %v709_v54  ;;  %v668_v59 = vadd.f32 %v5226_v43, %v667_v57  ;;  %v4617_v57 = vld [vmem:[#allocation8 + $0x19c] sm:$0xf] }
 0x1dd   : > { %v622_v61 = vpop.f32.mrf.mxu0 }
 0x1de   : > { %v701_v60 = vmax.f32 %v668_v59, 0.0  ;;  %v623_v63 = vadd.f32 %v5226_v43, %v622_v61 }
 0x1e0   : > { %v717_v62 = vpack.c.bf16 %v701_v60, %v700_v58  ;;  %v686_v1 = vmax.f32 %v623_v63, 0.0  ;;  %v4521_v58 = vld [vmem:[#allocation8 + $0x1b8] sm:$0xf0] }
 0x1e1   : > { %v5318_v60 = vor.u32 %v4617_v57, %v4521_v58 }
 0x1e2   : > { %4300 = vmatmul.msk.bf16.gmra.mxu2 %vm754_vm1, %v717_v62  ;;  %v710_v6 = vpack.c.bf16 %v687_v2, %v686_v1 }
 0x1e3   : > { %1948 = vmatpush.bf16.msra.mxu1 %v5318_v60 }
 0x1e7   : > { %1949 = vmatpush.bf16.msra.mxu1 %v5345_v38 }
 0x1e9   : > { %v812_v3 = vpop.f32.mrf.mxu1 }
 0x1ea   : > { %v813_v43 = vadd.f32 %v5283_v8, %v812_v3 }
 0x1ec   : > { %4293 = vmatmul.msk.bf16.gmra.mxu1 %vm754_vm1, %v710_v6  ;;  %v892_v13 = vmax.f32 %v813_v43, 0.0 }
 0x1f1   : > { %v814_v56 = vpop.f32.mrf.mxu1 }
 0x1f2   : > { %v815_v12 = vadd.f32 %v5283_v8, %v814_v56  ;;  %v4480_v56 = vor.u32 %v4612_v11, %v4479_v10 }
 0x1f4   : > { %v893_v14 = vmax.f32 %v815_v12, 0.0  ;;  %1682 = vmatpush.bf16.msra.mxu2 %v4480_v56  ;;  %v4487_v12 = vld [vmem:[#allocation8 + $0x158] sm:$0xf] }
 0x1f6   : > { %v5288_v15 = vpack.c.bf16 %v893_v14, %v892_v13  ;;  %v4613_v13 = vld [vmem:[#allocation8 + $0x174] sm:$0xf0] }
 0x1f8   : > { %1332 = vmatmul.bf16.vlgmr.msrb.gmra.mxu2 %v5288_v15  ;;  %1421 = vmatmul.bf16.vlgmr.msrb.gmra.mxu3 %v5288_v15 }
 0x1f9   : > { %1510 = vmatmul.bf16.vlgmr.msrb.gmra.mxu0 %v5288_v15  ;;  %v817_v16 = vpop.f32.mrf.mxu1 }
 0x1fa   : > { %v818_v23 = vadd.f32 %v5283_v8, %v817_v16  ;;  %v4488_v16 = vor.u32 %v4613_v13, %v4487_v12 }
 0x1fc   : > { %1599 = vmatmul.bf16.vlgmr.msrb.gmra.mxu1 %v5288_v15  ;;  %v894_v26 = vmax.f32 %v818_v23, 0.0  ;;  %1860 = vmatpush.bf16.msra.mxu0 %v4488_v16  ;;  %v4417_v16 = vld [vmem:[#allocation8 + $0xf0] sm:$0xf0] }
 0x201   : > { %v819_v24 = vpop.f32.mrf.mxu1 }
 0x202   : > { %v820_v25 = vadd.f32 %v5283_v8, %v819_v24 }
 0x204   : > { %v895_v27 = vmax.f32 %v820_v25, 0.0 }
 0x205   : > { %v857_v28 = vpop.f32.mrf.mxu2 }
 0x206   : > { %v5299_v29 = vpack.c.bf16 %v895_v27, %v894_v26  ;;  %v858_v33 = vadd.f32 %v5283_v8, %v857_v28 }
 0x208   : > { %1337 = vmatmul.bf16.gmra.mxu2 %v5299_v29  ;;  %1426 = vmatmul.bf16.gmra.mxu3 %v5299_v29  ;;  %v910_v39 = vmax.f32 %v858_v33, 0.0 }
 0x209   : > { %1515 = vmatmul.bf16.gmra.mxu0 %v5299_v29  ;;  %v822_v30 = vpop.f32.mrf.mxu1 }
 0x20a   : > { %v823_v41 = vadd.f32 %v5283_v8, %v822_v30 }
 0x20c   : > { %1604 = vmatmul.bf16.gmra.mxu1 %v5299_v29  ;;  %v896_v47 = vmax.f32 %v823_v41, 0.0 }
 0x20d   : > { %v859_v37 = vpop.f32.mrf.mxu2 }
 0x20e   : > { %v860_v40 = vadd.f32 %v5283_v8, %v859_v37 }
 0x210   : > { %v911_v42 = vmax.f32 %v860_v40, 0.0 }
 0x211   : > { %v824_v44 = vpop.f32.mrf.mxu1 }
 0x212   : > { %v825_v45 = vadd.f32 %v5283_v8, %v824_v44  ;;  %v5309_v46 = vpack.c.bf16 %v911_v42, %v910_v39 }
 0x214   : > { %v897_v48 = vmax.f32 %v825_v45, 0.0 }
 0x215   : > { %v862_v49 = vpop.f32.mrf.mxu2 }
 0x216   : > { %v5311_v50 = vpack.c.bf16 %v897_v48, %v896_v47  ;;  %v863_v54 = vadd.f32 %v5283_v8, %v862_v49 }
 0x218   : > { %1342 = vmatmul.bf16.gmra.mxu2 %v5311_v50  ;;  %1431 = vmatmul.bf16.gmra.mxu3 %v5311_v50  ;;  %v912_v61 = vmax.f32 %v863_v54, 0.0  ;;  %v4447_v54 = vld [vmem:[#allocation8 + $0x110] sm:$0xf] }
 0x219   : > { %1520 = vmatmul.bf16.gmra.mxu0 %v5311_v50  ;;  %v827_v51 = vpop.f32.mrf.mxu1  ;;  %v4448_v58 = vor.u32 %v4604_v55, %v4447_v54 }
 0x21a   : > { %v828_v63 = vadd.f32 %v5283_v8, %v827_v51 }
 0x21b   : > { %1683 = vmatpush.bf16.msra.mxu2 %v4448_v58 }
 0x21c   : > { %1609 = vmatmul.bf16.gmra.mxu1 %v5311_v50  ;;  %v898_v4 = vmax.f32 %v828_v63, 0.0 }
 0x21d   : > { %v864_v59 = vpop.f32.mrf.mxu2 }
 0x21e   : > { %v865_v62 = vadd.f32 %v5283_v8, %v864_v59  ;;  %v4455_v59 = vld [vmem:[#allocation8 + $0x118] sm:$0xf] }
 0x220   : > { %v913_v0 = vmax.f32 %v865_v62, 0.0 }
 0x221   : > { %v829_v1 = vpop.f32.mrf.mxu1 }
 0x222   : > { %v830_v2 = vadd.f32 %v5283_v8, %v829_v1  ;;  %v5324_v3 = vpack.c.bf16 %v913_v0, %v912_v61  ;;  %v4605_v61 = vld [vmem:[#allocation8 + $0x134] sm:$0xf0] }
 0x223   : > { %v4456_v63 = vor.u32 %v4605_v61, %v4455_v59 }
 0x224   : > { %v899_v5 = vmax.f32 %v830_v2, 0.0 }
 0x225   : > { %v867_v6 = vpop.f32.mrf.mxu2  ;;  %1861 = vmatpush.bf16.msra.mxu0 %v4456_v63  ;;  %v4423_v63 = vld [vmem:[#allocation8 + $0xd8] sm:$0xf] }
 0x226   : > { %v5326_v7 = vpack.c.bf16 %v899_v5, %v898_v4  ;;  %v868_v43 = vadd.f32 %v5283_v8, %v867_v6  ;;  %v2164_v5 = vld [vmem:[#allocation10] sm:$0xff] }
 0x227   : > { %2166 = vst [vmem:[#allocation1] ss:$9 sm:$0xff] %v2164_v5 }
 0x228   : > { %1347 = vmatmul.bf16.gmra.mxu2 %v5326_v7  ;;  %1436 = vmatmul.bf16.gmra.mxu3 %v5326_v7  ;;  %v914_v17 = vmax.f32 %v868_v43, 0.0 }
 0x229   : > { %1525 = vmatmul.bf16.gmra.mxu0 %v5326_v7  ;;  %v832_v9 = vpop.f32.mrf.mxu1 }
 0x22a   : > { %v833_v19 = vadd.f32 %v5283_v8, %v832_v9 }
 0x22c   : > { %1614 = vmatmul.bf16.gmra.mxu1 %v5326_v7  ;;  %v900_v25 = vmax.f32 %v833_v19, 0.0 }
 0x22d   : > { %v869_v14 = vpop.f32.mrf.mxu2 }
 0x22e   : > { %v870_v18 = vadd.f32 %v5283_v8, %v869_v14  ;;  %v4592_v14 = vld [vmem:[#allocation8 + $0xd4] sm:$0xf]  ;;  %v2169_v58 = vld [vmem:[#allocation1 + $0x12] sm:$0xff]  ;;  %v2170_v59 = vld [vmem:[#allocation1 + $0x1b] sm:$0xff] }
 0x22f   : > { %v2181_v5 = vpack.i.b16 %v2169_v58, %v2169_v58 }
 0x230   : > { %v915_v20 = vmax.f32 %v870_v18, 0.0  ;;  %v4420_v18 = vor.u32 %v4592_v14, %v4417_v16 }
 0x231   : > { %v834_v21 = vpop.f32.mrf.mxu1 }
 0x232   : > { %v835_v23 = vadd.f32 %v5283_v8, %v834_v21  ;;  %v5336_v24 = vpack.c.bf16 %v915_v20, %v914_v17  ;;  %1773 = vmatpush.bf16.msra.mxu3 %v4420_v18 }
 0x234   : > { %v901_v26 = vmax.f32 %v835_v23, 0.0 }
 0x235   : > { %v872_v27 = vpop.f32.mrf.mxu2 }
 0x236   : > { %v5338_v28 = vpack.c.bf16 %v901_v26, %v900_v25  ;;  %v873_v33 = vadd.f32 %v5283_v8, %v872_v27  ;;  %v4601_v26 = vld [vmem:[#allocation8 + $0x11c] sm:$0xf] }
 0x237   : > { %v4457_v27 = vld [vmem:[#allocation8 + $0x138] sm:$0xf0] }
 0x238   : > { %1352 = vmatmul.bf16.gmra.mxu2 %v5338_v28  ;;  %1441 = vmatmul.bf16.gmra.mxu3 %v5338_v28  ;;  %v916_v39 = vmax.f32 %v873_v33, 0.0  ;;  %v5374_v31 = vor.u32 %v4601_v26, %v4457_v27 }
 0x239   : > { %1530 = vmatmul.bf16.gmra.mxu0 %v5338_v28  ;;  %v837_v30 = vpop.f32.mrf.mxu1 }
 0x23a   : > { %v838_v41 = vadd.f32 %v5283_v8, %v837_v30  ;;  %1950 = vmatpush.bf16.msra.mxu1 %v5374_v31 }
 0x23c   : > { %1619 = vmatmul.bf16.gmra.mxu1 %v5338_v28  ;;  %v902_v48 = vmax.f32 %v838_v41, 0.0 }
 0x23d   : > { %v874_v37 = vpop.f32.mrf.mxu2 }
 0x23e   : > { %v875_v40 = vadd.f32 %v5283_v8, %v874_v37 }
 0x240   : > { %v917_v42 = vmax.f32 %v875_v40, 0.0 }
 0x241   : > { %v839_v44 = vpop.f32.mrf.mxu1 }
 0x242   : > { %v840_v45 = vadd.f32 %v5283_v8, %v839_v44  ;;  %v5351_v47 = vpack.c.bf16 %v917_v42, %v916_v39 }
 0x244   : > { %v903_v49 = vmax.f32 %v840_v45, 0.0 }
 0x245   : > { %v877_v51 = vpop.f32.mrf.mxu2 }
 0x246   : > { %v5353_v52 = vpack.c.bf16 %v903_v49, %v902_v48  ;;  %v878_v57 = vadd.f32 %v5283_v8, %v877_v51  ;;  %v4415_v51 = vld [vmem:[#allocation8 + $0xd0] sm:$0xf] }
 0x248   : > { %1357 = vmatmul.bf16.gmra.mxu2 %v5353_v52  ;;  %1446 = vmatmul.bf16.gmra.mxu3 %v5353_v52  ;;  %v918_v0 = vmax.f32 %v878_v57, 0.0 }
 0x249   : > { %1535 = vmatmul.bf16.gmra.mxu0 %v5353_v52  ;;  %v842_v53 = vpop.f32.mrf.mxu1 }
 0x24a   : > { %v843_v2 = vadd.f32 %v5283_v8, %v842_v53  ;;  %v4596_v53 = vld [vmem:[#allocation8 + $0xec] sm:$0xf0] }
 0x24b   : > { %v4416_v57 = vor.u32 %v4596_v53, %v4415_v51  ;;  %v4593_v53 = vld [vmem:[#allocation8 + $0xdc] sm:$0xf] }
 0x24c   : > { %1624 = vmatmul.bf16.gmra.mxu1 %v5353_v52  ;;  %v904_v11 = vmax.f32 %v843_v2, 0.0 }
 0x24d   : > { %v879_v62 = vpop.f32.mrf.mxu2  ;;  %1684 = vmatpush.bf16.msra.mxu2 %v4416_v57 }
 0x24e   : > { %v880_v1 = vadd.f32 %v5283_v8, %v879_v62 }
 0x250   : > { %v919_v4 = vmax.f32 %v880_v1, 0.0 }
 0x251   : > { %v844_v6 = vpop.f32.mrf.mxu1 }
 0x252   : > { %v845_v9 = vadd.f32 %v5283_v8, %v844_v6  ;;  %v5363_v10 = vpack.c.bf16 %v919_v4, %v918_v0  ;;  %v4597_v0 = vld [vmem:[#allocation8 + $0xf4] sm:$0xf0]  ;;  %v2184_v6 = vpack.i.b16 %v2170_v59, %v2170_v59 }
 0x253   : > { %v4424_v1 = vor.u32 %v4597_v0, %v4423_v63 }
 0x254   : > { %v905_v43 = vmax.f32 %v845_v9, 0.0  ;;  %v2167_v9 = vld [vmem:[#allocation1] sm:$0xff]  ;;  %v2186_v16 = vperm.slane %v2184_v6, 0 }
 0x255   : > { %v882_v56 = vpop.f32.mrf.mxu2  ;;  %1862 = vmatpush.bf16.msra.mxu0 %v4424_v1 }
 0x256   : > { %v5365_v12 = vpack.c.bf16 %v905_v43, %v904_v11  ;;  %v883_v17 = vadd.f32 %v5283_v8, %v882_v56  ;;  %v2168_v11 = vld [vmem:[#allocation1 + $0x9] sm:$0xff]  ;;  %v2183_v56 = vperm.slane %v2181_v5, 0 }
 0x257   : > { %v2178_v14 = vpack.i.b16 %v2168_v11, %v2168_v11 }
 0x258   : > { %1362 = vmatmul.bf16.gmra.mxu2 %v5365_v12  ;;  %1451 = vmatmul.bf16.gmra.mxu3 %v5365_v12  ;;  %v920_v20 = vmax.f32 %v883_v17, 0.0 }
 0x259   : > { %1540 = vmatmul.bf16.gmra.mxu0 %v5365_v12  ;;  %v847_v13 = vpop.f32.mrf.mxu1 }
 0x25a   : > { %v848_v23 = vadd.f32 %v5283_v8, %v847_v13  ;;  %v2175_v13 = vpack.i.b16 %v2167_v9, %v2167_v9 }
 0x25c   : > { %1629 = vmatmul.bf16.gmra.mxu1 %v5365_v12  ;;  %v906_v34 = vmax.f32 %v848_v23, 0.0  ;;  %v2177_v23 = vperm.slane %v2175_v13, 0 }
 0x25d   : > { %v884_v19 = vpop.f32.mrf.mxu2 }
 0x25e   : > { %v885_v21 = vadd.f32 %v5283_v8, %v884_v19 }
 0x260   : > { %v921_v25 = vmax.f32 %v885_v21, 0.0  ;;  %v5398_v21 = vunpack.c.l.bf16 %v2183_v56 }
 0x261   : > { %v849_v30 = vpop.f32.mrf.mxu1 }
 0x262   : > { %v850_v32 = vadd.f32 %v5283_v8, %v849_v30  ;;  %v5377_v33 = vpack.c.bf16 %v921_v25, %v920_v20  ;;  %v2180_v25 = vperm.slane %v2178_v14, 0  ;;  %v5400_v30 = vunpack.c.l.bf16 %v2186_v16 }
 0x264   : > { %v907_v35 = vmax.f32 %v850_v32, 0.0 }
 0x265   : > { %v887_v36 = vpop.f32.mrf.mxu2 }
 0x266   : > { %v5380_v37 = vpack.c.bf16 %v907_v35, %v906_v34  ;;  %v888_v40 = vadd.f32 %v5283_v8, %v887_v36  ;;  %v5403_v35 = vunpack.c.l.bf16 %v2177_v23  ;;  %v5405_v36 = vunpack.c.l.bf16 %v2180_v25 }
 0x268   : > { %1367 = vmatmul.bf16.gmra.mxu2 %v5380_v37  ;;  %1456 = vmatmul.bf16.gmra.mxu3 %v5380_v37  ;;  %v922_v42 = vmax.f32 %v888_v40, 0.0  ;;  %v4584_v40 = vld [vmem:[#allocation8 + $0x94] sm:$0xf] }
 0x269   : > { %1545 = vmatmul.bf16.gmra.mxu0 %v5380_v37  ;;  %v852_v39 = vpop.f32.mrf.mxu1 }
 0x26a   : > { %v853_v45 = vadd.f32 %v5283_v8, %v852_v39 }
 0x26c   : > { %1634 = vmatmul.bf16.gmra.mxu1 %v5380_v37  ;;  %v908_v61 = vmax.f32 %v853_v45, 0.0 }
 0x26d   : > { %v889_v41 = vpop.f32.mrf.mxu2 }
 0x26e   : > { %v890_v44 = vadd.f32 %v5283_v8, %v889_v41  ;;  %v4385_v41 = vld [vmem:[#allocation8 + $0xb0] sm:$0xf0] }
 0x26f   : > { %v4388_v51 = vor.u32 %v4584_v40, %v4385_v41 }
 0x270   : > { %v923_v48 = vmax.f32 %v890_v44, 0.0 }
 0x271   : > { %v854_v49 = vpop.f32.mrf.mxu1  ;;  %1774 = vmatpush.bf16.msra.mxu3 %v4388_v51  ;;  %v4383_v51 = vld [vmem:[#allocation8 + $0x90] sm:$0xf] }
 0x272   : > { %v855_v54 = vadd.f32 %v5283_v8, %v854_v49  ;;  %v5390_v55 = vpack.c.bf16 %v923_v48, %v922_v42 }
 0x274   : > { %v909_v62 = vmax.f32 %v855_v54, 0.0  ;;  %v4425_v54 = vld [vmem:[#allocation8 + $0xf8] sm:$0xf0] }
 0x276   : > { %v5392_v2 = vpack.c.bf16 %v909_v62, %v908_v61  ;;  %v1511_v4 = vpop.f32.mrf.mxu0  ;;  %v5408_v61 = vor.u32 %v4593_v53, %v4425_v54  ;;  %v4588_v53 = vld [vmem:[#allocation8 + $0xac] sm:$0xf0] }
 0x278   : > { %1372 = vmatmul.bf16.gmra.mxu2 %v5392_v2  ;;  %1461 = vmatmul.bf16.gmra.mxu3 %v5392_v2 }
 0x279   : > { %1550 = vmatmul.bf16.gmra.mxu0 %v5392_v2  ;;  %v1600_v8 = vpop.f32.mrf.mxu1  ;;  %1951 = vmatpush.bf16.msra.mxu1 %v5408_v61 }
 0x27a   : > { %v2037_v43 = vpack.c.bf16 %v1600_v8, %v1511_v4 }
 0x27b   : > { %v1333_v17 = vpop.f32.mrf.mxu2  ;;  %v1422_v18 = vpop.f32.mrf.mxu3 }
 0x27c   : > { %v2036_v19 = vpack.c.bf16 %v1422_v18, %v1333_v17  ;;  %1639 = vmatmul.bf16.gmra.mxu1 %v5392_v2  ;;  %v2201_v20 = vunpack.c.l.bf16 %v2037_v43  ;;  %v2202_v27 = vunpack.c.h.bf16 %v2037_v43 }
 0x27e   : > { %v1513_v26 = vpop.f32.mrf.mxu0  ;;  %v2465_v34 = vadd.f32 %v5398_v21, %v2201_v20  ;;  %v2466_v42 = vadd.f32 %v5400_v30, %v2202_v27  ;;  %v2199_v44 = vunpack.c.l.bf16 %v2036_v19  ;;  %v2200_v45 = vunpack.c.h.bf16 %v2036_v19 }
 0x280   : > { %v3105_v5 = vmax.f32 %v2465_v34, 0.0  ;;  %v3106_v6 = vmax.f32 %v2466_v42, 0.0  ;;  %v2463_v9 = vadd.f32 %v5403_v35, %v2199_v44  ;;  %v2464_v11 = vadd.f32 %v5405_v36, %v2200_v45 }
 0x281   : > { %v1602_v32 = vpop.f32.mrf.mxu1 }
 0x282   : > { %v2041_v39 = vpack.c.bf16 %v1602_v32, %v1513_v26  ;;  %v3103_v20 = vmax.f32 %v2463_v9, 0.0  ;;  %v3104_v23 = vmax.f32 %v2464_v11, 0.0 }
 0x283   : > { %v1335_v48 = vpop.f32.mrf.mxu2  ;;  %v1424_v49 = vpop.f32.mrf.mxu3 }
 0x284   : > { %v2209_v57 = vunpack.c.l.bf16 %v2041_v39  ;;  %v2210_v58 = vunpack.c.h.bf16 %v2041_v39  ;;  %v2040_v59 = vpack.c.bf16 %v1424_v49, %v1335_v48 }
 0x286   : > { %v2473_v62 = vadd.f32 %v5398_v21, %v2209_v57  ;;  %v2474_v63 = vadd.f32 %v5400_v30, %v2210_v58  ;;  %v2207_v0 = vunpack.c.l.bf16 %v2040_v59  ;;  %v2208_v1 = vunpack.c.h.bf16 %v2040_v59  ;;  %v1516_v4 = vpop.f32.mrf.mxu0 }
 0x288   : > { %v3113_v8 = vmax.f32 %v2473_v62, 0.0  ;;  %v3114_v43 = vmax.f32 %v2474_v63, 0.0  ;;  %v2471_v56 = vadd.f32 %v5403_v35, %v2207_v0  ;;  %v2472_v13 = vadd.f32 %v5405_v36, %v2208_v1  ;;  %1377 = vmatmul.bf16.gmra.mxu2 %v5309_v46  ;;  %1466 = vmatmul.bf16.gmra.mxu3 %v5309_v46 }
 0x289   : > { %1555 = vmatmul.bf16.gmra.mxu0 %v5309_v46  ;;  %v1605_v14 = vpop.f32.mrf.mxu1  ;;  %v4384_v63 = vor.u32 %v4588_v53, %v4383_v51 }
 0x28a   : > { %v5420_v16 = vpack.c.bf16 %v3113_v8, %v3105_v5  ;;  %v5422_v17 = vpack.c.bf16 %v3114_v43, %v3106_v6  ;;  %v3111_v18 = vmax.f32 %v2471_v56, 0.0  ;;  %v3112_v19 = vmax.f32 %v2472_v13, 0.0 }
 0x28b   : > { %v2045_v25 = vpack.c.bf16 %v1605_v14, %v1516_v4  ;;  %v1338_v26 = vpop.f32.mrf.mxu2  ;;  %v1427_v27 = vpop.f32.mrf.mxu3  ;;  %1685 = vmatpush.bf16.msra.mxu2 %v4384_v63 }
 0x28c   : > { %1644 = vmatmul.bf16.gmra.mxu1 %v5309_v46  ;;  %v5425_v32 = vpack.c.bf16 %v3111_v18, %v3103_v20  ;;  %v5427_v34 = vpack.c.bf16 %v3112_v19, %v3104_v23  ;;  %v2044_v39 = vpack.c.bf16 %v1427_v27, %v1338_v26  ;;  %v3489_v48 = vunpack.c.l.bf16 %v5420_v16  ;;  %v4589_v18 = vld [vmem:[#allocation8 + $0xb4] sm:$0xf0] }
 0x28d   : > { %v2217_v41 = vunpack.c.l.bf16 %v2045_v25  ;;  %v2218_v42 = vunpack.c.h.bf16 %v2045_v25  ;;  %v3490_v54 = vunpack.c.l.bf16 %v5422_v17  ;;  %v3497_v57 = vunpack.c.h.bf16 %v5420_v16 }
 0x28e   : > { %v1518_v40 = vpop.f32.mrf.mxu0  ;;  %v2215_v44 = vunpack.c.l.bf16 %v2044_v39  ;;  %v2216_v49 = vunpack.c.h.bf16 %v2044_v39  ;;  %v3498_v0 = vunpack.c.h.bf16 %v5422_v17  ;;  %v3487_v1 = vunpack.c.l.bf16 %v5425_v32  ;;  %v4391_v17 = vld [vmem:[#allocation8 + $0x98] sm:$0xf] }
 0x28f   : > { %v2481_v4 = vadd.f32 %v5398_v21, %v2217_v41  ;;  %v2482_v6 = vadd.f32 %v5400_v30, %v2218_v42  ;;  %v3488_v43 = vunpack.c.l.bf16 %v5427_v34  ;;  %v3495_v19 = vunpack.c.h.bf16 %v5425_v32 }
 0x290   : > { %v2479_v9 = vadd.f32 %v5403_v35, %v2215_v44  ;;  %v2480_v56 = vadd.f32 %v5405_v36, %v2216_v49  ;;  %v4392_v25 = vor.u32 %v4589_v18, %v4391_v17  ;;  %v3496_v26 = vunpack.c.h.bf16 %v5427_v34 }
 0x291   : > { %v1607_v45 = vpop.f32.mrf.mxu1  ;;  %v3121_v27 = vmax.f32 %v2481_v4, 0.0  ;;  %v3122_v41 = vmax.f32 %v2482_v6, 0.0  ;;  %v3817_v4 = vmax.f32 %v3489_v48, %v3497_v57  ;;  %v3743_v6 = vmax.f32 %v3487_v1, %v3495_v19 }
 0x292   : > { %v2049_v58 = vpack.c.bf16 %v1607_v45, %v1518_v40  ;;  %v3119_v42 = vmax.f32 %v2479_v9, 0.0  ;;  %v3120_v49 = vmax.f32 %v2480_v56, 0.0  ;;  %1863 = vmatpush.bf16.msra.mxu0 %v4392_v25  ;;  %v3780_v9 = vmax.f32 %v3488_v43, %v3496_v26 }
 0x293   : > { %v1340_v59 = vpop.f32.mrf.mxu2  ;;  %v1429_v62 = vpop.f32.mrf.mxu3 }
 0x294   : > { %v2048_v5 = vpack.c.bf16 %v1429_v62, %v1340_v59  ;;  %v2225_v11 = vunpack.c.l.bf16 %v2049_v58  ;;  %v2226_v8 = vunpack.c.h.bf16 %v2049_v58 }
 0x296   : > { %v2223_v13 = vunpack.c.l.bf16 %v2048_v5  ;;  %v2224_v14 = vunpack.c.h.bf16 %v2048_v5  ;;  %v1521_v16 = vpop.f32.mrf.mxu0  ;;  %v2489_v20 = vadd.f32 %v5398_v21, %v2225_v11  ;;  %v2490_v23 = vadd.f32 %v5400_v30, %v2226_v8 }
 0x297   : > { %v3854_v5 = vmax.f32 %v3490_v54, %v3498_v0 }
 0x298   : > { %v2487_v39 = vadd.f32 %v5403_v35, %v2223_v13  ;;  %v2488_v40 = vadd.f32 %v5405_v36, %v2224_v14  ;;  %1382 = vmatmul.bf16.gmra.mxu2 %v5324_v3  ;;  %1471 = vmatmul.bf16.gmra.mxu3 %v5324_v3  ;;  %v3129_v44 = vmax.f32 %v2489_v20, 0.0  ;;  %v3130_v32 = vmax.f32 %v2490_v23, 0.0 }
 0x299   : > { %1560 = vmatmul.bf16.gmra.mxu0 %v5324_v3  ;;  %v1610_v45 = vpop.f32.mrf.mxu1 }
 0x29a   : > { %v3127_v51 = vmax.f32 %v2487_v39, 0.0  ;;  %v3128_v53 = vmax.f32 %v2488_v40, 0.0  ;;  %v2053_v34 = vpack.c.bf16 %v1610_v45, %v1521_v16  ;;  %v3369_v58 = vpack.c.bf16 %v3129_v44, %v3121_v27  ;;  %v4353_v45 = vld [vmem:[#allocation8 + $0x70] sm:$0xf0] }
 0x29b   : > { %v3370_v59 = vpack.c.bf16 %v3130_v32, %v3122_v41  ;;  %v1343_v62 = vpop.f32.mrf.mxu2  ;;  %v1432_v63 = vpop.f32.mrf.mxu3  ;;  %v4576_v32 = vld [vmem:[#allocation8 + $0x54] sm:$0xf] }
 0x29c   : > { %v3367_v11 = vpack.c.bf16 %v3127_v51, %v3119_v42  ;;  %v3368_v8 = vpack.c.bf16 %v3128_v53, %v3120_v49  ;;  %1649 = vmatmul.bf16.gmra.mxu1 %v5324_v3  ;;  %v3505_v13 = vunpack.c.l.bf16 %v3369_v58  ;;  %v3513_v17 = vunpack.c.h.bf16 %v3369_v58  ;;  %v4585_v49 = vld [vmem:[#allocation8 + $0x9c] sm:$0xf] }
 0x29d   : > { %v3506_v14 = vunpack.c.l.bf16 %v3370_v59  ;;  %v2233_v20 = vunpack.c.l.bf16 %v2053_v34  ;;  %v3514_v23 = vunpack.c.h.bf16 %v3370_v59  ;;  %v2052_v57 = vpack.c.bf16 %v1432_v63, %v1343_v62 }
 0x29e   : > { %v3503_v56 = vunpack.c.l.bf16 %v3367_v11  ;;  %v3504_v18 = vunpack.c.l.bf16 %v3368_v8  ;;  %v1523_v16 = vpop.f32.mrf.mxu0  ;;  %v3818_v25 = vmax.f32 %v3817_v4, %v3505_v13  ;;  %v3511_v39 = vunpack.c.h.bf16 %v3367_v11  ;;  %v4393_v4 = vld [vmem:[#allocation8 + $0xb8] sm:$0xf0] }
 0x29f   : > { %v3855_v27 = vmax.f32 %v3854_v5, %v3506_v14  ;;  %v3512_v40 = vunpack.c.h.bf16 %v3368_v8  ;;  %v2234_v42 = vunpack.c.h.bf16 %v2053_v34  ;;  %v2231_v26 = vunpack.c.l.bf16 %v2052_v57 }
 0x2a0   : > { %v3744_v48 = vmax.f32 %v3743_v6, %v3503_v56  ;;  %v3781_v54 = vmax.f32 %v3780_v9, %v3504_v18  ;;  %v3819_v0 = vmax.f32 %v3818_v25, %v3513_v17  ;;  %v2232_v44 = vunpack.c.h.bf16 %v2052_v57 }
 0x2a1   : > { %v3856_v41 = vmax.f32 %v3855_v27, %v3514_v23  ;;  %v1612_v1 = vpop.f32.mrf.mxu1  ;;  %v4356_v59 = vor.u32 %v4576_v32, %v4353_v45  ;;  %v2497_v5 = vadd.f32 %v5398_v21, %v2233_v20  ;;  %v5450_v62 = vor.u32 %v4585_v49, %v4393_v4 }
 0x2a2   : > { %v3745_v43 = vmax.f32 %v3744_v48, %v3511_v39  ;;  %v3782_v19 = vmax.f32 %v3781_v54, %v3512_v40  ;;  %v2057_v51 = vpack.c.bf16 %v1612_v1, %v1523_v16  ;;  %v2498_v34 = vadd.f32 %v5400_v30, %v2234_v42 }
 0x2a3   : > { %v1345_v53 = vpop.f32.mrf.mxu2  ;;  %v1434_v58 = vpop.f32.mrf.mxu3  ;;  %v2495_v63 = vadd.f32 %v5403_v35, %v2231_v26  ;;  %1775 = vmatpush.bf16.msra.mxu3 %v4356_v59  ;;  %v2496_v9 = vadd.f32 %v5405_v36, %v2232_v44  ;;  %1952 = vmatpush.bf16.msra.mxu1 %v5450_v62  ;;  %v3137_v20 = vmax.f32 %v2497_v5, 0.0 }
 0x2a4   : > { %v2056_v11 = vpack.c.bf16 %v1434_v58, %v1345_v53  ;;  %v2241_v8 = vunpack.c.l.bf16 %v2057_v51  ;;  %v2242_v6 = vunpack.c.h.bf16 %v2057_v51  ;;  %v3138_v25 = vmax.f32 %v2498_v34, 0.0 }
 0x2a5   : > { %v3135_v27 = vmax.f32 %v2495_v63, 0.0  ;;  %v3136_v54 = vmax.f32 %v2496_v9, 0.0 }
 0x2a6   : > { %v2239_v13 = vunpack.c.l.bf16 %v2056_v11  ;;  %v2240_v14 = vunpack.c.h.bf16 %v2056_v11  ;;  %v1526_v17 = vpop.f32.mrf.mxu0  ;;  %v2505_v56 = vadd.f32 %v5398_v21, %v2241_v8  ;;  %v2506_v18 = vadd.f32 %v5400_v30, %v2242_v6 }
 0x2a8   : > { %v2503_v16 = vadd.f32 %v5403_v35, %v2239_v13  ;;  %v2504_v23 = vadd.f32 %v5405_v36, %v2240_v14  ;;  %1387 = vmatmul.bf16.gmra.mxu2 %v5336_v24  ;;  %1476 = vmatmul.bf16.gmra.mxu3 %v5336_v24  ;;  %v3145_v39 = vmax.f32 %v2505_v56, 0.0  ;;  %v3146_v40 = vmax.f32 %v2506_v18, 0.0 }
 0x2a9   : > { %1565 = vmatmul.bf16.gmra.mxu0 %v5336_v24  ;;  %v1615_v48 = vpop.f32.mrf.mxu1 }
 0x2aa   : > { %v3143_v57 = vmax.f32 %v2503_v16, 0.0  ;;  %v3144_v42 = vmax.f32 %v2504_v23, 0.0  ;;  %v2061_v1 = vpack.c.bf16 %v1615_v48, %v1526_v17  ;;  %v3377_v26 = vpack.c.bf16 %v3145_v39, %v3137_v20  ;;  %v4351_v48 = vld [vmem:[#allocation8 + $0x50] sm:$0xf] }
 0x2ab   : > { %v3378_v44 = vpack.c.bf16 %v3146_v40, %v3138_v25  ;;  %v1348_v32 = vpop.f32.mrf.mxu2  ;;  %v1437_v45 = vpop.f32.mrf.mxu3 }
 0x2ac   : > { %v3375_v49 = vpack.c.bf16 %v3143_v57, %v3135_v27  ;;  %v3376_v51 = vpack.c.bf16 %v3144_v42, %v3136_v54  ;;  %1654 = vmatmul.bf16.gmra.mxu1 %v5336_v24  ;;  %v3521_v53 = vunpack.c.l.bf16 %v3377_v26  ;;  %v3529_v59 = vunpack.c.h.bf16 %v3377_v26  ;;  %v4580_v54 = vld [vmem:[#allocation8 + $0x6c] sm:$0xf0] }
 0x2ad   : > { %v3522_v58 = vunpack.c.l.bf16 %v3378_v44  ;;  %v2249_v11 = vunpack.c.l.bf16 %v2061_v1  ;;  %v3530_v63 = vunpack.c.h.bf16 %v3378_v44  ;;  %v2060_v56 = vpack.c.bf16 %v1437_v45, %v1348_v32 }
 0x2ae   : > { %v3519_v4 = vunpack.c.l.bf16 %v3375_v49  ;;  %v3520_v5 = vunpack.c.l.bf16 %v3376_v51  ;;  %v1528_v34 = vpop.f32.mrf.mxu0  ;;  %v3820_v8 = vmax.f32 %v3819_v0, %v3521_v53  ;;  %v3527_v9 = vunpack.c.h.bf16 %v3375_v49 }
 0x2af   : > { %v3857_v6 = vmax.f32 %v3856_v41, %v3522_v58  ;;  %v3528_v13 = vunpack.c.h.bf16 %v3376_v51  ;;  %v2250_v16 = vunpack.c.h.bf16 %v2061_v1  ;;  %v2247_v39 = vunpack.c.l.bf16 %v2060_v56  ;;  %v4359_v58 = vld [vmem:[#allocation8 + $0x58] sm:$0xf] }
 0x2b0   : > { %v3746_v14 = vmax.f32 %v3745_v43, %v3519_v4  ;;  %v3783_v17 = vmax.f32 %v3782_v19, %v3520_v5  ;;  %v3821_v18 = vmax.f32 %v3820_v8, %v3529_v59  ;;  %v2248_v40 = vunpack.c.h.bf16 %v2060_v56  ;;  %v4581_v59 = vld [vmem:[#allocation8 + $0x74] sm:$0xf0] }
 0x2b1   : > { %v3858_v20 = vmax.f32 %v3857_v6, %v3530_v63  ;;  %v1617_v23 = vpop.f32.mrf.mxu1  ;;  %v4352_v0 = vor.u32 %v4580_v54, %v4351_v48  ;;  %v2513_v41 = vadd.f32 %v5398_v21, %v2249_v11  ;;  %v2514_v43 = vadd.f32 %v5400_v30, %v2250_v16 }
 0x2b2   : > { %v3747_v25 = vmax.f32 %v3746_v14, %v3527_v9  ;;  %v3784_v27 = vmax.f32 %v3783_v17, %v3528_v13  ;;  %v2065_v57 = vpack.c.bf16 %v1617_v23, %v1528_v34  ;;  %v2511_v19 = vadd.f32 %v5403_v35, %v2247_v39 }
 0x2b3   : > { %v1350_v42 = vpop.f32.mrf.mxu2  ;;  %v1439_v26 = vpop.f32.mrf.mxu3  ;;  %1686 = vmatpush.bf16.msra.mxu2 %v4352_v0  ;;  %v2512_v45 = vadd.f32 %v5405_v36, %v2248_v40  ;;  %v4360_v11 = vor.u32 %v4581_v59, %v4359_v58  ;;  %v3153_v34 = vmax.f32 %v2513_v41, 0.0  ;;  %v3154_v6 = vmax.f32 %v2514_v43, 0.0 }
 0x2b4   : > { %v2064_v44 = vpack.c.bf16 %v1439_v26, %v1350_v42  ;;  %v2257_v32 = vunpack.c.l.bf16 %v2065_v57  ;;  %v2258_v1 = vunpack.c.h.bf16 %v2065_v57  ;;  %v3151_v9 = vmax.f32 %v2511_v19, 0.0 }
 0x2b5   : > { %v3152_v56 = vmax.f32 %v2512_v45, 0.0  ;;  %1864 = vmatpush.bf16.msra.mxu0 %v4360_v11 }
 0x2b6   : > { %v2255_v49 = vunpack.c.l.bf16 %v2064_v44  ;;  %v2256_v51 = vunpack.c.h.bf16 %v2064_v44  ;;  %v1531_v53 = vpop.f32.mrf.mxu0  ;;  %v2521_v4 = vadd.f32 %v5398_v21, %v2257_v32  ;;  %v2522_v5 = vadd.f32 %v5400_v30, %v2258_v1 }
 0x2b8   : > { %v2519_v63 = vadd.f32 %v5403_v35, %v2255_v49  ;;  %v2520_v8 = vadd.f32 %v5405_v36, %v2256_v51  ;;  %1392 = vmatmul.bf16.gmra.mxu2 %v5351_v47  ;;  %1481 = vmatmul.bf16.gmra.mxu3 %v5351_v47  ;;  %v3161_v13 = vmax.f32 %v2521_v4, 0.0  ;;  %v3162_v14 = vmax.f32 %v2522_v5, 0.0 }
 0x2b9   : > { %1570 = vmatmul.bf16.gmra.mxu0 %v5351_v47  ;;  %v1620_v17 = vpop.f32.mrf.mxu1 }
 0x2ba   : > { %v3159_v16 = vmax.f32 %v2519_v63, 0.0  ;;  %v3160_v23 = vmax.f32 %v2520_v8, 0.0  ;;  %v2069_v39 = vpack.c.bf16 %v1620_v17, %v1531_v53  ;;  %v3385_v40 = vpack.c.bf16 %v3161_v13, %v3153_v34  ;;  %v4568_v17 = vld [vmem:[#allocation8 + $0x14] sm:$0xf] }
 0x2bb   : > { %v3386_v48 = vpack.c.bf16 %v3162_v14, %v3154_v6  ;;  %v1353_v54 = vpop.f32.mrf.mxu2  ;;  %v1442_v57 = vpop.f32.mrf.mxu3 }
 0x2bc   : > { %v3383_v42 = vpack.c.bf16 %v3159_v16, %v3151_v9  ;;  %v3384_v26 = vpack.c.bf16 %v3160_v23, %v3152_v56  ;;  %1659 = vmatmul.bf16.gmra.mxu1 %v5351_v47  ;;  %v3537_v0 = vunpack.c.l.bf16 %v3385_v40  ;;  %v3545_v44 = vunpack.c.h.bf16 %v3385_v40  ;;  %v4361_v23 = vld [vmem:[#allocation8 + $0x78] sm:$0xf0] }
 0x2bd   : > { %v3538_v41 = vunpack.c.l.bf16 %v3386_v48  ;;  %v2265_v32 = vunpack.c.l.bf16 %v2069_v39  ;;  %v3546_v45 = vunpack.c.h.bf16 %v3386_v48  ;;  %v2068_v5 = vpack.c.bf16 %v1442_v57, %v1353_v54 }
 0x2be   : > { %v3535_v43 = vunpack.c.l.bf16 %v3383_v42  ;;  %v3536_v19 = vunpack.c.l.bf16 %v3384_v26  ;;  %v1533_v1 = vpop.f32.mrf.mxu0  ;;  %v3822_v49 = vmax.f32 %v3821_v18, %v3537_v0  ;;  %v3543_v53 = vunpack.c.h.bf16 %v3383_v42  ;;  %v4321_v18 = vld [vmem:[#allocation8 + $0x30] sm:$0xf0] }
 0x2bf   : > { %v3859_v51 = vmax.f32 %v3858_v20, %v3538_v41  ;;  %v3544_v58 = vunpack.c.h.bf16 %v3384_v26  ;;  %v2266_v63 = vunpack.c.h.bf16 %v2069_v39  ;;  %v2263_v13 = vunpack.c.l.bf16 %v2068_v5  ;;  %v4577_v20 = vld [vmem:[#allocation8 + $0x5c] sm:$0xf] }
 0x2c0   : > { %v3748_v59 = vmax.f32 %v3747_v25, %v3535_v43  ;;  %v3785_v4 = vmax.f32 %v3784_v27, %v3536_v19  ;;  %v5476_v11 = vmax.f32 %v3822_v49, %v3545_v44  ;;  %v2264_v14 = vunpack.c.h.bf16 %v2068_v5 }
 0x2c1   : > { %v5478_v34 = vmax.f32 %v3859_v51, %v3546_v45  ;;  %v1622_v8 = vpop.f32.mrf.mxu1  ;;  %v4324_v27 = vor.u32 %v4568_v17, %v4321_v18  ;;  %v2529_v40 = vadd.f32 %v5398_v21, %v2265_v32  ;;  %v5485_v54 = vor.u32 %v4577_v20, %v4361_v23 }
 0x2c2   : > { %v5480_v6 = vmax.f32 %v3748_v59, %v3543_v53  ;;  %v5482_v9 = vmax.f32 %v3785_v4, %v3544_v58  ;;  %v2073_v56 = vpack.c.bf16 %v1622_v8, %v1533_v1  ;;  %v2530_v39 = vadd.f32 %v5400_v30, %v2266_v63 }
 0x2c3   : > { %v1355_v16 = vpop.f32.mrf.mxu2  ;;  %v1444_v25 = vpop.f32.mrf.mxu3  ;;  %v2527_v57 = vadd.f32 %v5403_v35, %v2263_v13  ;;  %1776 = vmatpush.bf16.msra.mxu3 %v4324_v27  ;;  %v2528_v0 = vadd.f32 %v5405_v36, %v2264_v14  ;;  %1953 = vmatpush.bf16.msra.mxu1 %v5485_v54  ;;  %v3169_v1 = vmax.f32 %v2529_v40, 0.0 }
 0x2c4   : > { %v2072_v48 = vpack.c.bf16 %v1444_v25, %v1355_v16  ;;  %v2273_v42 = vunpack.c.l.bf16 %v2073_v56  ;;  %v2274_v26 = vunpack.c.h.bf16 %v2073_v56  ;;  %v3170_v51 = vmax.f32 %v2530_v39, 0.0 }
 0x2c5   : > { %v3167_v53 = vmax.f32 %v2527_v57, 0.0  ;;  %v3168_v4 = vmax.f32 %v2528_v0, 0.0 }
 0x2c6   : > { %v2271_v41 = vunpack.c.l.bf16 %v2072_v48  ;;  %v2272_v44 = vunpack.c.h.bf16 %v2072_v48  ;;  %v1536_v43 = vpop.f32.mrf.mxu0  ;;  %v2537_v19 = vadd.f32 %v5398_v21, %v2273_v42  ;;  %v2538_v32 = vadd.f32 %v5400_v30, %v2274_v26 }
 0x2c7   : > { %4636 = vmatpush.bf16.msrb.mxu3 %v5294_v22 }
 0x2c8   : > { %v2535_v45 = vadd.f32 %v5403_v35, %v2271_v41  ;;  %v2536_v49 = vadd.f32 %v5405_v36, %v2272_v44  ;;  %1397 = vmatmul.bf16.gmra.mxu2 %v5363_v10  ;;  %1486 = vmatmul.bf16.gmra.mxu3 %v5363_v10  ;;  %v3177_v58 = vmax.f32 %v2537_v19, 0.0  ;;  %v3178_v59 = vmax.f32 %v2538_v32, 0.0 }
 0x2c9   : > { %1575 = vmatmul.bf16.gmra.mxu0 %v5363_v10  ;;  %v1625_v22 = vpop.f32.mrf.mxu1 }
 0x2ca   : > { %v3175_v5 = vmax.f32 %v2535_v45, 0.0  ;;  %v3176_v63 = vmax.f32 %v2536_v49, 0.0  ;;  %v2077_v8 = vpack.c.bf16 %v1625_v22, %v1536_v43  ;;  %v3393_v13 = vpack.c.bf16 %v3177_v58, %v3169_v1 }
 0x2cb   : > { %4637 = vmatpush.bf16.msrb.mxu3 %v5318_v60  ;;  %v3394_v14 = vpack.c.bf16 %v3178_v59, %v3170_v51  ;;  %v1358_v17 = vpop.f32.mrf.mxu2  ;;  %v1447_v18 = vpop.f32.mrf.mxu3 }
 0x2cc   : > { %v3391_v20 = vpack.c.bf16 %v3175_v5, %v3167_v53  ;;  %v3392_v56 = vpack.c.bf16 %v3176_v63, %v3168_v4  ;;  %1664 = vmatmul.bf16.gmra.mxu1 %v5363_v10  ;;  %v3553_v16 = vunpack.c.l.bf16 %v3393_v13  ;;  %v2281_v27 = vunpack.c.l.bf16 %v2077_v8  ;;  %v4319_v53 = vld [vmem:[#allocation8 + $0x10] sm:$0xf] }
 0x2cd   : > { %v3554_v25 = vunpack.c.l.bf16 %v3394_v14  ;;  %v3561_v23 = vunpack.c.h.bf16 %v3393_v13  ;;  %v2282_v39 = vunpack.c.h.bf16 %v2077_v8  ;;  %v3562_v42 = vunpack.c.h.bf16 %v3394_v14 }
 0x2ce   : > { %v3551_v40 = vunpack.c.l.bf16 %v3391_v20  ;;  %v3552_v48 = vunpack.c.l.bf16 %v3392_v56  ;;  %v1538_v57 = vpop.f32.mrf.mxu0  ;;  %v3824_v60 = vmax.f32 %v5476_v11, %v3553_v16  ;;  %v3559_v0 = vunpack.c.h.bf16 %v3391_v20 }
 0x2cf   : > { %4638 = vmatpush.bf16.msrb.mxu3 %v5345_v38  ;;  %v3861_v26 = vmax.f32 %v5478_v34, %v3554_v25  ;;  %v3560_v41 = vunpack.c.h.bf16 %v3392_v56  ;;  %v2076_v19 = vpack.c.bf16 %v1447_v18, %v1358_v17  ;;  %v4572_v34 = vld [vmem:[#allocation8 + $0x2c] sm:$0xf0]  ;;  %v2545_v22 = vadd.f32 %v5398_v21, %v2281_v27  ;;  %v4573_v56 = vld [vmem:[#allocation8 + $0x34] sm:$0xf0] }
 0x2d0   : > { %v3750_v44 = vmax.f32 %v5480_v6, %v3551_v40  ;;  %v3787_v43 = vmax.f32 %v5482_v9, %v3552_v48  ;;  %v5506_v32 = vmax.f32 %v3824_v60, %v3561_v23  ;;  %v4320_v9 = vor.u32 %v4572_v34, %v4319_v53 }
 0x2d1   : > { %v5508_v1 = vmax.f32 %v3861_v26, %v3562_v42  ;;  %v1627_v45 = vpop.f32.mrf.mxu1  ;;  %v2279_v51 = vunpack.c.l.bf16 %v2076_v19  ;;  %v2280_v11 = vunpack.c.h.bf16 %v2076_v19  ;;  %v2546_v4 = vadd.f32 %v5400_v30, %v2282_v39  ;;  %v4329_v19 = vld [vmem:[#allocation8 + $0x38] sm:$0xf0] }
 0x2d2   : > { %v5510_v49 = vmax.f32 %v3750_v44, %v3559_v0  ;;  %v5512_v38 = vmax.f32 %v3787_v43, %v3560_v41  ;;  %v2081_v58 = vpack.c.bf16 %v1627_v45, %v1538_v57  ;;  %1687 = vmatpush.bf16.msra.mxu2 %v4320_v9  ;;  %v3185_v23 = vmax.f32 %v2545_v22, 0.0  ;;  %v4569_v43 = vld [vmem:[#allocation8 + $0x1c] sm:$0xf] }
 0x2d3   : > { %4639 = vmatpush.bf16.msrb.mxu3 %v5374_v31  ;;  %v1360_v6 = vpop.f32.mrf.mxu2  ;;  %v1449_v59 = vpop.f32.mrf.mxu3  ;;  %v2543_v63 = vadd.f32 %v5403_v35, %v2279_v51  ;;  %v2544_v8 = vadd.f32 %v5405_v36, %v2280_v11  ;;  %v4327_v31 = vld [vmem:[#allocation8 + $0x18] sm:$0xf]  ;;  %v3186_v40 = vmax.f32 %v2546_v4, 0.0  ;;  %v4332_v34 = vor.u32 %v4569_v43, %v4329_v19 }
 0x2d4   : > { %v2080_v5 = vpack.c.bf16 %v1449_v59, %v1360_v6  ;;  %v2289_v13 = vunpack.c.l.bf16 %v2081_v58  ;;  %v2290_v14 = vunpack.c.h.bf16 %v2081_v58  ;;  %v4328_v27 = vor.u32 %v4573_v56, %v4327_v31 }
 0x2d5   : > { %v3183_v57 = vmax.f32 %v2543_v63, 0.0  ;;  %v3184_v42 = vmax.f32 %v2544_v8, 0.0  ;;  %1954 = vmatpush.bf16.msra.mxu1 %v4332_v34 }
 0x2d6   : > { %v2287_v17 = vunpack.c.l.bf16 %v2080_v5  ;;  %v2288_v18 = vunpack.c.h.bf16 %v2080_v5  ;;  %v1541_v20 = vpop.f32.mrf.mxu0  ;;  %v2553_v16 = vadd.f32 %v5398_v21, %v2289_v13  ;;  %v2554_v25 = vadd.f32 %v5400_v30, %v2290_v14  ;;  %1865 = vmatpush.bf16.msra.mxu0 %v4328_v27 }
 0x2d7   : > { %4640 = vmatpush.bf16.msrb.mxu3 %v5408_v61 }
 0x2d8   : > { %v2551_v48 = vadd.f32 %v5403_v35, %v2287_v17  ;;  %v2552_v39 = vadd.f32 %v5405_v36, %v2288_v18  ;;  %1402 = vmatmul.bf16.gmra.mxu2 %v5377_v33  ;;  %1491 = vmatmul.bf16.gmra.mxu3 %v5377_v33  ;;  %v3193_v60 = vmax.f32 %v2553_v16, 0.0  ;;  %v3194_v26 = vmax.f32 %v2554_v25, 0.0 }
 0x2d9   : > { %1580 = vmatmul.bf16.gmra.mxu0 %v5377_v33  ;;  %v1630_v61 = vpop.f32.mrf.mxu1 }
 0x2da   : > { %v3191_v0 = vmax.f32 %v2551_v48, 0.0  ;;  %v3192_v41 = vmax.f32 %v2552_v39, 0.0  ;;  %v2085_v44 = vpack.c.bf16 %v1630_v61, %v1541_v20  ;;  %v3401_v45 = vpack.c.bf16 %v3193_v60, %v3185_v23 }
 0x2db   : > { %4641 = vmatpush.bf16.msrb.mxu3 %v5450_v62  ;;  %v3402_v51 = vpack.c.bf16 %v3194_v26, %v3186_v40  ;;  %v1363_v11 = vpop.f32.mrf.mxu2  ;;  %v1452_v53 = vpop.f32.mrf.mxu3 }
 0x2dc   : > { %v3399_v58 = vpack.c.bf16 %v3191_v0, %v3183_v57  ;;  %v3400_v6 = vpack.c.bf16 %v3192_v41, %v3184_v42  ;;  %1669 = vmatmul.bf16.gmra.mxu1 %v5377_v33  ;;  %v3569_v59 = vunpack.c.l.bf16 %v3401_v45  ;;  %v3577_v22 = vunpack.c.h.bf16 %v3401_v45 }
 0x2dd   : > { %v3570_v9 = vunpack.c.l.bf16 %v3402_v51  ;;  %v2297_v63 = vunpack.c.l.bf16 %v2085_v44  ;;  %v3578_v62 = vunpack.c.h.bf16 %v3402_v51  ;;  %v2084_v56 = vpack.c.bf16 %v1452_v53, %v1363_v11 }
 0x2de   : > { %v3567_v4 = vunpack.c.l.bf16 %v3399_v58  ;;  %v3568_v5 = vunpack.c.l.bf16 %v3400_v6  ;;  %v1543_v8 = vpop.f32.mrf.mxu0  ;;  %v3826_v13 = vmax.f32 %v5506_v32, %v3569_v59  ;;  %v3575_v17 = vunpack.c.h.bf16 %v3399_v58 }
 0x2df   : > { %4642 = vmatpush.bf16.msrb.mxu3 %v5485_v54  ;;  %v3863_v14 = vmax.f32 %v5508_v1, %v3570_v9  ;;  %v3576_v18 = vunpack.c.h.bf16 %v3400_v6  ;;  %v2298_v27 = vunpack.c.h.bf16 %v2085_v44  ;;  %v2295_v39 = vunpack.c.l.bf16 %v2084_v56 }
 0x2e0   : > { %v3752_v20 = vmax.f32 %v5510_v49, %v3567_v4  ;;  %v3789_v31 = vmax.f32 %v5512_v38, %v3568_v5  ;;  %v3827_v16 = vmax.f32 %v3826_v13, %v3577_v22  ;;  %v2296_v54 = vunpack.c.h.bf16 %v2084_v56 }
 0x2e1   : > { %v3864_v25 = vmax.f32 %v3863_v14, %v3578_v62  ;;  %v1632_v23 = vpop.f32.mrf.mxu1  ;;  %v2561_v1 = vadd.f32 %v5398_v21, %v2297_v63  ;;  %v2562_v49 = vadd.f32 %v5400_v30, %v2298_v27  ;;  %v2559_v38 = vadd.f32 %v5403_v35, %v2295_v39 }
 0x2e2   : > { %v3753_v40 = vmax.f32 %v3752_v20, %v3575_v17  ;;  %v3790_v48 = vmax.f32 %v3789_v31, %v3576_v18  ;;  %v2089_v57 = vpack.c.bf16 %v1632_v23, %v1543_v8  ;;  %v2560_v0 = vadd.f32 %v5405_v36, %v2296_v54 }
 0x2e3   : > { %4643 = vmatpush.bf16.msrb.mxu3 %v4332_v34  ;;  %v1365_v32 = vpop.f32.mrf.mxu2  ;;  %v1454_v42 = vpop.f32.mrf.mxu3  ;;  %v3201_v51 = vmax.f32 %v2561_v1, 0.0  ;;  %v3202_v34 = vmax.f32 %v2562_v49, 0.0  ;;  %v3199_v58 = vmax.f32 %v2559_v38, 0.0 }
 0x2e4   : > { %v2088_v60 = vpack.c.bf16 %v1454_v42, %v1365_v32  ;;  %v2305_v26 = vunpack.c.l.bf16 %v2089_v57  ;;  %v2306_v61 = vunpack.c.h.bf16 %v2089_v57  ;;  %v3200_v22 = vmax.f32 %v2560_v0, 0.0 }
 0x2e6   : > { %v2303_v41 = vunpack.c.l.bf16 %v2088_v60  ;;  %v2304_v44 = vunpack.c.h.bf16 %v2088_v60  ;;  %v1546_v43 = vpop.f32.mrf.mxu0  ;;  %v2569_v19 = vadd.f32 %v5398_v21, %v2305_v26  ;;  %v2570_v45 = vadd.f32 %v5400_v30, %v2306_v61 }
 0x2e8   : > { %v2567_v11 = vadd.f32 %v5403_v35, %v2303_v41  ;;  %v2568_v53 = vadd.f32 %v5405_v36, %v2304_v44  ;;  %1407 = vmatmul.bf16.gmra.mxu2 %v5390_v55  ;;  %1496 = vmatmul.bf16.gmra.mxu3 %v5390_v55  ;;  %v3209_v6 = vmax.f32 %v2569_v19, 0.0  ;;  %v3210_v59 = vmax.f32 %v2570_v45, 0.0 }
 0x2e9   : > { %1585 = vmatmul.bf16.gmra.mxu0 %v5390_v55  ;;  %v1635_v9 = vpop.f32.mrf.mxu1 }
 0x2ea   : > { %v3207_v4 = vmax.f32 %v2567_v11, 0.0  ;;  %v3208_v5 = vmax.f32 %v2568_v53, 0.0  ;;  %v2093_v63 = vpack.c.bf16 %v1635_v9, %v1546_v43  ;;  %v3409_v8 = vpack.c.bf16 %v3209_v6, %v3201_v51 }
 0x2eb   : > { %v3410_v62 = vpack.c.bf16 %v3210_v59, %v3202_v34  ;;  %v1368_v13 = vpop.f32.mrf.mxu2  ;;  %v1457_v14 = vpop.f32.mrf.mxu3 }
 0x2ec   : > { %v3407_v17 = vpack.c.bf16 %v3207_v4, %v3199_v58  ;;  %v3408_v18 = vpack.c.bf16 %v3208_v5, %v3200_v22  ;;  %1674 = vmatmul.bf16.gmra.mxu1 %v5390_v55  ;;  %v3585_v20 = vunpack.c.l.bf16 %v3409_v8  ;;  %v3593_v56 = vunpack.c.h.bf16 %v3409_v8 }
 0x2ed   : > { %v3586_v31 = vunpack.c.l.bf16 %v3410_v62  ;;  %v2313_v39 = vunpack.c.l.bf16 %v2093_v63  ;;  %v3594_v57 = vunpack.c.h.bf16 %v3410_v62  ;;  %v2092_v26 = vpack.c.bf16 %v1457_v14, %v1368_v13 }
 0x2ee   : > { %v3583_v27 = vunpack.c.l.bf16 %v3407_v17  ;;  %v3584_v23 = vunpack.c.l.bf16 %v3408_v18  ;;  %v1548_v54 = vpop.f32.mrf.mxu0  ;;  %v3828_v32 = vmax.f32 %v3827_v16, %v3585_v20  ;;  %v3591_v1 = vunpack.c.h.bf16 %v3407_v17 }
 0x2ef   : > { %v3865_v42 = vmax.f32 %v3864_v25, %v3586_v31  ;;  %v3592_v60 = vunpack.c.h.bf16 %v3408_v18  ;;  %v2314_v41 = vunpack.c.h.bf16 %v2093_v63  ;;  %v2311_v45 = vunpack.c.l.bf16 %v2092_v26 }
 0x2f0   : > { %v3754_v49 = vmax.f32 %v3753_v40, %v3583_v27  ;;  %v3791_v38 = vmax.f32 %v3790_v48, %v3584_v23  ;;  %v3829_v61 = vmax.f32 %v3828_v32, %v3593_v56  ;;  %v2312_v51 = vunpack.c.h.bf16 %v2092_v26 }
 0x2f1   : > { %v3866_v0 = vmax.f32 %v3865_v42, %v3594_v57  ;;  %v1637_v44 = vpop.f32.mrf.mxu1  ;;  %v2577_v58 = vadd.f32 %v5398_v21, %v2313_v39  ;;  %v2578_v25 = vadd.f32 %v5400_v30, %v2314_v41  ;;  %v2575_v40 = vadd.f32 %v5403_v35, %v2311_v45 }
 0x2f2   : > { %v3755_v43 = vmax.f32 %v3754_v49, %v3591_v1  ;;  %v3792_v19 = vmax.f32 %v3791_v38, %v3592_v60  ;;  %v2097_v11 = vpack.c.bf16 %v1637_v44, %v1548_v54  ;;  %v2576_v59 = vadd.f32 %v5405_v36, %v2312_v51 }
 0x2f3   : > { %v1370_v53 = vpop.f32.mrf.mxu2  ;;  %v1459_v34 = vpop.f32.mrf.mxu3  ;;  %v3217_v8 = vmax.f32 %v2577_v58, 0.0  ;;  %v3218_v14 = vmax.f32 %v2578_v25, 0.0  ;;  %v3215_v17 = vmax.f32 %v2575_v40, 0.0 }
 0x2f4   : > { %v2096_v16 = vpack.c.bf16 %v1459_v34, %v1370_v53  ;;  %v2321_v48 = vunpack.c.l.bf16 %v2097_v11  ;;  %v2322_v6 = vunpack.c.h.bf16 %v2097_v11  ;;  %v3216_v56 = vmax.f32 %v2576_v59, 0.0 }
 0x2f6   : > { %v2319_v9 = vunpack.c.l.bf16 %v2096_v16  ;;  %v2320_v22 = vunpack.c.h.bf16 %v2096_v16  ;;  %v1551_v4 = vpop.f32.mrf.mxu0  ;;  %v2585_v5 = vadd.f32 %v5398_v21, %v2321_v48  ;;  %v2586_v63 = vadd.f32 %v5400_v30, %v2322_v6 }
 0x2f8   : > { %v2583_v62 = vadd.f32 %v5403_v35, %v2319_v9  ;;  %v2584_v13 = vadd.f32 %v5405_v36, %v2320_v22  ;;  %1688 = vmatmul.bf16.vlgmr.msra.gmra.mxu2 %v5288_v15  ;;  %1777 = vmatmul.bf16.vlgmr.msra.gmra.mxu3 %v5288_v15  ;;  %v3225_v18 = vmax.f32 %v2585_v5, 0.0  ;;  %v3226_v20 = vmax.f32 %v2586_v63, 0.0 }
 0x2f9   : > { %1866 = vmatmul.bf16.vlgmr.msra.gmra.mxu0 %v5288_v15  ;;  %v1640_v31 = vpop.f32.mrf.mxu1 }
 0x2fa   : > { %v3223_v27 = vmax.f32 %v2583_v62, 0.0  ;;  %v3224_v23 = vmax.f32 %v2584_v13, 0.0  ;;  %v2101_v39 = vpack.c.bf16 %v1640_v31, %v1551_v4  ;;  %v3417_v54 = vpack.c.bf16 %v3225_v18, %v3217_v8 }
 0x2fb   : > { %v3418_v57 = vpack.c.bf16 %v3226_v20, %v3218_v14  ;;  %v1373_v32 = vpop.f32.mrf.mxu2  ;;  %v1462_v42 = vpop.f32.mrf.mxu3 }
 0x2fc   : > { %v3415_v1 = vpack.c.bf16 %v3223_v27, %v3215_v17  ;;  %v3416_v60 = vpack.c.bf16 %v3224_v23, %v3216_v56  ;;  %1955 = vmatmul.bf16.vlgmr.msra.gmra.mxu1 %v5288_v15  ;;  %v3601_v49 = vunpack.c.l.bf16 %v3417_v54  ;;  %v3609_v26 = vunpack.c.h.bf16 %v3417_v54 }
 0x2fd   : > { %v3602_v38 = vunpack.c.l.bf16 %v3418_v57  ;;  %v2329_v45 = vunpack.c.l.bf16 %v2101_v39  ;;  %v3610_v11 = vunpack.c.h.bf16 %v3418_v57  ;;  %v2100_v48 = vpack.c.bf16 %v1462_v42, %v1373_v32 }
 0x2fe   : > { %v3599_v41 = vunpack.c.l.bf16 %v3415_v1  ;;  %v3600_v44 = vunpack.c.l.bf16 %v3416_v60  ;;  %v1553_v51 = vpop.f32.mrf.mxu0  ;;  %v3830_v53 = vmax.f32 %v3829_v61, %v3601_v49  ;;  %v3607_v58 = vunpack.c.h.bf16 %v3415_v1 }
 0x2ff   : > { %v3867_v34 = vmax.f32 %v3866_v0, %v3602_v38  ;;  %v3608_v16 = vunpack.c.h.bf16 %v3416_v60  ;;  %v2330_v9 = vunpack.c.h.bf16 %v2101_v39  ;;  %v2327_v5 = vunpack.c.l.bf16 %v2100_v48 }
 0x300   : > { %v3756_v25 = vmax.f32 %v3755_v43, %v3599_v41  ;;  %v3793_v40 = vmax.f32 %v3792_v19, %v3600_v44  ;;  %v3831_v6 = vmax.f32 %v3830_v53, %v3609_v26  ;;  %v2328_v63 = vunpack.c.h.bf16 %v2100_v48 }
 0x301   : > { %v3868_v59 = vmax.f32 %v3867_v34, %v3610_v11  ;;  %v1642_v22 = vpop.f32.mrf.mxu1  ;;  %v2593_v14 = vadd.f32 %v5398_v21, %v2329_v45  ;;  %v2594_v0 = vadd.f32 %v5400_v30, %v2330_v9  ;;  %v2591_v43 = vadd.f32 %v5403_v35, %v2327_v5 }
 0x302   : > { %v3757_v15 = vmax.f32 %v3756_v25, %v3607_v58  ;;  %v3794_v4 = vmax.f32 %v3793_v40, %v3608_v16  ;;  %v2105_v8 = vpack.c.bf16 %v1642_v22, %v1553_v51  ;;  %v2592_v18 = vadd.f32 %v5405_v36, %v2328_v63 }
 0x303   : > { %v1375_v62 = vpop.f32.mrf.mxu2  ;;  %v1464_v13 = vpop.f32.mrf.mxu3  ;;  %v3233_v39 = vmax.f32 %v2593_v14, 0.0  ;;  %v3234_v32 = vmax.f32 %v2594_v0, 0.0  ;;  %v3231_v42 = vmax.f32 %v2591_v43, 0.0 }
 0x304   : > { %v2104_v61 = vpack.c.bf16 %v1464_v13, %v1375_v62  ;;  %v2337_v19 = vunpack.c.l.bf16 %v2105_v8  ;;  %v2338_v17 = vunpack.c.h.bf16 %v2105_v8  ;;  %v3232_v38 = vmax.f32 %v2592_v18, 0.0 }
 0x306   : > { %v2335_v20 = vunpack.c.l.bf16 %v2104_v61  ;;  %v2336_v31 = vunpack.c.h.bf16 %v2104_v61  ;;  %v1556_v56 = vpop.f32.mrf.mxu0  ;;  %v2601_v27 = vadd.f32 %v5398_v21, %v2337_v19  ;;  %v2602_v23 = vadd.f32 %v5400_v30, %v2338_v17 }
 0x308   : > { %v2599_v54 = vadd.f32 %v5403_v35, %v2335_v20  ;;  %v2600_v57 = vadd.f32 %v5405_v36, %v2336_v31  ;;  %1693 = vmatmul.bf16.gmra.mxu2 %v5299_v29  ;;  %1782 = vmatmul.bf16.gmra.mxu3 %v5299_v29  ;;  %v3241_v1 = vmax.f32 %v2601_v27, 0.0  ;;  %v3242_v60 = vmax.f32 %v2602_v23, 0.0 }
 0x309   : > { %1871 = vmatmul.bf16.gmra.mxu0 %v5299_v29  ;;  %v1645_v49 = vpop.f32.mrf.mxu1 }
 0x30a   : > { %v3239_v26 = vmax.f32 %v2599_v54, 0.0  ;;  %v3240_v41 = vmax.f32 %v2600_v57, 0.0  ;;  %v2109_v44 = vpack.c.bf16 %v1645_v49, %v1556_v56  ;;  %v3425_v45 = vpack.c.bf16 %v3241_v1, %v3233_v39 }
 0x30b   : > { %v3426_v51 = vpack.c.bf16 %v3242_v60, %v3234_v32  ;;  %v1378_v11 = vpop.f32.mrf.mxu2  ;;  %v1467_v53 = vpop.f32.mrf.mxu3 }
 0x30c   : > { %v3423_v34 = vpack.c.bf16 %v3239_v26, %v3231_v42  ;;  %v3424_v58 = vpack.c.bf16 %v3240_v41, %v3232_v38  ;;  %1960 = vmatmul.bf16.gmra.mxu1 %v5299_v29  ;;  %v3617_v16 = vunpack.c.l.bf16 %v3425_v45  ;;  %v3625_v40 = vunpack.c.h.bf16 %v3425_v45 }
 0x30d   : > { %v3618_v25 = vunpack.c.l.bf16 %v3426_v51  ;;  %v2345_v22 = vunpack.c.l.bf16 %v2109_v44  ;;  %v3626_v63 = vunpack.c.h.bf16 %v3426_v51  ;;  %v2108_v43 = vpack.c.bf16 %v1467_v53, %v1378_v11 }
 0x30e   : > { %v3615_v48 = vunpack.c.l.bf16 %v3423_v34  ;;  %v3616_v9 = vunpack.c.l.bf16 %v3424_v58  ;;  %v1558_v5 = vpop.f32.mrf.mxu0  ;;  %v3832_v8 = vmax.f32 %v3831_v6, %v3617_v16  ;;  %v3623_v13 = vunpack.c.h.bf16 %v3423_v34 }
 0x30f   : > { %v3869_v62 = vmax.f32 %v3868_v59, %v3618_v25  ;;  %v3624_v14 = vunpack.c.h.bf16 %v3424_v58  ;;  %v2346_v18 = vunpack.c.h.bf16 %v2109_v44  ;;  %v2343_v56 = vunpack.c.l.bf16 %v2108_v43 }
 0x310   : > { %v3758_v61 = vmax.f32 %v3757_v15, %v3615_v48  ;;  %v3795_v0 = vmax.f32 %v3794_v4, %v3616_v9  ;;  %v3833_v19 = vmax.f32 %v3832_v8, %v3625_v40  ;;  %v2344_v27 = vunpack.c.h.bf16 %v2108_v43 }
 0x311   : > { %v3870_v17 = vmax.f32 %v3869_v62, %v3626_v63  ;;  %v1647_v20 = vpop.f32.mrf.mxu1  ;;  %v2609_v57 = vadd.f32 %v5398_v21, %v2345_v22  ;;  %v2610_v59 = vadd.f32 %v5400_v30, %v2346_v18  ;;  %v2607_v15 = vadd.f32 %v5403_v35, %v2343_v56 }
 0x312   : > { %v3759_v29 = vmax.f32 %v3758_v61, %v3623_v13  ;;  %v3796_v31 = vmax.f32 %v3795_v0, %v3624_v14  ;;  %v2113_v23 = vpack.c.bf16 %v1647_v20, %v1558_v5  ;;  %v2608_v42 = vadd.f32 %v5405_v36, %v2344_v27 }
 0x313   : > { %v1380_v39 = vpop.f32.mrf.mxu2  ;;  %v1469_v54 = vpop.f32.mrf.mxu3  ;;  %v3249_v41 = vmax.f32 %v2609_v57, 0.0  ;;  %v3250_v51 = vmax.f32 %v2610_v59, 0.0  ;;  %v3247_v11 = vmax.f32 %v2607_v15, 0.0 }
 0x314   : > { %v2112_v6 = vpack.c.bf16 %v1469_v54, %v1380_v39  ;;  %v2353_v4 = vunpack.c.l.bf16 %v2113_v23  ;;  %v2354_v32 = vunpack.c.h.bf16 %v2113_v23  ;;  %v3248_v16 = vmax.f32 %v2608_v42, 0.0 }
 0x316   : > { %v2351_v1 = vunpack.c.l.bf16 %v2112_v6  ;;  %v2352_v60 = vunpack.c.h.bf16 %v2112_v6  ;;  %v1561_v49 = vpop.f32.mrf.mxu0  ;;  %v2617_v38 = vadd.f32 %v5398_v21, %v2353_v4  ;;  %v2618_v26 = vadd.f32 %v5400_v30, %v2354_v32 }
 0x318   : > { %v2615_v44 = vadd.f32 %v5403_v35, %v2351_v1  ;;  %v2616_v45 = vadd.f32 %v5405_v36, %v2352_v60  ;;  %1698 = vmatmul.bf16.gmra.mxu2 %v5311_v50  ;;  %1787 = vmatmul.bf16.gmra.mxu3 %v5311_v50  ;;  %v3257_v53 = vmax.f32 %v2617_v38, 0.0  ;;  %v3258_v34 = vmax.f32 %v2618_v26, 0.0 }
 0x319   : > { %1876 = vmatmul.bf16.gmra.mxu0 %v5311_v50  ;;  %v1650_v58 = vpop.f32.mrf.mxu1 }
 0x31a   : > { %v3255_v25 = vmax.f32 %v2615_v44, 0.0  ;;  %v3256_v40 = vmax.f32 %v2616_v45, 0.0  ;;  %v2117_v48 = vpack.c.bf16 %v1650_v58, %v1561_v49  ;;  %v3433_v9 = vpack.c.bf16 %v3257_v53, %v3249_v41 }
 0x31b   : > { %v3434_v22 = vpack.c.bf16 %v3258_v34, %v3250_v51  ;;  %v1383_v5 = vpop.f32.mrf.mxu2  ;;  %v1472_v63 = vpop.f32.mrf.mxu3 }
 0x31c   : > { %v3431_v8 = vpack.c.bf16 %v3255_v25, %v3247_v11  ;;  %v3432_v62 = vpack.c.bf16 %v3256_v40, %v3248_v16  ;;  %1965 = vmatmul.bf16.gmra.mxu1 %v5311_v50  ;;  %v3633_v13 = vunpack.c.l.bf16 %v3433_v9  ;;  %v3641_v61 = vunpack.c.h.bf16 %v3433_v9 }
 0x31d   : > { %v3634_v14 = vunpack.c.l.bf16 %v3434_v22  ;;  %v2361_v18 = vunpack.c.l.bf16 %v2117_v48  ;;  %v3642_v56 = vunpack.c.h.bf16 %v3434_v22  ;;  %v2116_v59 = vpack.c.bf16 %v1472_v63, %v1383_v5 }
 0x31e   : > { %v3631_v0 = vunpack.c.l.bf16 %v3431_v8  ;;  %v3632_v43 = vunpack.c.l.bf16 %v3432_v62  ;;  %v1563_v20 = vpop.f32.mrf.mxu0  ;;  %v3834_v27 = vmax.f32 %v3833_v19, %v3633_v13  ;;  %v3639_v39 = vunpack.c.h.bf16 %v3431_v8 }
 0x31f   : > { %v3871_v23 = vmax.f32 %v3870_v17, %v3634_v14  ;;  %v3640_v54 = vunpack.c.h.bf16 %v3432_v62  ;;  %v2362_v32 = vunpack.c.h.bf16 %v2117_v48  ;;  %v2359_v60 = vunpack.c.l.bf16 %v2116_v59 }
 0x320   : > { %v3760_v57 = vmax.f32 %v3759_v29, %v3631_v0  ;;  %v3797_v6 = vmax.f32 %v3796_v31, %v3632_v43  ;;  %v3835_v15 = vmax.f32 %v3834_v27, %v3641_v61  ;;  %v2360_v49 = vunpack.c.h.bf16 %v2116_v59 }
 0x321   : > { %v3872_v4 = vmax.f32 %v3871_v23, %v3642_v56  ;;  %v1652_v42 = vpop.f32.mrf.mxu1  ;;  %v2625_v44 = vadd.f32 %v5398_v21, %v2361_v18  ;;  %v2626_v17 = vadd.f32 %v5400_v30, %v2362_v32  ;;  %v2623_v29 = vadd.f32 %v5403_v35, %v2359_v60 }
 0x322   : > { %v3761_v50 = vmax.f32 %v3760_v57, %v3639_v39  ;;  %v3798_v1 = vmax.f32 %v3797_v6, %v3640_v54  ;;  %v2121_v38 = vpack.c.bf16 %v1652_v42, %v1563_v20  ;;  %v2624_v51 = vadd.f32 %v5405_v36, %v2360_v49 }
 0x323   : > { %v1385_v26 = vpop.f32.mrf.mxu2  ;;  %v1474_v41 = vpop.f32.mrf.mxu3  ;;  %v3265_v25 = vmax.f32 %v2625_v44, 0.0  ;;  %v3266_v9 = vmax.f32 %v2626_v17, 0.0  ;;  %v3263_v22 = vmax.f32 %v2623_v29, 0.0 }
 0x324   : > { %v2120_v19 = vpack.c.bf16 %v1474_v41, %v1385_v26  ;;  %v2369_v31 = vunpack.c.l.bf16 %v2121_v38  ;;  %v2370_v45 = vunpack.c.h.bf16 %v2121_v38  ;;  %v3264_v62 = vmax.f32 %v2624_v51, 0.0 }
 0x326   : > { %v2367_v11 = vunpack.c.l.bf16 %v2120_v19  ;;  %v2368_v53 = vunpack.c.h.bf16 %v2120_v19  ;;  %v1566_v34 = vpop.f32.mrf.mxu0  ;;  %v2633_v58 = vadd.f32 %v5398_v21, %v2369_v31  ;;  %v2634_v16 = vadd.f32 %v5400_v30, %v2370_v45 }
 0x328   : > { %v2631_v40 = vadd.f32 %v5403_v35, %v2367_v11  ;;  %v2632_v48 = vadd.f32 %v5405_v36, %v2368_v53  ;;  %1703 = vmatmul.bf16.gmra.mxu2 %v5326_v7  ;;  %1792 = vmatmul.bf16.gmra.mxu3 %v5326_v7  ;;  %v3273_v5 = vmax.f32 %v2633_v58, 0.0  ;;  %v3274_v63 = vmax.f32 %v2634_v16, 0.0 }
 0x329   : > { %1881 = vmatmul.bf16.gmra.mxu0 %v5326_v7  ;;  %v1655_v8 = vpop.f32.mrf.mxu1 }
 0x32a   : > { %v3271_v13 = vmax.f32 %v2631_v40, 0.0  ;;  %v3272_v14 = vmax.f32 %v2632_v48, 0.0  ;;  %v2125_v61 = vpack.c.bf16 %v1655_v8, %v1566_v34  ;;  %v3441_v0 = vpack.c.bf16 %v3273_v5, %v3265_v25 }
 0x32b   : > { %v3442_v43 = vpack.c.bf16 %v3274_v63, %v3266_v9  ;;  %v1388_v18 = vpop.f32.mrf.mxu2  ;;  %v1477_v20 = vpop.f32.mrf.mxu3 }
 0x32c   : > { %v3439_v56 = vpack.c.bf16 %v3271_v13, %v3263_v22  ;;  %v3440_v27 = vpack.c.bf16 %v3272_v14, %v3264_v62  ;;  %1970 = vmatmul.bf16.gmra.mxu1 %v5326_v7  ;;  %v3649_v23 = vunpack.c.l.bf16 %v3441_v0  ;;  %v3657_v54 = vunpack.c.h.bf16 %v3441_v0 }
 0x32d   : > { %v3650_v39 = vunpack.c.l.bf16 %v3442_v43  ;;  %v2377_v59 = vunpack.c.l.bf16 %v2125_v61  ;;  %v3658_v42 = vunpack.c.h.bf16 %v3442_v43  ;;  %v2124_v19 = vpack.c.bf16 %v1477_v20, %v1388_v18 }
 0x32e   : > { %v3647_v57 = vunpack.c.l.bf16 %v3439_v56  ;;  %v3648_v6 = vunpack.c.l.bf16 %v3440_v27  ;;  %v1568_v32 = vpop.f32.mrf.mxu0  ;;  %v3836_v60 = vmax.f32 %v3835_v15, %v3649_v23  ;;  %v3655_v38 = vunpack.c.h.bf16 %v3439_v56 }
 0x32f   : > { %v3873_v49 = vmax.f32 %v3872_v4, %v3650_v39  ;;  %v3656_v26 = vunpack.c.h.bf16 %v3440_v27  ;;  %v2378_v31 = vunpack.c.h.bf16 %v2125_v61  ;;  %v2375_v11 = vunpack.c.l.bf16 %v2124_v19 }
 0x330   : > { %v3762_v41 = vmax.f32 %v3761_v50, %v3647_v57  ;;  %v3799_v44 = vmax.f32 %v3798_v1, %v3648_v6  ;;  %v3837_v17 = vmax.f32 %v3836_v60, %v3657_v54  ;;  %v2376_v53 = vunpack.c.h.bf16 %v2124_v19 }
 0x331   : > { %v3874_v29 = vmax.f32 %v3873_v49, %v3658_v42  ;;  %v1657_v45 = vpop.f32.mrf.mxu1  ;;  %v2641_v25 = vadd.f32 %v5398_v21, %v2377_v59  ;;  %v2642_v4 = vadd.f32 %v5400_v30, %v2378_v31  ;;  %v2639_v50 = vadd.f32 %v5403_v35, %v2375_v11 }
 0x332   : > { %v3763_v7 = vmax.f32 %v3762_v41, %v3655_v38  ;;  %v3800_v51 = vmax.f32 %v3799_v44, %v3656_v26  ;;  %v2129_v34 = vpack.c.bf16 %v1657_v45, %v1568_v32  ;;  %v2640_v48 = vadd.f32 %v5405_v36, %v2376_v53 }
 0x333   : > { %v1390_v58 = vpop.f32.mrf.mxu2  ;;  %v1479_v16 = vpop.f32.mrf.mxu3  ;;  %v3281_v62 = vmax.f32 %v2641_v25, 0.0  ;;  %v3282_v61 = vmax.f32 %v2642_v4, 0.0  ;;  %v3279_v0 = vmax.f32 %v2639_v50, 0.0 }
 0x334   : > { %v2128_v15 = vpack.c.bf16 %v1479_v16, %v1390_v58  ;;  %v2385_v1 = vunpack.c.l.bf16 %v2129_v34  ;;  %v2386_v40 = vunpack.c.h.bf16 %v2129_v34  ;;  %v3280_v56 = vmax.f32 %v2640_v48, 0.0 }
 0x336   : > { %v2383_v9 = vunpack.c.l.bf16 %v2128_v15  ;;  %v2384_v22 = vunpack.c.h.bf16 %v2128_v15  ;;  %v1571_v5 = vpop.f32.mrf.mxu0  ;;  %v2649_v63 = vadd.f32 %v5398_v21, %v2385_v1  ;;  %v2650_v8 = vadd.f32 %v5400_v30, %v2386_v40 }
 0x338   : > { %v2647_v13 = vadd.f32 %v5403_v35, %v2383_v9  ;;  %v2648_v14 = vadd.f32 %v5405_v36, %v2384_v22  ;;  %1708 = vmatmul.bf16.gmra.mxu2 %v5338_v28  ;;  %1797 = vmatmul.bf16.gmra.mxu3 %v5338_v28  ;;  %v3289_v43 = vmax.f32 %v2649_v63, 0.0  ;;  %v3290_v18 = vmax.f32 %v2650_v8, 0.0 }
 0x339   : > { %1886 = vmatmul.bf16.gmra.mxu0 %v5338_v28  ;;  %v1660_v20 = vpop.f32.mrf.mxu1 }
 0x33a   : > { %v3287_v27 = vmax.f32 %v2647_v13, 0.0  ;;  %v3288_v23 = vmax.f32 %v2648_v14, 0.0  ;;  %v2133_v39 = vpack.c.bf16 %v1660_v20, %v1571_v5  ;;  %v3449_v54 = vpack.c.bf16 %v3289_v43, %v3281_v62 }
 0x33b   : > { %v3450_v57 = vpack.c.bf16 %v3290_v18, %v3282_v61  ;;  %v1393_v6 = vpop.f32.mrf.mxu2  ;;  %v1482_v59 = vpop.f32.mrf.mxu3 }
 0x33c   : > { %v3447_v32 = vpack.c.bf16 %v3287_v27, %v3279_v0  ;;  %v3448_v42 = vpack.c.bf16 %v3288_v23, %v3280_v56  ;;  %1975 = vmatmul.bf16.gmra.mxu1 %v5338_v28  ;;  %v3665_v60 = vunpack.c.l.bf16 %v3449_v54  ;;  %v3673_v38 = vunpack.c.h.bf16 %v3449_v54 }
 0x33d   : > { %v3666_v49 = vunpack.c.l.bf16 %v3450_v57  ;;  %v2393_v44 = vunpack.c.l.bf16 %v2133_v39  ;;  %v3674_v31 = vunpack.c.h.bf16 %v3450_v57  ;;  %v2132_v25 = vpack.c.bf16 %v1482_v59, %v1393_v6 }
 0x33e   : > { %v3663_v26 = vunpack.c.l.bf16 %v3447_v32  ;;  %v3664_v41 = vunpack.c.l.bf16 %v3448_v42  ;;  %v1573_v19 = vpop.f32.mrf.mxu0  ;;  %v3838_v45 = vmax.f32 %v3837_v17, %v3665_v60  ;;  %v3671_v53 = vunpack.c.h.bf16 %v3447_v32 }
 0x33f   : > { %v3875_v11 = vmax.f32 %v3874_v29, %v3666_v49  ;;  %v3672_v34 = vunpack.c.h.bf16 %v3448_v42  ;;  %v2394_v50 = vunpack.c.h.bf16 %v2133_v39  ;;  %v2391_v48 = vunpack.c.l.bf16 %v2132_v25 }
 0x340   : > { %v3764_v58 = vmax.f32 %v3763_v7, %v3663_v26  ;;  %v3801_v16 = vmax.f32 %v3800_v51, %v3664_v41  ;;  %v3839_v15 = vmax.f32 %v3838_v45, %v3673_v38  ;;  %v2392_v9 = vunpack.c.h.bf16 %v2132_v25 }
 0x341   : > { %v3876_v4 = vmax.f32 %v3875_v11, %v3674_v31  ;;  %v1662_v1 = vpop.f32.mrf.mxu1  ;;  %v2657_v8 = vadd.f32 %v5398_v21, %v2393_v44  ;;  %v2658_v29 = vadd.f32 %v5400_v30, %v2394_v50  ;;  %v2655_v7 = vadd.f32 %v5403_v35, %v2391_v48 }
 0x342   : > { %v3765_v28 = vmax.f32 %v3764_v58, %v3671_v53  ;;  %v3802_v40 = vmax.f32 %v3801_v16, %v3672_v34  ;;  %v2137_v22 = vpack.c.bf16 %v1662_v1, %v1573_v19  ;;  %v2656_v13 = vadd.f32 %v5405_v36, %v2392_v9 }
 0x343   : > { %v1395_v5 = vpop.f32.mrf.mxu2  ;;  %v1484_v63 = vpop.f32.mrf.mxu3  ;;  %v3297_v20 = vmax.f32 %v2657_v8, 0.0  ;;  %v3298_v23 = vmax.f32 %v2658_v29, 0.0  ;;  %v3295_v39 = vmax.f32 %v2655_v7, 0.0 }
 0x344   : > { %v2136_v17 = vpack.c.bf16 %v1484_v63, %v1395_v5  ;;  %v2401_v51 = vunpack.c.l.bf16 %v2137_v22  ;;  %v2402_v62 = vunpack.c.h.bf16 %v2137_v22  ;;  %v3296_v59 = vmax.f32 %v2656_v13, 0.0 }
 0x346   : > { %v2399_v14 = vunpack.c.l.bf16 %v2136_v17  ;;  %v2400_v61 = vunpack.c.h.bf16 %v2136_v17  ;;  %v1576_v0 = vpop.f32.mrf.mxu0  ;;  %v2665_v43 = vadd.f32 %v5398_v21, %v2401_v51  ;;  %v2666_v18 = vadd.f32 %v5400_v30, %v2402_v62 }
 0x348   : > { %v2663_v56 = vadd.f32 %v5403_v35, %v2399_v14  ;;  %v2664_v27 = vadd.f32 %v5405_v36, %v2400_v61  ;;  %1713 = vmatmul.bf16.gmra.mxu2 %v5353_v52  ;;  %1802 = vmatmul.bf16.gmra.mxu3 %v5353_v52  ;;  %v3305_v54 = vmax.f32 %v2665_v43, 0.0  ;;  %v3306_v57 = vmax.f32 %v2666_v18, 0.0 }
 0x349   : > { %1891 = vmatmul.bf16.gmra.mxu0 %v5353_v52  ;;  %v1665_v6 = vpop.f32.mrf.mxu1 }
 0x34a   : > { %v3303_v32 = vmax.f32 %v2663_v56, 0.0  ;;  %v3304_v42 = vmax.f32 %v2664_v27, 0.0  ;;  %v2141_v60 = vpack.c.bf16 %v1665_v6, %v1576_v0  ;;  %v3457_v49 = vpack.c.bf16 %v3305_v54, %v3297_v20 }
 0x34b   : > { %v3458_v38 = vpack.c.bf16 %v3306_v57, %v3298_v23  ;;  %v1398_v26 = vpop.f32.mrf.mxu2  ;;  %v1487_v41 = vpop.f32.mrf.mxu3 }
 0x34c   : > { %v3455_v44 = vpack.c.bf16 %v3303_v32, %v3295_v39  ;;  %v3456_v19 = vpack.c.bf16 %v3304_v42, %v3296_v59  ;;  %1980 = vmatmul.bf16.gmra.mxu1 %v5353_v52  ;;  %v3681_v31 = vunpack.c.l.bf16 %v3457_v49  ;;  %v3689_v11 = vunpack.c.h.bf16 %v3457_v49 }
 0x34d   : > { %v3682_v45 = vunpack.c.l.bf16 %v3458_v38  ;;  %v2409_v58 = vunpack.c.l.bf16 %v2141_v60  ;;  %v3690_v25 = vunpack.c.h.bf16 %v3458_v38  ;;  %v2140_v63 = vpack.c.bf16 %v1487_v41, %v1398_v26 }
 0x34e   : > { %v3679_v53 = vunpack.c.l.bf16 %v3455_v44  ;;  %v3680_v34 = vunpack.c.l.bf16 %v3456_v19  ;;  %v1578_v16 = vpop.f32.mrf.mxu0  ;;  %v3840_v50 = vmax.f32 %v3839_v15, %v3681_v31  ;;  %v3687_v48 = vunpack.c.h.bf16 %v3455_v44 }
 0x34f   : > { %v3877_v1 = vmax.f32 %v3876_v4, %v3682_v45  ;;  %v3688_v9 = vunpack.c.h.bf16 %v3456_v19  ;;  %v2410_v29 = vunpack.c.h.bf16 %v2141_v60  ;;  %v2407_v62 = vunpack.c.l.bf16 %v2140_v63 }
 0x350   : > { %v3766_v22 = vmax.f32 %v3765_v28, %v3679_v53  ;;  %v3803_v5 = vmax.f32 %v3802_v40, %v3680_v34  ;;  %v3841_v8 = vmax.f32 %v3840_v50, %v3689_v11  ;;  %v2408_v13 = vunpack.c.h.bf16 %v2140_v63 }
 0x351   : > { %v3878_v17 = vmax.f32 %v3877_v1, %v3690_v25  ;;  %v1667_v7 = vpop.f32.mrf.mxu1  ;;  %v2673_v43 = vadd.f32 %v5398_v21, %v2409_v58  ;;  %v2674_v4 = vadd.f32 %v5400_v30, %v2410_v29  ;;  %v2671_v28 = vadd.f32 %v5403_v35, %v2407_v62 }
 0x352   : > { %v3767_v52 = vmax.f32 %v3766_v22, %v3687_v48  ;;  %v3804_v51 = vmax.f32 %v3803_v5, %v3688_v9  ;;  %v2145_v14 = vpack.c.bf16 %v1667_v7, %v1578_v16  ;;  %v2672_v20 = vadd.f32 %v5405_v36, %v2408_v13 }
 0x353   : > { %v1400_v61 = vpop.f32.mrf.mxu2  ;;  %v1489_v0 = vpop.f32.mrf.mxu3  ;;  %v3313_v57 = vmax.f32 %v2673_v43, 0.0  ;;  %v3314_v32 = vmax.f32 %v2674_v4, 0.0  ;;  %v3311_v42 = vmax.f32 %v2671_v28, 0.0 }
 0x354   : > { %v2144_v15 = vpack.c.bf16 %v1489_v0, %v1400_v61  ;;  %v2417_v40 = vunpack.c.l.bf16 %v2145_v14  ;;  %v2418_v18 = vunpack.c.h.bf16 %v2145_v14  ;;  %v3312_v26 = vmax.f32 %v2672_v20, 0.0 }
 0x356   : > { %v2415_v56 = vunpack.c.l.bf16 %v2144_v15  ;;  %v2416_v27 = vunpack.c.h.bf16 %v2144_v15  ;;  %v1581_v23 = vpop.f32.mrf.mxu0  ;;  %v2681_v39 = vadd.f32 %v5398_v21, %v2417_v40  ;;  %v2682_v54 = vadd.f32 %v5400_v30, %v2418_v18 }
 0x358   : > { %v2679_v6 = vadd.f32 %v5403_v35, %v2415_v56  ;;  %v2680_v59 = vadd.f32 %v5405_v36, %v2416_v27  ;;  %1718 = vmatmul.bf16.gmra.mxu2 %v5365_v12  ;;  %1807 = vmatmul.bf16.gmra.mxu3 %v5365_v12  ;;  %v3321_v60 = vmax.f32 %v2681_v39, 0.0  ;;  %v3322_v49 = vmax.f32 %v2682_v54, 0.0 }
 0x359   : > { %1896 = vmatmul.bf16.gmra.mxu0 %v5365_v12  ;;  %v1670_v38 = vpop.f32.mrf.mxu1 }
 0x35a   : > { %v3319_v41 = vmax.f32 %v2679_v6, 0.0  ;;  %v3320_v44 = vmax.f32 %v2680_v59, 0.0  ;;  %v2149_v19 = vpack.c.bf16 %v1670_v38, %v1581_v23  ;;  %v3465_v31 = vpack.c.bf16 %v3321_v60, %v3313_v57 }
 0x35b   : > { %v3466_v45 = vpack.c.bf16 %v3322_v49, %v3314_v32  ;;  %v1403_v11 = vpop.f32.mrf.mxu2  ;;  %v1492_v53 = vpop.f32.mrf.mxu3 }
 0x35c   : > { %v3463_v34 = vpack.c.bf16 %v3319_v41, %v3311_v42  ;;  %v3464_v58 = vpack.c.bf16 %v3320_v44, %v3312_v26  ;;  %1985 = vmatmul.bf16.gmra.mxu1 %v5365_v12  ;;  %v3697_v16 = vunpack.c.l.bf16 %v3465_v31  ;;  %v3705_v50 = vunpack.c.h.bf16 %v3465_v31 }
 0x35d   : > { %v3698_v25 = vunpack.c.l.bf16 %v3466_v45  ;;  %v2425_v9 = vunpack.c.l.bf16 %v2149_v19  ;;  %v3706_v5 = vunpack.c.h.bf16 %v3466_v45  ;;  %v2148_v61 = vpack.c.bf16 %v1492_v53, %v1403_v11 }
 0x35e   : > { %v3695_v1 = vunpack.c.l.bf16 %v3463_v34  ;;  %v3696_v48 = vunpack.c.l.bf16 %v3464_v58  ;;  %v1583_v22 = vpop.f32.mrf.mxu0  ;;  %v3842_v63 = vmax.f32 %v3841_v8, %v3697_v16  ;;  %v3703_v7 = vunpack.c.h.bf16 %v3463_v34 }
 0x35f   : > { %v3879_v29 = vmax.f32 %v3878_v17, %v3698_v25  ;;  %v3704_v62 = vunpack.c.h.bf16 %v3464_v58  ;;  %v2426_v15 = vunpack.c.h.bf16 %v2149_v19  ;;  %v2423_v40 = vunpack.c.l.bf16 %v2148_v61 }
 0x360   : > { %v3768_v13 = vmax.f32 %v3767_v52, %v3695_v1  ;;  %v3805_v14 = vmax.f32 %v3804_v51, %v3696_v48  ;;  %v3843_v0 = vmax.f32 %v3842_v63, %v3705_v50  ;;  %v2424_v18 = vunpack.c.h.bf16 %v2148_v61 }
 0x361   : > { %v3880_v43 = vmax.f32 %v3879_v29, %v3706_v5  ;;  %v1672_v4 = vpop.f32.mrf.mxu1  ;;  %v2689_v23 = vadd.f32 %v5398_v21, %v2425_v9  ;;  %v2690_v17 = vadd.f32 %v5400_v30, %v2426_v15  ;;  %v2687_v52 = vadd.f32 %v5403_v35, %v2423_v40 }
 0x362   : > { %v3769_v12 = vmax.f32 %v3768_v13, %v3703_v7  ;;  %v3806_v28 = vmax.f32 %v3805_v14, %v3704_v62  ;;  %v2153_v20 = vpack.c.bf16 %v1672_v4, %v1583_v22  ;;  %v2688_v54 = vadd.f32 %v5405_v36, %v2424_v18  ;;  %v2173_v13 = vld [vmem:[#allocation1 + $0x36] sm:$0xff] }
 0x363   : > { %v1405_v56 = vpop.f32.mrf.mxu2  ;;  %v1494_v27 = vpop.f32.mrf.mxu3  ;;  %v3329_v60 = vmax.f32 %v2689_v23, 0.0  ;;  %v3330_v26 = vmax.f32 %v2690_v17, 0.0  ;;  %v3327_v41 = vmax.f32 %v2687_v52, 0.0  ;;  %v2193_v52 = vpack.i.b16 %v2173_v13, %v2173_v13 }
 0x364   : > { %v2152_v8 = vpack.c.bf16 %v1494_v27, %v1405_v56  ;;  %v2433_v51 = vunpack.c.l.bf16 %v2153_v20  ;;  %v2434_v39 = vunpack.c.h.bf16 %v2153_v20  ;;  %v3328_v45 = vmax.f32 %v2688_v54, 0.0  ;;  %v2174_v27 = vld [vmem:[#allocation1 + $0x3f] sm:$0xff] }
 0x366   : > { %v2431_v57 = vunpack.c.l.bf16 %v2152_v8  ;;  %v2432_v6 = vunpack.c.h.bf16 %v2152_v8  ;;  %v1586_v59 = vpop.f32.mrf.mxu0  ;;  %v2697_v32 = vadd.f32 %v5398_v21, %v2433_v51  ;;  %v2698_v42 = vadd.f32 %v5400_v30, %v2434_v39 }
 0x368   : > { %v2695_v49 = vadd.f32 %v5403_v35, %v2431_v57  ;;  %v2696_v38 = vadd.f32 %v5405_v36, %v2432_v6  ;;  %1723 = vmatmul.bf16.gmra.mxu2 %v5380_v37  ;;  %1812 = vmatmul.bf16.gmra.mxu3 %v5380_v37  ;;  %v3337_v44 = vmax.f32 %v2697_v32, 0.0  ;;  %v3338_v19 = vmax.f32 %v2698_v42, 0.0  ;;  %v2171_v32 = vld [vmem:[#allocation1 + $0x24] sm:$0xff] }
 0x369   : > { %1901 = vmatmul.bf16.gmra.mxu0 %v5380_v37  ;;  %v1675_v31 = vpop.f32.mrf.mxu1 }
 0x36a   : > { %v3335_v11 = vmax.f32 %v2695_v49, 0.0  ;;  %v3336_v53 = vmax.f32 %v2696_v38, 0.0  ;;  %v2157_v34 = vpack.c.bf16 %v1675_v31, %v1586_v59  ;;  %v3473_v58 = vpack.c.bf16 %v3337_v44, %v3329_v60 }
 0x36b   : > { %v3474_v16 = vpack.c.bf16 %v3338_v19, %v3330_v26  ;;  %v1408_v25 = vpop.f32.mrf.mxu2  ;;  %v1497_v50 = vpop.f32.mrf.mxu3  ;;  %v2172_v26 = vld [vmem:[#allocation1 + $0x2d] sm:$0xff] }
 0x36c   : > { %v3471_v1 = vpack.c.bf16 %v3335_v11, %v3327_v41  ;;  %v3472_v48 = vpack.c.bf16 %v3336_v53, %v3328_v45  ;;  %1990 = vmatmul.bf16.gmra.mxu1 %v5380_v37  ;;  %v3713_v9 = vunpack.c.l.bf16 %v3473_v58  ;;  %v3721_v5 = vunpack.c.h.bf16 %v3473_v58 }
 0x36d   : > { %v3714_v22 = vunpack.c.l.bf16 %v3474_v16  ;;  %v2441_v7 = vunpack.c.l.bf16 %v2157_v34  ;;  %v3722_v14 = vunpack.c.h.bf16 %v3474_v16  ;;  %v2156_v56 = vpack.c.bf16 %v1497_v50, %v1408_v25 }
 0x36e   : > { %v3711_v63 = vunpack.c.l.bf16 %v3471_v1  ;;  %v3712_v29 = vunpack.c.l.bf16 %v3472_v48  ;;  %v1588_v62 = vpop.f32.mrf.mxu0  ;;  %v3844_v61 = vmax.f32 %v3843_v0, %v3713_v9  ;;  %v3719_v4 = vunpack.c.h.bf16 %v3471_v1 }
 0x36f   : > { %v3881_v15 = vmax.f32 %v3880_v43, %v3714_v22  ;;  %v3720_v40 = vunpack.c.h.bf16 %v3472_v48  ;;  %v2442_v8 = vunpack.c.h.bf16 %v2157_v34  ;;  %v2439_v54 = vunpack.c.l.bf16 %v2156_v56 }
 0x370   : > { %v3770_v18 = vmax.f32 %v3769_v12, %v3711_v63  ;;  %v3807_v20 = vmax.f32 %v3806_v28, %v3712_v29  ;;  %v5642_v23 = vmax.f32 %v3844_v61, %v3721_v5  ;;  %v2440_v0 = vunpack.c.h.bf16 %v2156_v56 }
 0x371   : > { %v5644_v37 = vmax.f32 %v3881_v15, %v3722_v14  ;;  %v1677_v17 = vpop.f32.mrf.mxu1  ;;  %v2196_v12 = vpack.i.b16 %v2174_v27, %v2174_v27  ;;  %v2705_v28 = vadd.f32 %v5398_v21, %v2441_v7  ;;  %v2706_v42 = vadd.f32 %v5400_v30, %v2442_v8 }
 0x372   : > { %v5646_v51 = vmax.f32 %v3770_v18, %v3719_v4  ;;  %v5648_v39 = vmax.f32 %v3807_v20, %v3720_v40  ;;  %v2161_v43 = vpack.c.bf16 %v1677_v17, %v1588_v62  ;;  %v2703_v60 = vadd.f32 %v5403_v35, %v2439_v54 }
 0x373   : > { %v1410_v57 = vpop.f32.mrf.mxu2  ;;  %v1499_v6 = vpop.f32.mrf.mxu3  ;;  %v2704_v41 = vadd.f32 %v5405_v36, %v2440_v0  ;;  %v2195_v45 = vperm.slane %v2193_v52, 0  ;;  %v2198_v34 = vperm.slane %v2196_v12, 0  ;;  %v2187_v58 = vpack.i.b16 %v2171_v32, %v2171_v32 }
 0x374   : > { %v2160_v59 = vpack.c.bf16 %v1499_v6, %v1410_v57  ;;  %v2449_v49 = vunpack.c.l.bf16 %v2161_v43  ;;  %v2450_v38 = vunpack.c.h.bf16 %v2161_v43  ;;  %v3345_v16 = vmax.f32 %v2705_v28, 0.0 }
 0x375   : > { %v2190_v1 = vpack.i.b16 %v2172_v26, %v2172_v26  ;;  %v3346_v48 = vmax.f32 %v2706_v42, 0.0  ;;  %v3343_v9 = vmax.f32 %v2703_v60, 0.0  ;;  %v5661_v13 = vunpack.c.l.bf16 %v2195_v45 }
 0x376   : > { %v2447_v44 = vunpack.c.l.bf16 %v2160_v59  ;;  %v2448_v19 = vunpack.c.h.bf16 %v2160_v59  ;;  %v1867_v31 = vpop.f32.mrf.mxu0  ;;  %v2713_v11 = vadd.f32 %v5398_v21, %v2449_v49  ;;  %v2714_v53 = vadd.f32 %v5400_v30, %v2450_v38 }
 0x377   : > { %v3344_v30 = vmax.f32 %v2704_v41, 0.0  ;;  %v2189_v18 = vperm.slane %v2187_v58, 0  ;;  %v2192_v8 = vperm.slane %v2190_v1, 0 }
 0x378   : > { %v2711_v25 = vadd.f32 %v5403_v35, %v2447_v44  ;;  %v2712_v50 = vadd.f32 %v5405_v36, %v2448_v19  ;;  %1728 = vmatmul.bf16.gmra.mxu2 %v5392_v2  ;;  %1817 = vmatmul.bf16.gmra.mxu3 %v5392_v2  ;;  %v3353_v22 = vmax.f32 %v2713_v11, 0.0  ;;  %v3354_v5 = vmax.f32 %v2714_v53, 0.0 }
 0x379   : > { %1906 = vmatmul.bf16.gmra.mxu0 %v5392_v2  ;;  %v1956_v21 = vpop.f32.mrf.mxu1  ;;  %v5663_v36 = vunpack.c.l.bf16 %v2198_v34  ;;  %v5671_v38 = vunpack.c.l.bf16 %v2189_v18  ;;  %v5674_v45 = vunpack.c.l.bf16 %v2192_v8 }
 0x37a   : > { %v3351_v63 = vmax.f32 %v2711_v25, 0.0  ;;  %v3352_v29 = vmax.f32 %v2712_v50, 0.0  ;;  %v2039_v7 = vpack.c.bf16 %v1956_v21, %v1867_v31  ;;  %v3481_v62 = vpack.c.bf16 %v3353_v22, %v3345_v16 }
 0x37b   : > { %v3482_v35 = vpack.c.bf16 %v3354_v5, %v3346_v48  ;;  %v1689_v14 = vpop.f32.mrf.mxu2  ;;  %v1778_v61 = vpop.f32.mrf.mxu3 }
 0x37c   : > { %v3479_v15 = vpack.c.bf16 %v3351_v63, %v3343_v9  ;;  %v3480_v4 = vpack.c.bf16 %v3352_v29, %v3344_v30  ;;  %v2205_v40 = vunpack.c.l.bf16 %v2039_v7  ;;  %1995 = vmatmul.bf16.gmra.mxu1 %v5392_v2  ;;  %v3729_v20 = vunpack.c.l.bf16 %v3481_v62 }
 0x37d   : > { %v3730_v56 = vunpack.c.l.bf16 %v3482_v35  ;;  %v2206_v27 = vunpack.c.h.bf16 %v2039_v7  ;;  %v3737_v17 = vunpack.c.h.bf16 %v3481_v62  ;;  %v3738_v52 = vunpack.c.h.bf16 %v3482_v35 }
 0x37e   : > { %v3727_v54 = vunpack.c.l.bf16 %v3479_v15  ;;  %v3728_v0 = vunpack.c.l.bf16 %v3480_v4  ;;  %v1869_v43 = vpop.f32.mrf.mxu0  ;;  %v3846_v57 = vmax.f32 %v5642_v23, %v3729_v20  ;;  %v3735_v12 = vunpack.c.h.bf16 %v3479_v15 }
 0x37f   : > { %v3883_v6 = vmax.f32 %v5644_v37, %v3730_v56  ;;  %v3736_v28 = vunpack.c.h.bf16 %v3480_v4  ;;  %v2469_v2 = vadd.f32 %v5661_v13, %v2205_v40  ;;  %v2038_v42 = vpack.c.bf16 %v1778_v61, %v1689_v14 }
 0x380   : > { %v3772_v59 = vmax.f32 %v5646_v51, %v3727_v54  ;;  %v3809_v32 = vmax.f32 %v5648_v39, %v3728_v0  ;;  %v3847_v60 = vmax.f32 %v3846_v57, %v3737_v17  ;;  %v2470_v23 = vadd.f32 %v5663_v36, %v2206_v27 }
 0x381   : > { %v3884_v49 = vmax.f32 %v3883_v6, %v3738_v52  ;;  %v1958_v26 = vpop.f32.mrf.mxu1  ;;  %v2203_v19 = vunpack.c.l.bf16 %v2038_v42  ;;  %v3109_v58 = vmax.f32 %v2469_v2, 0.0  ;;  %v2204_v16 = vunpack.c.h.bf16 %v2038_v42 }
 0x382   : > { %v3773_v41 = vmax.f32 %v3772_v59, %v3735_v12  ;;  %v3810_v44 = vmax.f32 %v3809_v32, %v3736_v28  ;;  %v3848_v37 = vrot.slane %v3847_v60, 4  ;;  %v2043_v51 = vpack.c.bf16 %v1958_v26, %v1869_v43 }
 0x383   : > { %v3885_v31 = vrot.slane %v3884_v49, 4  ;;  %v1691_v11 = vpop.f32.mrf.mxu2  ;;  %v1780_v39 = vpop.f32.mrf.mxu3  ;;  %v3110_v5 = vmax.f32 %v2470_v23, 0.0  ;;  %v2467_v21 = vadd.f32 %v5671_v38, %v2203_v19  ;;  %v2468_v61 = vadd.f32 %v5674_v45, %v2204_v16 }
 0x384   : > { %v3774_v53 = vrot.slane %v3773_v41, 4  ;;  %v3811_v34 = vrot.slane %v3810_v44, 4  ;;  %v3849_v25 = vmax.f32 %v3847_v60, %v3848_v37  ;;  %v2213_v1 = vunpack.c.l.bf16 %v2043_v51 }
 0x385   : > { %v3886_v50 = vmax.f32 %v3884_v49, %v3885_v31  ;;  %v2214_v48 = vunpack.c.h.bf16 %v2043_v51  ;;  %v2042_v15 = vpack.c.bf16 %v1780_v39, %v1691_v11 }
 0x386   : > { %v3775_v9 = vmax.f32 %v3773_v41, %v3774_v53  ;;  %v3812_v22 = vmax.f32 %v3810_v44, %v3811_v34  ;;  %v1872_v30 = vpop.f32.mrf.mxu0  ;;  %v3850_v63 = vrot.slane %v3849_v25, 2  ;;  %v2477_v7 = vadd.f32 %v5661_v13, %v2213_v1 }
 0x387   : > { %v3887_v29 = vrot.slane %v3886_v50, 2  ;;  %v2478_v62 = vadd.f32 %v5663_v36, %v2214_v48  ;;  %v2211_v17 = vunpack.c.l.bf16 %v2042_v15  ;;  %v2212_v52 = vunpack.c.h.bf16 %v2042_v15 }
 0x388   : > { %v3776_v35 = vrot.slane %v3775_v9, 2  ;;  %v3813_v14 = vrot.slane %v3812_v22, 2  ;;  %1733 = vmatmul.bf16.gmra.mxu2 %v5309_v46  ;;  %1822 = vmatmul.bf16.gmra.mxu3 %v5309_v46  ;;  %v3851_v4 = vmax.f32 %v3849_v25, %v3850_v63  ;;  %v3117_v18 = vmax.f32 %v2477_v7, 0.0 }
 0x389   : > { %v3888_v40 = vmax.f32 %v3886_v50, %v3887_v29  ;;  %v3118_v20 = vmax.f32 %v2478_v62, 0.0  ;;  %1911 = vmatmul.bf16.gmra.mxu0 %v5309_v46  ;;  %v1961_v56 = vpop.f32.mrf.mxu1  ;;  %v2475_v32 = vadd.f32 %v5671_v38, %v2211_v17  ;;  %v2476_v2 = vadd.f32 %v5674_v45, %v2212_v52 }
 0x38a   : > { %v3777_v27 = vmax.f32 %v3775_v9, %v3776_v35  ;;  %v3814_v8 = vmax.f32 %v3812_v22, %v3813_v14  ;;  %v3852_v54 = vrot.slane %v3851_v4, 1  ;;  %v5683_v43 = vpack.c.bf16 %v3117_v18, %v3109_v58 }
 0x38b   : > { %v3889_v0 = vrot.slane %v3888_v40, 1  ;;  %v5685_v57 = vpack.c.bf16 %v3118_v20, %v3110_v5  ;;  %v1694_v6 = vpop.f32.mrf.mxu2  ;;  %v1783_v12 = vpop.f32.mrf.mxu3  ;;  %v3107_v41 = vmax.f32 %v2467_v21, 0.0  ;;  %v3108_v44 = vmax.f32 %v2468_v61, 0.0 }
 0x38c   : > { %v3778_v28 = vrot.slane %v3777_v27, 1  ;;  %v3815_v59 = vrot.slane %v3814_v8, 1  ;;  %2000 = vmatmul.bf16.gmra.mxu1 %v5309_v46  ;;  %v3853_v42 = vmax.f32 %v3851_v4, %v3852_v54  ;;  %v3115_v37 = vmax.f32 %v2475_v32, 0.0 }
 0x38d   : > { %v3890_v60 = vmax.f32 %v3888_v40, %v3889_v0  ;;  %v3116_v31 = vmax.f32 %v2476_v2, 0.0  ;;  %v2047_v51 = vpack.c.bf16 %v1961_v56, %v1872_v30  ;;  %v2046_v39 = vpack.c.bf16 %v1783_v12, %v1694_v6 }
 0x38e   : > { %v3779_v49 = vmax.f32 %v3777_v27, %v3778_v28  ;;  %v3816_v26 = vmax.f32 %v3814_v8, %v3815_v59  ;;  %v1874_v23 = vpop.f32.mrf.mxu0  ;;  %v3363_v58 = vpack.c.bf16 %v3115_v37, %v3107_v41  ;;  %v3493_v50 = vunpack.c.l.bf16 %v5683_v43 }
 0x38f   : > { %v4040_v19 = vpack.c.bf16 %v3890_v60, %v3853_v42  ;;  %v5690_v16 = vpack.c.bf16 %v3116_v31, %v3108_v44  ;;  %v2221_v1 = vunpack.c.l.bf16 %v2047_v51  ;;  %v3494_v48 = vunpack.c.l.bf16 %v5685_v57 }
 0x390   : > { %v4039_v11 = vpack.c.bf16 %v3816_v26, %v3779_v49  ;;  %v3501_v9 = vunpack.c.h.bf16 %v5683_v43  ;;  %v3502_v22 = vunpack.c.h.bf16 %v5685_v57  ;;  %v2222_v5 = vunpack.c.h.bf16 %v2047_v51 }
 0x391   : > { %v4046_v53 = vunpack.c.l.bf16 %v4040_v19  ;;  %v4047_v34 = vunpack.c.h.bf16 %v4040_v19  ;;  %v1963_v46 = vpop.f32.mrf.mxu1  ;;  %v2485_v35 = vadd.f32 %v5661_v13, %v2221_v1  ;;  %v2219_v14 = vunpack.c.l.bf16 %v2046_v39 }
 0x392   : > { %v4045_v25 = vunpack.c.h.bf16 %v4039_v11  ;;  %v4044_v7 = vunpack.c.l.bf16 %v4039_v11  ;;  %v2220_v61 = vunpack.c.h.bf16 %v2046_v39  ;;  %v2051_v15 = vpack.c.bf16 %v1963_v46, %v1874_v23 }
 0x393   : > { %v1696_v21 = vpop.f32.mrf.mxu2  ;;  %v1785_v30 = vpop.f32.mrf.mxu3  ;;  %v4061_v63 = vrot.slane %v4046_v53, 6  ;;  %v4062_v29 = vrot.slane %v4047_v34, 5  ;;  %v3491_v4 = vunpack.c.l.bf16 %v3363_v58  ;;  %v3492_v40 = vunpack.c.l.bf16 %v5690_v16 }
 0x394   : > { %v4060_v62 = vrot.slane %v4045_v25, 7  ;;  %v3499_v18 = vunpack.c.h.bf16 %v3363_v58  ;;  %v2050_v20 = vpack.c.bf16 %v1785_v30, %v1696_v21  ;;  %v2486_v27 = vadd.f32 %v5663_v36, %v2222_v5 }
 0x395   : > { %v2483_v8 = vadd.f32 %v5671_v38, %v2219_v14  ;;  %v2484_v17 = vadd.f32 %v5674_v45, %v2220_v61  ;;  %v2229_v52 = vunpack.c.l.bf16 %v2051_v15  ;;  %v2230_v54 = vunpack.c.h.bf16 %v2051_v15 }
 0x396   : > { %v1877_v56 = vpop.f32.mrf.mxu0  ;;  %v2227_v0 = vunpack.c.l.bf16 %v2050_v20  ;;  %v2228_v43 = vunpack.c.h.bf16 %v2050_v20  ;;  %v4068_v57 = vsel %vm4067_vm2, %v4044_v7, %v4060_v62  ;;  %v3500_v6 = vunpack.c.h.bf16 %v5690_v16 }
 0x397   : > { %v3125_v12 = vmax.f32 %v2485_v35, 0.0  ;;  %v2493_v28 = vadd.f32 %v5661_v13, %v2229_v52  ;;  %v4070_v32 = vsel %vm4069_vm3, %v4061_v63, %v4062_v29  ;;  %v2494_v2 = vadd.f32 %v5663_v36, %v2230_v54 }
 0x398   : > { %1738 = vmatmul.bf16.gmra.mxu2 %v5324_v3  ;;  %1827 = vmatmul.bf16.gmra.mxu3 %v5324_v3  ;;  %v2491_v42 = vadd.f32 %v5671_v38, %v2227_v0  ;;  %v2492_v60 = vadd.f32 %v5674_v45, %v2228_v43  ;;  %v3126_v26 = vmax.f32 %v2486_v27, 0.0  ;;  %v3123_v41 = vmax.f32 %v2483_v8, 0.0 }
 0x399   : > { %1916 = vmatmul.bf16.gmra.mxu0 %v5324_v3  ;;  %v1966_v59 = vpop.f32.mrf.mxu1  ;;  %v3133_v44 = vmax.f32 %v2493_v28, 0.0  ;;  %v5712_v37 = vsel %vm4071_vm4, %v4068_v57, %v4070_v32  ;;  %v3124_v31 = vmax.f32 %v2484_v17, 0.0  ;;  %v3134_v51 = vmax.f32 %v2494_v2, 0.0 }
 0x39a   : > { %v2055_v49 = vpack.c.bf16 %v1966_v59, %v1877_v56  ;;  %v3131_v11 = vmax.f32 %v2491_v42, 0.0  ;;  %v3132_v39 = vmax.f32 %v2492_v60, 0.0  ;;  %v3965_v53 = vmax.f32 %v3493_v50, %v3501_v9 }
 0x39b   : > { %v1699_v23 = vpop.f32.mrf.mxu2  ;;  %v1788_v19 = vpop.f32.mrf.mxu3  ;;  %v4002_v34 = vmax.f32 %v3494_v48, %v3502_v22  ;;  %v3373_v58 = vpack.c.bf16 %v3133_v44, %v3125_v12  ;;  %v3891_v46 = vmax.f32 %v3491_v4, %v3499_v18  ;;  %v3374_v25 = vpack.c.bf16 %v3134_v51, %v3126_v26 }
 0x39c   : > { %2005 = vmatmul.bf16.gmra.mxu1 %v5324_v3  ;;  %v2054_v16 = vpack.c.bf16 %v1788_v19, %v1699_v23  ;;  %v3371_v1 = vpack.c.bf16 %v3131_v11, %v3123_v41  ;;  %v3372_v5 = vpack.c.bf16 %v3132_v39, %v3124_v31  ;;  %v3928_v30 = vmax.f32 %v3492_v40, %v3500_v6 }
 0x39d   : > { %v3509_v63 = vunpack.c.l.bf16 %v3373_v58  ;;  %v2237_v29 = vunpack.c.l.bf16 %v2055_v49  ;;  %v2238_v7 = vunpack.c.h.bf16 %v2055_v49  ;;  %v3510_v62 = vunpack.c.l.bf16 %v3374_v25 }
 0x39e   : > { %v1879_v21 = vpop.f32.mrf.mxu0  ;;  %v3517_v35 = vunpack.c.h.bf16 %v3373_v58  ;;  %v3507_v14 = vunpack.c.l.bf16 %v3371_v1  ;;  %v3508_v61 = vunpack.c.l.bf16 %v3372_v5  ;;  %v3518_v15 = vunpack.c.h.bf16 %v3374_v25 }
 0x39f   : > { %v3966_v20 = vmax.f32 %v3965_v53, %v3509_v63  ;;  %v3515_v3 = vunpack.c.h.bf16 %v3371_v1  ;;  %v2235_v50 = vunpack.c.l.bf16 %v2054_v16  ;;  %v4003_v9 = vmax.f32 %v4002_v34, %v3510_v62 }
 0x3a0   : > { %v3516_v22 = vunpack.c.h.bf16 %v3372_v5  ;;  %v3892_v4 = vmax.f32 %v3891_v46, %v3507_v14  ;;  %v3929_v18 = vmax.f32 %v3928_v30, %v3508_v61  ;;  %v2501_v27 = vadd.f32 %v5661_v13, %v2237_v29 }
 0x3a1   : > { %v1968_v48 = vpop.f32.mrf.mxu1  ;;  %v3967_v56 = vmax.f32 %v3966_v20, %v3517_v35  ;;  %v2236_v40 = vunpack.c.h.bf16 %v2054_v16  ;;  %v4004_v54 = vmax.f32 %v4003_v9, %v3518_v15  ;;  %v2502_v6 = vadd.f32 %v5663_v36, %v2238_v7 }
 0x3a2   : > { %v2059_v8 = vpack.c.bf16 %v1968_v48, %v1879_v21  ;;  %v3893_v0 = vmax.f32 %v3892_v4, %v3515_v3  ;;  %v3930_v43 = vmax.f32 %v3929_v18, %v3516_v22  ;;  %v2499_v12 = vadd.f32 %v5671_v38, %v2235_v50 }
 0x3a3   : > { %v1701_v17 = vpop.f32.mrf.mxu2  ;;  %v1790_v52 = vpop.f32.mrf.mxu3  ;;  %v2500_v32 = vadd.f32 %v5674_v45, %v2236_v40  ;;  %v3141_v41 = vmax.f32 %v2501_v27, 0.0  ;;  %v3142_v19 = vmax.f32 %v2502_v6, 0.0 }
 0x3a4   : > { %v2058_v57 = vpack.c.bf16 %v1790_v52, %v1701_v17  ;;  %v2245_v28 = vunpack.c.l.bf16 %v2059_v8  ;;  %v2246_v59 = vunpack.c.h.bf16 %v2059_v8  ;;  %v3139_v31 = vmax.f32 %v2499_v12, 0.0 }
 0x3a5   : > { %v3140_v53 = vmax.f32 %v2500_v32, 0.0 }
 0x3a6   : > { %v2243_v2 = vunpack.c.l.bf16 %v2058_v57  ;;  %v2244_v42 = vunpack.c.h.bf16 %v2058_v57  ;;  %v1882_v60 = vpop.f32.mrf.mxu0  ;;  %v2509_v49 = vadd.f32 %v5661_v13, %v2245_v28  ;;  %v2510_v26 = vadd.f32 %v5663_v36, %v2246_v59 }
 0x3a8   : > { %v2507_v44 = vadd.f32 %v5671_v38, %v2243_v2  ;;  %v2508_v23 = vadd.f32 %v5674_v45, %v2244_v42  ;;  %1743 = vmatmul.bf16.gmra.mxu2 %v5336_v24  ;;  %1832 = vmatmul.bf16.gmra.mxu3 %v5336_v24  ;;  %v3149_v51 = vmax.f32 %v2509_v49, 0.0  ;;  %v3150_v11 = vmax.f32 %v2510_v26, 0.0 }
 0x3a9   : > { %1921 = vmatmul.bf16.gmra.mxu0 %v5336_v24  ;;  %v1971_v39 = vpop.f32.mrf.mxu1 }
 0x3aa   : > { %v3147_v34 = vmax.f32 %v2507_v44, 0.0  ;;  %v3148_v58 = vmax.f32 %v2508_v23, 0.0  ;;  %v2063_v16 = vpack.c.bf16 %v1971_v39, %v1882_v60  ;;  %v3381_v46 = vpack.c.bf16 %v3149_v51, %v3141_v41 }
 0x3ab   : > { %v3382_v25 = vpack.c.bf16 %v3150_v11, %v3142_v19  ;;  %v1704_v1 = vpop.f32.mrf.mxu2  ;;  %v1793_v5 = vpop.f32.mrf.mxu3 }
 0x3ac   : > { %v3379_v21 = vpack.c.bf16 %v3147_v34, %v3139_v31  ;;  %v3380_v30 = vpack.c.bf16 %v3148_v58, %v3140_v53  ;;  %2010 = vmatmul.bf16.gmra.mxu1 %v5336_v24  ;;  %v3525_v63 = vunpack.c.l.bf16 %v3381_v46  ;;  %v3533_v7 = vunpack.c.h.bf16 %v3381_v46 }
 0x3ad   : > { %v3526_v29 = vunpack.c.l.bf16 %v3382_v25  ;;  %v2253_v14 = vunpack.c.l.bf16 %v2063_v16  ;;  %v3534_v15 = vunpack.c.h.bf16 %v3382_v25  ;;  %v2062_v4 = vpack.c.bf16 %v1793_v5, %v1704_v1 }
 0x3ae   : > { %v3523_v62 = vunpack.c.l.bf16 %v3379_v21  ;;  %v3524_v35 = vunpack.c.l.bf16 %v3380_v30  ;;  %v1884_v61 = vpop.f32.mrf.mxu0  ;;  %v3968_v20 = vmax.f32 %v3967_v56, %v3525_v63  ;;  %v3531_v50 = vunpack.c.h.bf16 %v3379_v21 }
 0x3af   : > { %v4005_v3 = vmax.f32 %v4004_v54, %v3526_v29  ;;  %v3532_v48 = vunpack.c.h.bf16 %v3380_v30  ;;  %v2254_v40 = vunpack.c.h.bf16 %v2063_v16  ;;  %v2251_v52 = vunpack.c.l.bf16 %v2062_v4 }
 0x3b0   : > { %v3894_v9 = vmax.f32 %v3893_v0, %v3523_v62  ;;  %v3931_v22 = vmax.f32 %v3930_v43, %v3524_v35  ;;  %v3969_v18 = vmax.f32 %v3968_v20, %v3533_v7  ;;  %v2252_v57 = vunpack.c.h.bf16 %v2062_v4 }
 0x3b1   : > { %v4006_v27 = vmax.f32 %v4005_v3, %v3534_v15  ;;  %v1973_v8 = vpop.f32.mrf.mxu1  ;;  %v2517_v59 = vadd.f32 %v5661_v13, %v2253_v14  ;;  %v2518_v54 = vadd.f32 %v5663_v36, %v2254_v40  ;;  %v2515_v0 = vadd.f32 %v5671_v38, %v2251_v52 }
 0x3b2   : > { %v3895_v24 = vmax.f32 %v3894_v9, %v3531_v50  ;;  %v3932_v17 = vmax.f32 %v3931_v22, %v3532_v48  ;;  %v2067_v6 = vpack.c.bf16 %v1973_v8, %v1884_v61  ;;  %v2516_v2 = vadd.f32 %v5674_v45, %v2252_v57 }
 0x3b3   : > { %v1706_v12 = vpop.f32.mrf.mxu2  ;;  %v1795_v28 = vpop.f32.mrf.mxu3  ;;  %v3157_v44 = vmax.f32 %v2517_v59, 0.0  ;;  %v3158_v31 = vmax.f32 %v2518_v54, 0.0  ;;  %v3155_v51 = vmax.f32 %v2515_v0, 0.0 }
 0x3b4   : > { %v2066_v56 = vpack.c.bf16 %v1795_v28, %v1706_v12  ;;  %v2261_v43 = vunpack.c.l.bf16 %v2067_v6  ;;  %v2262_v32 = vunpack.c.h.bf16 %v2067_v6  ;;  %v3156_v34 = vmax.f32 %v2516_v2, 0.0 }
 0x3b6   : > { %v2259_v42 = vunpack.c.l.bf16 %v2066_v56  ;;  %v2260_v60 = vunpack.c.h.bf16 %v2066_v56  ;;  %v1887_v49 = vpop.f32.mrf.mxu0  ;;  %v2525_v26 = vadd.f32 %v5661_v13, %v2261_v43  ;;  %v2526_v41 = vadd.f32 %v5663_v36, %v2262_v32 }
 0x3b8   : > { %v2523_v23 = vadd.f32 %v5671_v38, %v2259_v42  ;;  %v2524_v19 = vadd.f32 %v5674_v45, %v2260_v60  ;;  %1748 = vmatmul.bf16.gmra.mxu2 %v5351_v47  ;;  %1837 = vmatmul.bf16.gmra.mxu3 %v5351_v47  ;;  %v3165_v11 = vmax.f32 %v2525_v26, 0.0  ;;  %v3166_v39 = vmax.f32 %v2526_v41, 0.0 }
 0x3b9   : > { %1926 = vmatmul.bf16.gmra.mxu0 %v5351_v47  ;;  %v1976_v53 = vpop.f32.mrf.mxu1 }
 0x3ba   : > { %v3163_v58 = vmax.f32 %v2523_v23, 0.0  ;;  %v3164_v16 = vmax.f32 %v2524_v19, 0.0  ;;  %v2071_v46 = vpack.c.bf16 %v1976_v53, %v1887_v49  ;;  %v3389_v25 = vpack.c.bf16 %v3165_v11, %v3157_v44 }
 0x3bb   : > { %v3390_v1 = vpack.c.bf16 %v3166_v39, %v3158_v31  ;;  %v1709_v5 = vpop.f32.mrf.mxu2  ;;  %v1798_v21 = vpop.f32.mrf.mxu3 }
 0x3bc   : > { %v3387_v30 = vpack.c.bf16 %v3163_v58, %v3155_v51  ;;  %v3388_v63 = vpack.c.bf16 %v3164_v16, %v3156_v34  ;;  %2015 = vmatmul.bf16.gmra.mxu1 %v5351_v47  ;;  %v3541_v29 = vunpack.c.l.bf16 %v3389_v25  ;;  %v3549_v62 = vunpack.c.h.bf16 %v3389_v25 }
 0x3bd   : > { %v3542_v7 = vunpack.c.l.bf16 %v3390_v1  ;;  %v2269_v61 = vunpack.c.l.bf16 %v2071_v46  ;;  %v3550_v20 = vunpack.c.h.bf16 %v3390_v1  ;;  %v2070_v40 = vpack.c.bf16 %v1798_v21, %v1709_v5 }
 0x3be   : > { %v3539_v35 = vunpack.c.l.bf16 %v3387_v30  ;;  %v3540_v14 = vunpack.c.l.bf16 %v3388_v63  ;;  %v1889_v15 = vpop.f32.mrf.mxu0  ;;  %v3970_v3 = vmax.f32 %v3969_v18, %v3541_v29  ;;  %v3547_v48 = vunpack.c.h.bf16 %v3387_v30 }
 0x3bf   : > { %v4007_v50 = vmax.f32 %v4006_v27, %v3542_v7  ;;  %v3548_v9 = vunpack.c.h.bf16 %v3388_v63  ;;  %v2270_v57 = vunpack.c.h.bf16 %v2071_v46  ;;  %v2267_v28 = vunpack.c.l.bf16 %v2070_v40 }
 0x3c0   : > { %v3896_v22 = vmax.f32 %v3895_v24, %v3539_v35  ;;  %v3933_v4 = vmax.f32 %v3932_v17, %v3540_v14  ;;  %v3971_v8 = vmax.f32 %v3970_v3, %v3549_v62  ;;  %v2268_v59 = vunpack.c.h.bf16 %v2070_v40 }
 0x3c1   : > { %v4008_v52 = vmax.f32 %v4007_v50, %v3550_v20  ;;  %v1978_v6 = vpop.f32.mrf.mxu1  ;;  %v2533_v43 = vadd.f32 %v5661_v13, %v2269_v61  ;;  %v2534_v27 = vadd.f32 %v5663_v36, %v2270_v57  ;;  %v2531_v24 = vadd.f32 %v5671_v38, %v2267_v28 }
 0x3c2   : > { %v3897_v47 = vmax.f32 %v3896_v22, %v3547_v48  ;;  %v3934_v12 = vmax.f32 %v3933_v4, %v3548_v9  ;;  %v2075_v56 = vpack.c.bf16 %v1978_v6, %v1889_v15  ;;  %v2532_v2 = vadd.f32 %v5674_v45, %v2268_v59 }
 0x3c3   : > { %v1711_v54 = vpop.f32.mrf.mxu2  ;;  %v1800_v0 = vpop.f32.mrf.mxu3  ;;  %v3173_v44 = vmax.f32 %v2533_v43, 0.0  ;;  %v3174_v31 = vmax.f32 %v2534_v27, 0.0  ;;  %v3171_v51 = vmax.f32 %v2531_v24, 0.0 }
 0x3c4   : > { %v2074_v18 = vpack.c.bf16 %v1800_v0, %v1711_v54  ;;  %v2277_v17 = vunpack.c.l.bf16 %v2075_v56  ;;  %v2278_v32 = vunpack.c.h.bf16 %v2075_v56  ;;  %v3172_v34 = vmax.f32 %v2532_v2, 0.0 }
 0x3c6   : > { %v2275_v42 = vunpack.c.l.bf16 %v2074_v18  ;;  %v2276_v60 = vunpack.c.h.bf16 %v2074_v18  ;;  %v1892_v49 = vpop.f32.mrf.mxu0  ;;  %v2541_v26 = vadd.f32 %v5661_v13, %v2277_v17  ;;  %v2542_v41 = vadd.f32 %v5663_v36, %v2278_v32 }
 0x3c8   : > { %v2539_v23 = vadd.f32 %v5671_v38, %v2275_v42  ;;  %v2540_v19 = vadd.f32 %v5674_v45, %v2276_v60  ;;  %1753 = vmatmul.bf16.gmra.mxu2 %v5363_v10  ;;  %1842 = vmatmul.bf16.gmra.mxu3 %v5363_v10  ;;  %v3181_v11 = vmax.f32 %v2541_v26, 0.0  ;;  %v3182_v39 = vmax.f32 %v2542_v41, 0.0 }
 0x3c9   : > { %1931 = vmatmul.bf16.gmra.mxu0 %v5363_v10  ;;  %v1981_v53 = vpop.f32.mrf.mxu1 }
 0x3ca   : > { %v3179_v58 = vmax.f32 %v2539_v23, 0.0  ;;  %v3180_v16 = vmax.f32 %v2540_v19, 0.0  ;;  %v2079_v46 = vpack.c.bf16 %v1981_v53, %v1892_v49  ;;  %v3397_v25 = vpack.c.bf16 %v3181_v11, %v3173_v44 }
 0x3cb   : > { %v3398_v1 = vpack.c.bf16 %v3182_v39, %v3174_v31  ;;  %v1714_v5 = vpop.f32.mrf.mxu2  ;;  %v1803_v21 = vpop.f32.mrf.mxu3 }
 0x3cc   : > { %v3395_v30 = vpack.c.bf16 %v3179_v58, %v3171_v51  ;;  %v3396_v63 = vpack.c.bf16 %v3180_v16, %v3172_v34  ;;  %2020 = vmatmul.bf16.gmra.mxu1 %v5363_v10  ;;  %v3557_v29 = vunpack.c.l.bf16 %v3397_v25  ;;  %v3565_v62 = vunpack.c.h.bf16 %v3397_v25 }
 0x3cd   : > { %v3558_v7 = vunpack.c.l.bf16 %v3398_v1  ;;  %v2285_v61 = vunpack.c.l.bf16 %v2079_v46  ;;  %v3566_v20 = vunpack.c.h.bf16 %v3398_v1  ;;  %v2078_v40 = vpack.c.bf16 %v1803_v21, %v1714_v5 }
 0x3ce   : > { %v3555_v35 = vunpack.c.l.bf16 %v3395_v30  ;;  %v3556_v14 = vunpack.c.l.bf16 %v3396_v63  ;;  %v1894_v15 = vpop.f32.mrf.mxu0  ;;  %v3972_v3 = vmax.f32 %v3971_v8, %v3557_v29  ;;  %v3563_v48 = vunpack.c.h.bf16 %v3395_v30 }
 0x3cf   : > { %v4009_v50 = vmax.f32 %v4008_v52, %v3558_v7  ;;  %v3564_v9 = vunpack.c.h.bf16 %v3396_v63  ;;  %v2286_v28 = vunpack.c.h.bf16 %v2079_v46  ;;  %v2283_v54 = vunpack.c.l.bf16 %v2078_v40 }
 0x3d0   : > { %v3898_v22 = vmax.f32 %v3897_v47, %v3555_v35  ;;  %v3935_v4 = vmax.f32 %v3934_v12, %v3556_v14  ;;  %v3973_v57 = vmax.f32 %v3972_v3, %v3565_v62  ;;  %v2284_v0 = vunpack.c.h.bf16 %v2078_v40 }
 0x3d1   : > { %v4010_v6 = vmax.f32 %v4009_v50, %v3566_v20  ;;  %v1983_v59 = vpop.f32.mrf.mxu1  ;;  %v2549_v24 = vadd.f32 %v5661_v13, %v2285_v61  ;;  %v2550_v52 = vadd.f32 %v5663_v36, %v2286_v28  ;;  %v2547_v47 = vadd.f32 %v5671_v38, %v2283_v54 }
 0x3d2   : > { %v3899_v10 = vmax.f32 %v3898_v22, %v3563_v48  ;;  %v3936_v56 = vmax.f32 %v3935_v4, %v3564_v9  ;;  %v2083_v43 = vpack.c.bf16 %v1983_v59, %v1894_v15  ;;  %v2548_v32 = vadd.f32 %v5674_v45, %v2284_v0 }
 0x3d3   : > { %v1716_v18 = vpop.f32.mrf.mxu2  ;;  %v1805_v27 = vpop.f32.mrf.mxu3  ;;  %v3189_v41 = vmax.f32 %v2549_v24, 0.0  ;;  %v3190_v19 = vmax.f32 %v2550_v52, 0.0  ;;  %v3187_v31 = vmax.f32 %v2547_v47, 0.0 }
 0x3d4   : > { %v2082_v8 = vpack.c.bf16 %v1805_v27, %v1716_v18  ;;  %v2293_v12 = vunpack.c.l.bf16 %v2083_v43  ;;  %v2294_v17 = vunpack.c.h.bf16 %v2083_v43  ;;  %v3188_v53 = vmax.f32 %v2548_v32, 0.0 }
 0x3d6   : > { %v2291_v2 = vunpack.c.l.bf16 %v2082_v8  ;;  %v2292_v42 = vunpack.c.h.bf16 %v2082_v8  ;;  %v1897_v60 = vpop.f32.mrf.mxu0  ;;  %v2557_v49 = vadd.f32 %v5661_v13, %v2293_v12  ;;  %v2558_v26 = vadd.f32 %v5663_v36, %v2294_v17 }
 0x3d8   : > { %v2555_v44 = vadd.f32 %v5671_v38, %v2291_v2  ;;  %v2556_v23 = vadd.f32 %v5674_v45, %v2292_v42  ;;  %1758 = vmatmul.bf16.gmra.mxu2 %v5377_v33  ;;  %1847 = vmatmul.bf16.gmra.mxu3 %v5377_v33  ;;  %v3197_v51 = vmax.f32 %v2557_v49, 0.0  ;;  %v3198_v11 = vmax.f32 %v2558_v26, 0.0 }
 0x3d9   : > { %1936 = vmatmul.bf16.gmra.mxu0 %v5377_v33  ;;  %v1986_v39 = vpop.f32.mrf.mxu1 }
 0x3da   : > { %v3195_v34 = vmax.f32 %v2555_v44, 0.0  ;;  %v3196_v58 = vmax.f32 %v2556_v23, 0.0  ;;  %v2087_v16 = vpack.c.bf16 %v1986_v39, %v1897_v60  ;;  %v3405_v46 = vpack.c.bf16 %v3197_v51, %v3189_v41 }
 0x3db   : > { %v3406_v25 = vpack.c.bf16 %v3198_v11, %v3190_v19  ;;  %v1719_v1 = vpop.f32.mrf.mxu2  ;;  %v1808_v5 = vpop.f32.mrf.mxu3 }
 0x3dc   : > { %v3403_v21 = vpack.c.bf16 %v3195_v34, %v3187_v31  ;;  %v3404_v30 = vpack.c.bf16 %v3196_v58, %v3188_v53  ;;  %2025 = vmatmul.bf16.gmra.mxu1 %v5377_v33  ;;  %v3573_v63 = vunpack.c.l.bf16 %v3405_v46  ;;  %v3581_v7 = vunpack.c.h.bf16 %v3405_v46 }
 0x3dd   : > { %v3574_v29 = vunpack.c.l.bf16 %v3406_v25  ;;  %v2301_v14 = vunpack.c.l.bf16 %v2087_v16  ;;  %v3582_v15 = vunpack.c.h.bf16 %v3406_v25  ;;  %v2086_v4 = vpack.c.bf16 %v1808_v5, %v1719_v1 }
 0x3de   : > { %v3571_v62 = vunpack.c.l.bf16 %v3403_v21  ;;  %v3572_v35 = vunpack.c.l.bf16 %v3404_v30  ;;  %v1899_v61 = vpop.f32.mrf.mxu0  ;;  %v3974_v20 = vmax.f32 %v3973_v57, %v3573_v63  ;;  %v3579_v50 = vunpack.c.h.bf16 %v3403_v21 }
 0x3df   : > { %v4011_v3 = vmax.f32 %v4010_v6, %v3574_v29  ;;  %v3580_v48 = vunpack.c.h.bf16 %v3404_v30  ;;  %v2302_v59 = vunpack.c.h.bf16 %v2087_v16  ;;  %v2299_v43 = vunpack.c.l.bf16 %v2086_v4 }
 0x3e0   : > { %v3900_v9 = vmax.f32 %v3899_v10, %v3571_v62  ;;  %v3937_v22 = vmax.f32 %v3936_v56, %v3572_v35  ;;  %v3975_v40 = vmax.f32 %v3974_v20, %v3581_v7  ;;  %v2300_v18 = vunpack.c.h.bf16 %v2086_v4 }
 0x3e1   : > { %v4012_v28 = vmax.f32 %v4011_v3, %v3582_v15  ;;  %v1988_v54 = vpop.f32.mrf.mxu1  ;;  %v2565_v52 = vadd.f32 %v5661_v13, %v2301_v14  ;;  %v2566_v6 = vadd.f32 %v5663_v36, %v2302_v59  ;;  %v2563_v10 = vadd.f32 %v5671_v38, %v2299_v43 }
 0x3e2   : > { %v3901_v33 = vmax.f32 %v3900_v9, %v3579_v50  ;;  %v3938_v0 = vmax.f32 %v3937_v22, %v3580_v48  ;;  %v2091_v27 = vpack.c.bf16 %v1988_v54, %v1899_v61  ;;  %v2564_v12 = vadd.f32 %v5674_v45, %v2300_v18 }
 0x3e3   : > { %v1721_v24 = vpop.f32.mrf.mxu2  ;;  %v1810_v8 = vpop.f32.mrf.mxu3  ;;  %v3205_v49 = vmax.f32 %v2565_v52, 0.0  ;;  %v3206_v44 = vmax.f32 %v2566_v6, 0.0  ;;  %v3203_v23 = vmax.f32 %v2563_v10, 0.0 }
 0x3e4   : > { %v2090_v57 = vpack.c.bf16 %v1810_v8, %v1721_v24  ;;  %v2309_v56 = vunpack.c.l.bf16 %v2091_v27  ;;  %v2310_v47 = vunpack.c.h.bf16 %v2091_v27  ;;  %v3204_v11 = vmax.f32 %v2564_v12, 0.0 }
 0x3e6   : > { %v2307_v17 = vunpack.c.l.bf16 %v2090_v57  ;;  %v2308_v32 = vunpack.c.h.bf16 %v2090_v57  ;;  %v1902_v2 = vpop.f32.mrf.mxu0  ;;  %v2573_v42 = vadd.f32 %v5661_v13, %v2309_v56  ;;  %v2574_v60 = vadd.f32 %v5663_v36, %v2310_v47 }
 0x3e8   : > { %v2571_v26 = vadd.f32 %v5671_v38, %v2307_v17  ;;  %v2572_v41 = vadd.f32 %v5674_v45, %v2308_v32  ;;  %1763 = vmatmul.bf16.gmra.mxu2 %v5390_v55  ;;  %1852 = vmatmul.bf16.gmra.mxu3 %v5390_v55  ;;  %v3213_v19 = vmax.f32 %v2573_v42, 0.0  ;;  %v3214_v31 = vmax.f32 %v2574_v60, 0.0 }
 0x3e9   : > { %1941 = vmatmul.bf16.gmra.mxu0 %v5390_v55  ;;  %v1991_v51 = vpop.f32.mrf.mxu1 }
 0x3ea   : > { %v3211_v39 = vmax.f32 %v2571_v26, 0.0  ;;  %v3212_v53 = vmax.f32 %v2572_v41, 0.0  ;;  %v2095_v34 = vpack.c.bf16 %v1991_v51, %v1902_v2  ;;  %v3413_v58 = vpack.c.bf16 %v3213_v19, %v3205_v49 }
 0x3eb   : > { %v3414_v16 = vpack.c.bf16 %v3214_v31, %v3206_v44  ;;  %v1724_v46 = vpop.f32.mrf.mxu2  ;;  %v1813_v25 = vpop.f32.mrf.mxu3 }
 0x3ec   : > { %v3411_v1 = vpack.c.bf16 %v3211_v39, %v3203_v23  ;;  %v3412_v5 = vpack.c.bf16 %v3212_v53, %v3204_v11  ;;  %v3589_v21 = vunpack.c.l.bf16 %v3413_v58  ;;  %v3597_v63 = vunpack.c.h.bf16 %v3413_v58 }
 0x3ed   : > { %v3590_v30 = vunpack.c.l.bf16 %v3414_v16  ;;  %v2317_v62 = vunpack.c.l.bf16 %v2095_v34  ;;  %v3598_v14 = vunpack.c.h.bf16 %v3414_v16  ;;  %v2094_v9 = vpack.c.bf16 %v1813_v25, %v1724_v46 }
 0x3ee   : > { %v3587_v29 = vunpack.c.l.bf16 %v3411_v1  ;;  %v3588_v7 = vunpack.c.l.bf16 %v3412_v5  ;;  %v1904_v35 = vpop.f32.mrf.mxu0  ;;  %v3976_v61 = vmax.f32 %v3975_v40, %v3589_v21  ;;  %v3595_v20 = vunpack.c.h.bf16 %v3411_v1 }
 0x3ef   : > { %v4013_v15 = vmax.f32 %v4012_v28, %v3590_v30  ;;  %v3596_v3 = vunpack.c.h.bf16 %v3412_v5  ;;  %v2318_v59 = vunpack.c.h.bf16 %v2095_v34  ;;  %v2315_v27 = vunpack.c.l.bf16 %v2094_v9 }
 0x3f0   : > { %v3902_v50 = vmax.f32 %v3901_v33, %v3587_v29  ;;  %v3939_v48 = vmax.f32 %v3938_v0, %v3588_v7  ;;  %v3977_v22 = vmax.f32 %v3976_v61, %v3597_v63  ;;  %v2316_v24 = vunpack.c.h.bf16 %v2094_v9 }
 0x3f1   : > { %v4014_v4 = vmax.f32 %v4013_v15, %v3598_v14  ;;  %v1993_v54 = vpop.f32.mrf.mxu1  ;;  %v2581_v6 = vadd.f32 %v5661_v13, %v2317_v62  ;;  %v2582_v28 = vadd.f32 %v5663_v36, %v2318_v59  ;;  %v2579_v33 = vadd.f32 %v5671_v38, %v2315_v27 }
 0x3f2   : > { %v3903_v43 = vmax.f32 %v3902_v50, %v3595_v20  ;;  %v3940_v18 = vmax.f32 %v3939_v48, %v3596_v3  ;;  %v2099_v8 = vpack.c.bf16 %v1993_v54, %v1904_v35  ;;  %v2580_v56 = vadd.f32 %v5674_v45, %v2316_v24 }
 0x3f3   : > { %v1726_v52 = vpop.f32.mrf.mxu2  ;;  %v1815_v57 = vpop.f32.mrf.mxu3  ;;  %v3221_v42 = vmax.f32 %v2581_v6, 0.0  ;;  %v3222_v26 = vmax.f32 %v2582_v28, 0.0  ;;  %v3219_v41 = vmax.f32 %v2579_v33, 0.0 }
 0x3f4   : > { %v2098_v40 = vpack.c.bf16 %v1815_v57, %v1726_v52  ;;  %v2325_v0 = vunpack.c.l.bf16 %v2099_v8  ;;  %v2326_v10 = vunpack.c.h.bf16 %v2099_v8  ;;  %v3220_v31 = vmax.f32 %v2580_v56, 0.0 }
 0x3f6   : > { %v2323_v47 = vunpack.c.l.bf16 %v2098_v40  ;;  %v2324_v12 = vunpack.c.h.bf16 %v2098_v40  ;;  %v1907_v17 = vpop.f32.mrf.mxu0  ;;  %v2589_v32 = vadd.f32 %v5661_v13, %v2325_v0  ;;  %v2590_v2 = vadd.f32 %v5663_v36, %v2326_v10 }
 0x3f8   : > { %v2587_v60 = vadd.f32 %v5671_v38, %v2323_v47  ;;  %v2588_v49 = vadd.f32 %v5674_v45, %v2324_v12  ;;  %2030 = vmatmul.bf16.vlgmr.msrb.gmra.mxu3 %v5390_v55  ;;  %v3229_v44 = vmax.f32 %v2589_v32, 0.0  ;;  %v3230_v23 = vmax.f32 %v2590_v2, 0.0 }
 0x3f9   : > { %v1996_v19 = vpop.f32.mrf.mxu1 }
 0x3fa   : > { %v3227_v51 = vmax.f32 %v2587_v60, 0.0  ;;  %v3228_v11 = vmax.f32 %v2588_v49, 0.0  ;;  %v2103_v39 = vpack.c.bf16 %v1996_v19, %v1907_v17  ;;  %v3421_v53 = vpack.c.bf16 %v3229_v44, %v3221_v42 }
 0x3fb   : > { %v3422_v34 = vpack.c.bf16 %v3230_v23, %v3222_v26  ;;  %v1729_v58 = vpop.f32.mrf.mxu2  ;;  %v1818_v16 = vpop.f32.mrf.mxu3 }
 0x3fc   : > { %v3419_v46 = vpack.c.bf16 %v3227_v51, %v3219_v41  ;;  %v3420_v25 = vpack.c.bf16 %v3228_v11, %v3220_v31  ;;  %v3605_v1 = vunpack.c.l.bf16 %v3421_v53  ;;  %v3613_v21 = vunpack.c.h.bf16 %v3421_v53 }
 0x3fd   : > { %v3606_v5 = vunpack.c.l.bf16 %v3422_v34  ;;  %v2333_v63 = vunpack.c.l.bf16 %v2103_v39  ;;  %v3614_v7 = vunpack.c.h.bf16 %v3422_v34  ;;  %v2102_v3 = vpack.c.bf16 %v1818_v16, %v1729_v58 }
 0x3fe   : > { %v3603_v30 = vunpack.c.l.bf16 %v3419_v46  ;;  %v3604_v55 = vunpack.c.l.bf16 %v3420_v25  ;;  %v1909_v29 = vpop.f32.mrf.mxu0  ;;  %v3978_v62 = vmax.f32 %v3977_v22, %v3605_v1  ;;  %v3611_v14 = vunpack.c.h.bf16 %v3419_v46 }
 0x3ff   : > { %v4015_v35 = vmax.f32 %v4014_v4, %v3606_v5  ;;  %v3612_v61 = vunpack.c.h.bf16 %v3420_v25  ;;  %v2334_v9 = vunpack.c.h.bf16 %v2103_v39  ;;  %v2331_v24 = vunpack.c.l.bf16 %v2102_v3 }
 0x400   : > { %v3904_v15 = vmax.f32 %v3903_v43, %v3603_v30  ;;  %v3941_v20 = vmax.f32 %v3940_v18, %v3604_v55  ;;  %v3979_v50 = vmax.f32 %v3978_v62, %v3613_v21  ;;  %v2332_v8 = vunpack.c.h.bf16 %v2102_v3 }
 0x401   : > { %v4016_v48 = vmax.f32 %v4015_v35, %v3614_v7  ;;  %v1998_v59 = vpop.f32.mrf.mxu1  ;;  %v2597_v40 = vadd.f32 %v5661_v13, %v2333_v63  ;;  %v2598_v4 = vadd.f32 %v5663_v36, %v2334_v9  ;;  %v2595_v43 = vadd.f32 %v5671_v38, %v2331_v24 }
 0x402   : > { %v3905_v54 = vmax.f32 %v3904_v15, %v3611_v14  ;;  %v3942_v27 = vmax.f32 %v3941_v20, %v3612_v61  ;;  %v2107_v52 = vpack.c.bf16 %v1998_v59, %v1909_v29  ;;  %v2596_v33 = vadd.f32 %v5674_v45, %v2332_v8 }
 0x403   : > { %v1731_v57 = vpop.f32.mrf.mxu2  ;;  %v1820_v6 = vpop.f32.mrf.mxu3  ;;  %v3237_v17 = vmax.f32 %v2597_v40, 0.0  ;;  %v3238_v42 = vmax.f32 %v2598_v4, 0.0  ;;  %v3235_v60 = vmax.f32 %v2595_v43, 0.0 }
 0x404   : > { %v2106_v22 = vpack.c.bf16 %v1820_v6, %v1731_v57  ;;  %v2341_v18 = vunpack.c.l.bf16 %v2107_v52  ;;  %v2342_v28 = vunpack.c.h.bf16 %v2107_v52  ;;  %v3236_v44 = vmax.f32 %v2596_v33, 0.0 }
 0x406   : > { %v2339_v0 = vunpack.c.l.bf16 %v2106_v22  ;;  %v2340_v10 = vunpack.c.h.bf16 %v2106_v22  ;;  %v1912_v56 = vpop.f32.mrf.mxu0  ;;  %v2605_v47 = vadd.f32 %v5661_v13, %v2341_v18  ;;  %v2606_v12 = vadd.f32 %v5663_v36, %v2342_v28 }
 0x408   : > { %v2603_v32 = vadd.f32 %v5671_v38, %v2339_v0  ;;  %v2604_v2 = vadd.f32 %v5674_v45, %v2340_v10  ;;  %v3245_v49 = vmax.f32 %v2605_v47, 0.0  ;;  %v3246_v26 = vmax.f32 %v2606_v12, 0.0 }
 0x409   : > { %v2001_v41 = vpop.f32.mrf.mxu1 }
 0x40a   : > { %v3243_v23 = vmax.f32 %v2603_v32, 0.0  ;;  %v3244_v19 = vmax.f32 %v2604_v2, 0.0  ;;  %v2111_v31 = vpack.c.bf16 %v2001_v41, %v1912_v56  ;;  %v3429_v51 = vpack.c.bf16 %v3245_v49, %v3237_v17 }
 0x40b   : > { %v3430_v11 = vpack.c.bf16 %v3246_v26, %v3238_v42  ;;  %v1734_v39 = vpop.f32.mrf.mxu2  ;;  %v1823_v53 = vpop.f32.mrf.mxu3 }
 0x40c   : > { %v3427_v34 = vpack.c.bf16 %v3243_v23, %v3235_v60  ;;  %v3428_v58 = vpack.c.bf16 %v3244_v19, %v3236_v44  ;;  %v3621_v16 = vunpack.c.l.bf16 %v3429_v51  ;;  %v3629_v25 = vunpack.c.h.bf16 %v3429_v51 }
 0x40d   : > { %v3622_v46 = vunpack.c.l.bf16 %v3430_v11  ;;  %v3630_v30 = vunpack.c.h.bf16 %v3430_v11  ;;  %v2110_v14 = vpack.c.bf16 %v1823_v53, %v1734_v39  ;;  %v2349_v20 = vunpack.c.l.bf16 %v2111_v31 }
 0x40e   : > { %v3619_v1 = vunpack.c.l.bf16 %v3427_v34  ;;  %v3620_v5 = vunpack.c.l.bf16 %v3428_v58  ;;  %v1914_v21 = vpop.f32.mrf.mxu0  ;;  %v3980_v55 = vmax.f32 %v3979_v50, %v3621_v16  ;;  %v3627_v29 = vunpack.c.h.bf16 %v3427_v34 }
 0x40f   : > { %v4017_v63 = vmax.f32 %v4016_v48, %v3622_v46  ;;  %v3628_v7 = vunpack.c.h.bf16 %v3428_v58  ;;  %v2350_v3 = vunpack.c.h.bf16 %v2111_v31  ;;  %v2347_v8 = vunpack.c.l.bf16 %v2110_v14 }
 0x410   : > { %v3906_v62 = vmax.f32 %v3905_v54, %v3619_v1  ;;  %v3943_v35 = vmax.f32 %v3942_v27, %v3620_v5  ;;  %v3981_v61 = vmax.f32 %v3980_v55, %v3629_v25  ;;  %v2348_v52 = vunpack.c.h.bf16 %v2110_v14 }
 0x411   : > { %v4018_v15 = vmax.f32 %v4017_v63, %v3630_v30  ;;  %v2003_v9 = vpop.f32.mrf.mxu1  ;;  %v2613_v50 = vadd.f32 %v5661_v13, %v2349_v20  ;;  %v2614_v48 = vadd.f32 %v5663_v36, %v2350_v3  ;;  %v2611_v4 = vadd.f32 %v5671_v38, %v2347_v8 }
 0x412   : > { %v3907_v59 = vmax.f32 %v3906_v62, %v3627_v29  ;;  %v3944_v24 = vmax.f32 %v3943_v35, %v3628_v7  ;;  %v2115_v57 = vpack.c.bf16 %v2003_v9, %v1914_v21  ;;  %v2612_v43 = vadd.f32 %v5674_v45, %v2348_v52 }
 0x413   : > { %v1736_v6 = vpop.f32.mrf.mxu2  ;;  %v1825_v40 = vpop.f32.mrf.mxu3  ;;  %v3253_v12 = vmax.f32 %v2613_v50, 0.0  ;;  %v3254_v17 = vmax.f32 %v2614_v48, 0.0  ;;  %v3251_v60 = vmax.f32 %v2611_v4, 0.0 }
 0x414   : > { %v2114_v22 = vpack.c.bf16 %v1825_v40, %v1736_v6  ;;  %v2357_v54 = vunpack.c.l.bf16 %v2115_v57  ;;  %v2358_v27 = vunpack.c.h.bf16 %v2115_v57  ;;  %v3252_v49 = vmax.f32 %v2612_v43, 0.0 }
 0x416   : > { %v2355_v18 = vunpack.c.l.bf16 %v2114_v22  ;;  %v2356_v28 = vunpack.c.h.bf16 %v2114_v22  ;;  %v1917_v33 = vpop.f32.mrf.mxu0  ;;  %v2621_v0 = vadd.f32 %v5661_v13, %v2357_v54  ;;  %v2622_v10 = vadd.f32 %v5663_v36, %v2358_v27 }
 0x418   : > { %v2619_v56 = vadd.f32 %v5671_v38, %v2355_v18  ;;  %v2620_v47 = vadd.f32 %v5674_v45, %v2356_v28  ;;  %v3261_v32 = vmax.f32 %v2621_v0, 0.0  ;;  %v3262_v2 = vmax.f32 %v2622_v10, 0.0 }
 0x419   : > { %v2006_v42 = vpop.f32.mrf.mxu1 }
 0x41a   : > { %v3259_v26 = vmax.f32 %v2619_v56, 0.0  ;;  %v3260_v41 = vmax.f32 %v2620_v47, 0.0  ;;  %v3437_v44 = vpack.c.bf16 %v3261_v32, %v3253_v12  ;;  %v3438_v23 = vpack.c.bf16 %v3262_v2, %v3254_v17 }
 0x41b   : > { %v1739_v19 = vpop.f32.mrf.mxu2  ;;  %v1828_v31 = vpop.f32.mrf.mxu3  ;;  %v2119_v34 = vpack.c.bf16 %v2006_v42, %v1917_v33 }
 0x41c   : > { %v3435_v51 = vpack.c.bf16 %v3259_v26, %v3251_v60  ;;  %v3436_v11 = vpack.c.bf16 %v3260_v41, %v3252_v49  ;;  %v3637_v39 = vunpack.c.l.bf16 %v3437_v44  ;;  %v3638_v53 = vunpack.c.l.bf16 %v3438_v23 }
 0x41d   : > { %v3645_v58 = vunpack.c.h.bf16 %v3437_v44  ;;  %v3646_v1 = vunpack.c.h.bf16 %v3438_v23  ;;  %v2118_v7 = vpack.c.bf16 %v1828_v31, %v1739_v19  ;;  %v2365_v14 = vunpack.c.l.bf16 %v2119_v34 }
 0x41e   : > { %v3635_v16 = vunpack.c.l.bf16 %v3435_v51  ;;  %v3636_v46 = vunpack.c.l.bf16 %v3436_v11  ;;  %v1919_v25 = vpop.f32.mrf.mxu0  ;;  %v3982_v5 = vmax.f32 %v3981_v61, %v3637_v39  ;;  %v4019_v21 = vmax.f32 %v4018_v15, %v3638_v53 }
 0x41f   : > { %v3643_v30 = vunpack.c.h.bf16 %v3435_v51  ;;  %v3644_v55 = vunpack.c.h.bf16 %v3436_v11  ;;  %v2366_v20 = vunpack.c.h.bf16 %v2119_v34  ;;  %v2363_v52 = vunpack.c.l.bf16 %v2118_v7 }
 0x420   : > { %v3908_v63 = vmax.f32 %v3907_v59, %v3635_v16  ;;  %v3945_v29 = vmax.f32 %v3944_v24, %v3636_v46  ;;  %v3983_v62 = vmax.f32 %v3982_v5, %v3645_v58  ;;  %v4020_v35 = vmax.f32 %v4019_v21, %v3646_v1 }
 0x421   : > { %v2008_v3 = vpop.f32.mrf.mxu1  ;;  %v2364_v57 = vunpack.c.h.bf16 %v2118_v7  ;;  %v2629_v61 = vadd.f32 %v5661_v13, %v2365_v14  ;;  %v2630_v15 = vadd.f32 %v5663_v36, %v2366_v20  ;;  %v2627_v48 = vadd.f32 %v5671_v38, %v2363_v52 }
 0x422   : > { %v3909_v9 = vmax.f32 %v3908_v63, %v3643_v30  ;;  %v3946_v8 = vmax.f32 %v3945_v29, %v3644_v55  ;;  %v2123_v6 = vpack.c.bf16 %v2008_v3, %v1919_v25 }
 0x423   : > { %v1741_v40 = vpop.f32.mrf.mxu2  ;;  %v1830_v22 = vpop.f32.mrf.mxu3  ;;  %v2628_v54 = vadd.f32 %v5674_v45, %v2364_v57  ;;  %v3269_v10 = vmax.f32 %v2629_v61, 0.0  ;;  %v3270_v56 = vmax.f32 %v2630_v15, 0.0  ;;  %v3267_v32 = vmax.f32 %v2627_v48, 0.0 }
 0x424   : > { %v2122_v50 = vpack.c.bf16 %v1830_v22, %v1741_v40  ;;  %v2373_v59 = vunpack.c.l.bf16 %v2123_v6  ;;  %v2374_v24 = vunpack.c.h.bf16 %v2123_v6 }
 0x425   : > { %v3268_v2 = vmax.f32 %v2628_v54, 0.0 }
 0x426   : > { %v2371_v27 = vunpack.c.l.bf16 %v2122_v50  ;;  %v2372_v4 = vunpack.c.h.bf16 %v2122_v50  ;;  %v2637_v43 = vadd.f32 %v5661_v13, %v2373_v59  ;;  %v2638_v18 = vadd.f32 %v5663_v36, %v2374_v24  ;;  %v5807_v0 = vpop.f32.mrf.mxu0 }
 0x428   : > { %v2635_v28 = vadd.f32 %v5671_v38, %v2371_v27  ;;  %v2636_v33 = vadd.f32 %v5674_v45, %v2372_v4  ;;  %v3277_v47 = vmax.f32 %v2637_v43, 0.0  ;;  %v3278_v12 = vmax.f32 %v2638_v18, 0.0 }
 0x429   : > { %v5809_v17 = vpop.f32.mrf.mxu1 }
 0x42a   : > { %v3275_v42 = vmax.f32 %v2635_v28, 0.0  ;;  %v3276_v60 = vmax.f32 %v2636_v33, 0.0  ;;  %v3445_v49 = vpack.c.bf16 %v3277_v47, %v3269_v10  ;;  %v3446_v26 = vpack.c.bf16 %v3278_v12, %v3270_v56 }
 0x42b   : > { %v1744_v41 = vpop.f32.mrf.mxu2  ;;  %v1833_v44 = vpop.f32.mrf.mxu3 }
 0x42c   : > { %v3443_v23 = vpack.c.bf16 %v3275_v42, %v3267_v32  ;;  %v3444_v19 = vpack.c.bf16 %v3276_v60, %v3268_v2  ;;  %v3653_v31 = vunpack.c.l.bf16 %v3445_v49  ;;  %v3654_v51 = vunpack.c.l.bf16 %v3446_v26 }
 0x42d   : > { %v3661_v11 = vunpack.c.h.bf16 %v3445_v49  ;;  %v3662_v34 = vunpack.c.h.bf16 %v3446_v26  ;;  %v2126_v21 = vpack.c.bf16 %v1833_v44, %v1744_v41  ;;  %v2127_v41 = vpack.c.bf16 %v5809_v17, %v5807_v0 }
 0x42e   : > { %v3651_v39 = vunpack.c.l.bf16 %v3443_v23  ;;  %v3652_v53 = vunpack.c.l.bf16 %v3444_v19  ;;  %v3984_v58 = vmax.f32 %v3983_v62, %v3653_v31  ;;  %v4021_v16 = vmax.f32 %v4020_v35, %v3654_v51  ;;  %v1924_v20 = vpop.f32.mrf.mxu0 }
 0x42f   : > { %v3659_v46 = vunpack.c.h.bf16 %v3443_v23  ;;  %v3660_v25 = vunpack.c.h.bf16 %v3444_v19  ;;  %v2379_v7 = vunpack.c.l.bf16 %v2126_v21  ;;  %v2380_v14 = vunpack.c.h.bf16 %v2126_v21 }
 0x430   : > { %v3910_v1 = vmax.f32 %v3909_v9, %v3651_v39  ;;  %v3947_v5 = vmax.f32 %v3946_v8, %v3652_v53  ;;  %v5811_v30 = vmax.f32 %v3984_v58, %v3661_v11  ;;  %v5813_v55 = vmax.f32 %v4021_v16, %v3662_v34 }
 0x431   : > { %v2013_v3 = vpop.f32.mrf.mxu1  ;;  %v2643_v62 = vadd.f32 %v5671_v38, %v2379_v7  ;;  %v2644_v35 = vadd.f32 %v5674_v45, %v2380_v14  ;;  %v2381_v51 = vunpack.c.l.bf16 %v2127_v41  ;;  %v2382_v11 = vunpack.c.h.bf16 %v2127_v41 }
 0x432   : > { %v3911_v63 = vmax.f32 %v3910_v1, %v3659_v46  ;;  %v3948_v29 = vmax.f32 %v3947_v5, %v3660_v25  ;;  %v2131_v26 = vpack.c.bf16 %v2013_v3, %v1924_v20 }
 0x433   : > { %v1746_v52 = vpop.f32.mrf.mxu2  ;;  %v1835_v57 = vpop.f32.mrf.mxu3  ;;  %v3283_v50 = vmax.f32 %v2643_v62, 0.0  ;;  %v3284_v61 = vmax.f32 %v2644_v35, 0.0  ;;  %v2645_v16 = vadd.f32 %v5661_v13, %v2381_v51  ;;  %v2646_v46 = vadd.f32 %v5663_v36, %v2382_v11 }
 0x434   : > { %v2130_v6 = vpack.c.bf16 %v1835_v57, %v1746_v52  ;;  %v2389_v19 = vunpack.c.l.bf16 %v2131_v26  ;;  %v2390_v31 = vunpack.c.h.bf16 %v2131_v26 }
 0x435   : > { %v3286_v14 = vmax.f32 %v2646_v46, 0.0 }
 0x436   : > { %v2387_v9 = vunpack.c.l.bf16 %v2130_v6  ;;  %v2388_v8 = vunpack.c.h.bf16 %v2130_v6  ;;  %v1927_v4 = vpop.f32.mrf.mxu0  ;;  %v2653_v39 = vadd.f32 %v5661_v13, %v2389_v19  ;;  %v2654_v58 = vadd.f32 %v5663_v36, %v2390_v31 }
 0x438   : > { %v2651_v40 = vadd.f32 %v5671_v38, %v2387_v9  ;;  %v2652_v22 = vadd.f32 %v5674_v45, %v2388_v8  ;;  %v3293_v17 = vmax.f32 %v2653_v39, 0.0  ;;  %v3294_v5 = vmax.f32 %v2654_v58, 0.0 }
 0x439   : > { %v2016_v43 = vpop.f32.mrf.mxu1 }
 0x43a   : > { %v3291_v15 = vmax.f32 %v2651_v40, 0.0  ;;  %v3292_v59 = vmax.f32 %v2652_v22, 0.0  ;;  %v5833_v57 = vpack.c.bf16 %v3294_v5, %v3286_v14 }
 0x43b   : > { %v1749_v24 = vpop.f32.mrf.mxu2  ;;  %v1838_v48 = vpop.f32.mrf.mxu3 }
 0x43c   : > { %v3451_v54 = vpack.c.bf16 %v3291_v15, %v3283_v50  ;;  %v3452_v27 = vpack.c.bf16 %v3292_v59, %v3284_v61  ;;  %v2134_v7 = vpack.c.bf16 %v1838_v48, %v1749_v24 }
 0x43e   : > { %v3667_v18 = vunpack.c.l.bf16 %v3451_v54  ;;  %v3668_v28 = vunpack.c.l.bf16 %v3452_v27  ;;  %v3675_v33 = vunpack.c.h.bf16 %v3451_v54  ;;  %v3676_v10 = vunpack.c.h.bf16 %v3452_v27  ;;  %v1929_v60 = vpop.f32.mrf.mxu0 }
 0x43f   : > { %v2395_v35 = vunpack.c.l.bf16 %v2134_v7  ;;  %v2396_v9 = vunpack.c.h.bf16 %v2134_v7  ;;  %v3670_v27 = vunpack.c.l.bf16 %v5833_v57 }
 0x440   : > { %v3912_v56 = vmax.f32 %v3911_v63, %v3667_v18  ;;  %v3949_v47 = vmax.f32 %v3948_v29, %v3668_v28  ;;  %v3285_v63 = vmax.f32 %v2645_v16, 0.0  ;;  %v2135_v29 = vpack.c.bf16 %v2016_v43, %v1927_v4 }
 0x441   : > { %v2018_v49 = vpop.f32.mrf.mxu1  ;;  %v2659_v28 = vadd.f32 %v5671_v38, %v2395_v35 }
 0x442   : > { %v5819_v12 = vmax.f32 %v3912_v56, %v3675_v33  ;;  %v5821_v32 = vmax.f32 %v3949_v47, %v3676_v10  ;;  %v2139_v21 = vpack.c.bf16 %v2018_v49, %v1929_v60  ;;  %v3453_v20 = vpack.c.bf16 %v3293_v17, %v3285_v63 }
 0x443   : > { %v1751_v2 = vpop.f32.mrf.mxu2  ;;  %v1840_v42 = vpop.f32.mrf.mxu3  ;;  %v2397_v62 = vunpack.c.l.bf16 %v2135_v29  ;;  %v2398_v50 = vunpack.c.h.bf16 %v2135_v29  ;;  %v2660_v33 = vadd.f32 %v5674_v45, %v2396_v9  ;;  %v3678_v60 = vunpack.c.h.bf16 %v5833_v57 }
 0x444   : > { %v2138_v1 = vpack.c.bf16 %v1840_v42, %v1751_v2  ;;  %v2405_v6 = vunpack.c.l.bf16 %v2139_v21  ;;  %v2406_v8 = vunpack.c.h.bf16 %v2139_v21  ;;  %v3669_v54 = vunpack.c.l.bf16 %v3453_v20 }
 0x445   : > { %v2661_v18 = vadd.f32 %v5661_v13, %v2397_v62  ;;  %v3677_v56 = vunpack.c.h.bf16 %v3453_v20  ;;  %v2662_v47 = vadd.f32 %v5663_v36, %v2398_v50  ;;  %v3299_v11 = vmax.f32 %v2659_v28, 0.0 }
 0x446   : > { %v5826_v53 = vpop.f32.mrf.mxu0  ;;  %v2403_v3 = vunpack.c.l.bf16 %v2138_v1  ;;  %v2404_v52 = vunpack.c.h.bf16 %v2138_v1  ;;  %v2669_v4 = vadd.f32 %v5661_v13, %v2405_v6  ;;  %v2670_v10 = vadd.f32 %v5663_v36, %v2406_v8 }
 0x447   : > { %v3986_v49 = vmax.f32 %v5811_v30, %v3669_v54  ;;  %v3301_v51 = vmax.f32 %v2661_v18, 0.0  ;;  %v3300_v39 = vmax.f32 %v2660_v33, 0.0  ;;  %v3302_v16 = vmax.f32 %v2662_v47, 0.0 }
 0x448   : > { %v2667_v24 = vadd.f32 %v5671_v38, %v2403_v3  ;;  %v2668_v48 = vadd.f32 %v5674_v45, %v2404_v52  ;;  %v3310_v58 = vmax.f32 %v2670_v10, 0.0 }
 0x449   : > { %v5828_v34 = vpop.f32.mrf.mxu1  ;;  %v3987_v29 = vmax.f32 %v3986_v49, %v3677_v56 }
 0x44a   : > { %v3307_v26 = vmax.f32 %v2667_v24, 0.0  ;;  %v3308_v41 = vmax.f32 %v2668_v48, 0.0  ;;  %v5855_v52 = vpack.c.bf16 %v3310_v58, %v3302_v16 }
 0x44b   : > { %v1754_v44 = vpop.f32.mrf.mxu2  ;;  %v1843_v23 = vpop.f32.mrf.mxu3 }
 0x44c   : > { %v2142_v43 = vpack.c.bf16 %v1843_v23, %v1754_v44  ;;  %v4023_v44 = vmax.f32 %v5813_v55, %v3670_v27  ;;  %v3309_v23 = vmax.f32 %v2669_v4, 0.0  ;;  %v3459_v30 = vpack.c.bf16 %v3307_v26, %v3299_v11 }
 0x44d   : > { %v3460_v5 = vpack.c.bf16 %v3308_v41, %v3300_v39  ;;  %v2143_v55 = vpack.c.bf16 %v5828_v34, %v5826_v53  ;;  %v3686_v4 = vunpack.c.l.bf16 %v5855_v52 }
 0x44e   : > { %v1934_v40 = vpop.f32.mrf.mxu0  ;;  %v2411_v19 = vunpack.c.l.bf16 %v2142_v43  ;;  %v2412_v31 = vunpack.c.h.bf16 %v2142_v43  ;;  %v3461_v7 = vpack.c.bf16 %v3309_v23, %v3301_v51  ;;  %v4024_v53 = vmax.f32 %v4023_v44, %v3678_v60 }
 0x44f   : > { %v3683_v34 = vunpack.c.l.bf16 %v3459_v30  ;;  %v3691_v49 = vunpack.c.h.bf16 %v3459_v30 }
 0x450   : > { %v2675_v14 = vadd.f32 %v5671_v38, %v2411_v19  ;;  %v2676_v20 = vadd.f32 %v5674_v45, %v2412_v31  ;;  %v3685_v27 = vunpack.c.l.bf16 %v3461_v7  ;;  %v3693_v47 = vunpack.c.h.bf16 %v3461_v7 }
 0x451   : > { %v2023_v22 = vpop.f32.mrf.mxu1  ;;  %v3692_v19 = vunpack.c.h.bf16 %v3460_v5 }
 0x452   : > { %v2147_v57 = vpack.c.bf16 %v2023_v22, %v1934_v40  ;;  %v3316_v54 = vmax.f32 %v2676_v20, 0.0  ;;  %v2414_v40 = vunpack.c.h.bf16 %v2143_v55  ;;  %v3988_v23 = vmax.f32 %v3987_v29, %v3685_v27 }
 0x453   : > { %v1756_v25 = vpop.f32.mrf.mxu2  ;;  %v1845_v0 = vpop.f32.mrf.mxu3 }
 0x454   : > { %v2146_v61 = vpack.c.bf16 %v1845_v0, %v1756_v25  ;;  %v2421_v22 = vunpack.c.l.bf16 %v2147_v57  ;;  %v2422_v60 = vunpack.c.h.bf16 %v2147_v57  ;;  %v2678_v29 = vadd.f32 %v5663_v36, %v2414_v40 }
 0x456   : > { %v2419_v2 = vunpack.c.l.bf16 %v2146_v61  ;;  %v2420_v42 = vunpack.c.h.bf16 %v2146_v61  ;;  %v1937_v3 = vpop.f32.mrf.mxu0  ;;  %v3684_v61 = vunpack.c.l.bf16 %v3460_v5  ;;  %v2685_v31 = vadd.f32 %v5661_v13, %v2421_v22 }
 0x457   : > { %v5868_v5 = vmax.f32 %v3988_v23, %v3693_v47 }
 0x458   : > { %v2683_v46 = vadd.f32 %v5671_v38, %v2419_v2  ;;  %v2684_v25 = vadd.f32 %v5674_v45, %v2420_v42  ;;  %v3694_v2 = vunpack.c.h.bf16 %v5855_v52  ;;  %v3914_v42 = vmax.f32 %v5819_v12, %v3683_v34 }
 0x459   : > { %v5851_v21 = vpop.f32.mrf.mxu1  ;;  %v3951_v26 = vmax.f32 %v5821_v32, %v3684_v61  ;;  %v3325_v20 = vmax.f32 %v2685_v31, 0.0 }
 0x45a   : > { %v3323_v35 = vmax.f32 %v2683_v46, 0.0  ;;  %v3324_v9 = vmax.f32 %v2684_v25, 0.0 }
 0x45b   : > { %v1759_v15 = vpop.f32.mrf.mxu2  ;;  %v1848_v59 = vpop.f32.mrf.mxu3  ;;  %v3952_v32 = vmax.f32 %v3951_v26, %v3692_v19 }
 0x45c   : > { %v2150_v0 = vpack.c.bf16 %v1848_v59, %v1759_v15  ;;  %v2413_v15 = vunpack.c.l.bf16 %v2143_v55  ;;  %v3315_v59 = vmax.f32 %v2675_v14, 0.0  ;;  %v3468_v18 = vpack.c.bf16 %v3324_v9, %v3316_v54 }
 0x45e   : > { %v2427_v8 = vunpack.c.l.bf16 %v2150_v0  ;;  %v2428_v50 = vunpack.c.h.bf16 %v2150_v0  ;;  %v3467_v43 = vpack.c.bf16 %v3323_v35, %v3315_v59  ;;  %v3700_v58 = vunpack.c.l.bf16 %v3468_v18  ;;  %v1939_v25 = vpop.f32.mrf.mxu0 }
 0x45f   : > { %v4025_v0 = vmax.f32 %v4024_v53, %v3686_v4  ;;  %v2677_v12 = vadd.f32 %v5661_v13, %v2413_v15  ;;  %v3708_v53 = vunpack.c.h.bf16 %v3468_v18 }
 0x460   : > { %v2691_v28 = vadd.f32 %v5671_v38, %v2427_v8  ;;  %v2692_v33 = vadd.f32 %v5674_v45, %v2428_v50  ;;  %v3699_v39 = vunpack.c.l.bf16 %v3467_v43  ;;  %v3707_v50 = vunpack.c.h.bf16 %v3467_v43 }
 0x461   : > { %v2028_v51 = vpop.f32.mrf.mxu1 }
 0x462   : > { %v3331_v16 = vmax.f32 %v2691_v28, 0.0  ;;  %v3332_v46 = vmax.f32 %v2692_v33, 0.0  ;;  %v2155_v30 = vpack.c.bf16 %v2028_v51, %v1939_v25  ;;  %v3318_v33 = vmax.f32 %v2678_v29, 0.0 }
 0x463   : > { %v1761_v17 = vpop.f32.mrf.mxu2  ;;  %v1850_v1 = vpop.f32.mrf.mxu3 }
 0x464   : > { %v2154_v63 = vpack.c.bf16 %v1850_v1, %v1761_v17  ;;  %v3915_v17 = vmax.f32 %v3914_v42, %v3691_v49  ;;  %v2686_v1 = vadd.f32 %v5663_v36, %v2422_v60  ;;  %v2437_v61 = vunpack.c.l.bf16 %v2155_v30 }
 0x465   : > { %v2438_v15 = vunpack.c.h.bf16 %v2155_v30 }
 0x466   : > { %v2435_v6 = vunpack.c.l.bf16 %v2154_v63  ;;  %v2436_v62 = vunpack.c.h.bf16 %v2154_v63  ;;  %v3916_v57 = vmax.f32 %v3915_v17, %v3699_v39  ;;  %v3326_v8 = vmax.f32 %v2686_v1, 0.0  ;;  %v1942_v60 = vpop.f32.mrf.mxu0 }
 0x468   : > { %v2699_v24 = vadd.f32 %v5671_v38, %v2435_v6  ;;  %v2700_v48 = vadd.f32 %v5674_v45, %v2436_v62  ;;  %v3953_v6 = vmax.f32 %v3952_v32, %v3700_v58  ;;  %v2151_v62 = vpack.c.bf16 %v5851_v21, %v1937_v3 }
 0x469   : > { %v3917_v40 = vmax.f32 %v3916_v57, %v3707_v50  ;;  %v3317_v3 = vmax.f32 %v2677_v12, 0.0  ;;  %v3470_v19 = vpack.c.bf16 %v3326_v8, %v3318_v33 }
 0x46a   : > { %v3339_v41 = vmax.f32 %v2699_v24, 0.0  ;;  %v3340_v44 = vmax.f32 %v2700_v48, 0.0  ;;  %v3954_v22 = vmax.f32 %v3953_v6, %v3708_v53  ;;  %v2429_v28 = vunpack.c.l.bf16 %v2151_v62 }
 0x46b   : > { %v1764_v10 = vpop.f32.mrf.mxu2  ;;  %v1853_v56 = vpop.f32.mrf.mxu3  ;;  %v2430_v21 = vunpack.c.h.bf16 %v2151_v62  ;;  %v3469_v23 = vpack.c.bf16 %v3325_v20, %v3317_v3 }
 0x46c   : > { %v2158_v11 = vpack.c.bf16 %v1853_v56, %v1764_v10  ;;  %v3475_v55 = vpack.c.bf16 %v3339_v41, %v3331_v16  ;;  %v3476_v63 = vpack.c.bf16 %v3340_v44, %v3332_v46  ;;  %v2701_v10 = vadd.f32 %v5661_v13, %v2437_v61 }
 0x46d   : > { %v2702_v56 = vadd.f32 %v5663_v36, %v2438_v15  ;;  %v2693_v31 = vadd.f32 %v5661_v13, %v2429_v28  ;;  %v2694_v51 = vadd.f32 %v5663_v36, %v2430_v21  ;;  %v4026_v16 = vmax.f32 %v4025_v0, %v3694_v2 }
 0x46e   : > { %v2443_v7 = vunpack.c.l.bf16 %v2158_v11  ;;  %v2444_v14 = vunpack.c.h.bf16 %v2158_v11  ;;  %v3715_v59 = vunpack.c.l.bf16 %v3475_v55  ;;  %v3716_v54 = vunpack.c.l.bf16 %v3476_v63 }
 0x46f   : > { %v3723_v11 = vunpack.c.h.bf16 %v3475_v55  ;;  %v3341_v46 = vmax.f32 %v2701_v10, 0.0  ;;  %v3342_v25 = vmax.f32 %v2702_v56, 0.0  ;;  %v3701_v29 = vunpack.c.l.bf16 %v3469_v23 }
 0x470   : > { %v2707_v24 = vadd.f32 %v5671_v38, %v2443_v7  ;;  %v2708_v48 = vadd.f32 %v5674_v45, %v2444_v14  ;;  %v3918_v47 = vmax.f32 %v3917_v40, %v3715_v59  ;;  %v3955_v42 = vmax.f32 %v3954_v22, %v3716_v54 }
 0x471   : > { %v3702_v7 = vunpack.c.l.bf16 %v3470_v19  ;;  %v3333_v14 = vmax.f32 %v2693_v31, 0.0  ;;  %v3334_v20 = vmax.f32 %v2694_v51, 0.0  ;;  %v3709_v8 = vunpack.c.h.bf16 %v3469_v23 }
 0x472   : > { %v3347_v49 = vmax.f32 %v2707_v24, 0.0  ;;  %v3348_v26 = vmax.f32 %v2708_v48, 0.0  ;;  %v3919_v12 = vmax.f32 %v3918_v47, %v3723_v11  ;;  %v3990_v50 = vmax.f32 %v5868_v5, %v3701_v29 }
 0x473   : > { %v1766_v35 = vpop.f32.mrf.mxu2  ;;  %v1855_v9 = vpop.f32.mrf.mxu3  ;;  %v3477_v62 = vpack.c.bf16 %v3341_v46, %v3333_v14  ;;  %v4027_v53 = vmax.f32 %v4026_v16, %v3702_v7  ;;  %v3710_v15 = vunpack.c.h.bf16 %v3470_v19 }
 0x474   : > { %v2162_v34 = vpack.c.bf16 %v1855_v9, %v1766_v35  ;;  %v3478_v35 = vpack.c.bf16 %v3342_v25, %v3334_v20  ;;  %v3991_v33 = vmax.f32 %v3990_v50, %v3709_v8 }
 0x475   : > { %v3717_v48 = vunpack.c.l.bf16 %v3477_v62  ;;  %v3725_v19 = vunpack.c.h.bf16 %v3477_v62 }
 0x476   : > { %v2451_v27 = vunpack.c.l.bf16 %v2162_v34  ;;  %v2452_v4 = vunpack.c.h.bf16 %v2162_v34  ;;  %v1944_v34 = vpop.f32.mrf.mxu0  ;;  %v3726_v31 = vunpack.c.h.bf16 %v3478_v35 }
 0x477   : > { %v3992_v47 = vmax.f32 %v3991_v33, %v3717_v48 }
 0x478   : > { %v2715_v43 = vadd.f32 %v5671_v38, %v2451_v27  ;;  %v2716_v18 = vadd.f32 %v5674_v45, %v2452_v4  ;;  %v3724_v45 = vunpack.c.h.bf16 %v3476_v63  ;;  %v3718_v27 = vunpack.c.l.bf16 %v3478_v35 }
 0x47a   : > { %v3355_v41 = vmax.f32 %v2715_v43, 0.0  ;;  %v3356_v44 = vmax.f32 %v2716_v18, 0.0  ;;  %v3956_v1 = vmax.f32 %v3955_v42, %v3724_v45  ;;  %v4028_v43 = vmax.f32 %v4027_v53, %v3710_v15 }
 0x47b   : > { %v2031_v38 = vpop.f32.mrf.mxu3 }
 0x47c   : > { %v3483_v39 = vpack.c.bf16 %v3355_v41, %v3347_v49  ;;  %v3484_v58 = vpack.c.bf16 %v3356_v44, %v3348_v26  ;;  %v2159_v17 = vpack.c.bf16 %v2031_v38, %v1942_v60  ;;  %v4029_v42 = vmax.f32 %v4028_v43, %v3718_v27 }
 0x47e   : > { %v3731_v32 = vunpack.c.l.bf16 %v3483_v39  ;;  %v3732_v30 = vunpack.c.l.bf16 %v3484_v58  ;;  %v3739_v57 = vunpack.c.h.bf16 %v3483_v39  ;;  %v3740_v6 = vunpack.c.h.bf16 %v3484_v58 }
 0x47f   : > { %v2445_v9 = vunpack.c.l.bf16 %v2159_v17  ;;  %v2446_v52 = vunpack.c.h.bf16 %v2159_v17  ;;  %v3993_v39 = vmax.f32 %v3992_v47, %v3725_v19  ;;  %v4030_v58 = vmax.f32 %v4029_v42, %v3726_v31 }
 0x480   : > { %v3920_v55 = vmax.f32 %v3919_v12, %v3731_v32  ;;  %v3957_v63 = vmax.f32 %v3956_v1, %v3732_v30 }
 0x481   : > { %v2709_v4 = vadd.f32 %v5661_v13, %v2445_v9  ;;  %v2710_v40 = vadd.f32 %v5663_v36, %v2446_v52 }
 0x482   : > { %v3921_v2 = vmax.f32 %v3920_v55, %v3739_v57  ;;  %v3958_v0 = vmax.f32 %v3957_v63, %v3740_v6 }
 0x483   : > { %v2033_v61 = vpop.f32.mrf.mxu3  ;;  %v3349_v60 = vmax.f32 %v2709_v4, 0.0  ;;  %v3350_v49 = vmax.f32 %v2710_v40, 0.0 }
 0x484   : > { %v3922_v59 = vrot.slane %v3921_v2, 4  ;;  %v3959_v54 = vrot.slane %v3958_v0, 4  ;;  %v2163_v24 = vpack.c.bf16 %v2033_v61, %v1944_v34 }
 0x486   : > { %v3923_v22 = vmax.f32 %v3921_v2, %v3922_v59  ;;  %v3960_v28 = vmax.f32 %v3958_v0, %v3959_v54  ;;  %v2453_v21 = vunpack.c.l.bf16 %v2163_v24  ;;  %v2454_v3 = vunpack.c.h.bf16 %v2163_v24 }
 0x488   : > { %v3924_v5 = vrot.slane %v3923_v22, 2  ;;  %v3961_v18 = vrot.slane %v3960_v28, 2  ;;  %v2717_v10 = vadd.f32 %v5661_v13, %v2453_v21  ;;  %v2718_v56 = vadd.f32 %v5663_v36, %v2454_v3 }
 0x48a   : > { %v3925_v26 = vmax.f32 %v3923_v22, %v3924_v5  ;;  %v3962_v41 = vmax.f32 %v3960_v28, %v3961_v18  ;;  %v3357_v44 = vmax.f32 %v2717_v10, 0.0  ;;  %v3358_v23 = vmax.f32 %v2718_v56, 0.0 }
 0x48c   : > { %v3926_v51 = vrot.slane %v3925_v26, 1  ;;  %v3963_v38 = vrot.slane %v3962_v41, 1  ;;  %v3485_v11 = vpack.c.bf16 %v3357_v44, %v3349_v60  ;;  %v3486_v45 = vpack.c.bf16 %v3358_v23, %v3350_v49 }
 0x48e   : > { %v3927_v16 = vmax.f32 %v3925_v26, %v3926_v51  ;;  %v3964_v13 = vmax.f32 %v3962_v41, %v3963_v38  ;;  %v3733_v46 = vunpack.c.l.bf16 %v3485_v11  ;;  %v3734_v36 = vunpack.c.l.bf16 %v3486_v45 }
 0x48f   : > { %v3741_v25 = vunpack.c.h.bf16 %v3485_v11  ;;  %v3742_v12 = vunpack.c.h.bf16 %v3486_v45 }
 0x490   : > { %v4041_v17 = vpack.c.bf16 %v3964_v13, %v3927_v16  ;;  %v3994_v1 = vmax.f32 %v3993_v39, %v3733_v46  ;;  %v4031_v32 = vmax.f32 %v4030_v58, %v3734_v36 }
 0x492   : > { %v3995_v30 = vmax.f32 %v3994_v1, %v3741_v25  ;;  %v4032_v29 = vmax.f32 %v4031_v32, %v3742_v12  ;;  %v4048_v52 = vunpack.c.l.bf16 %v4041_v17  ;;  %v4049_v2 = vunpack.c.h.bf16 %v4041_v17 }
 0x494   : > { %v3996_v7 = vrot.slane %v3995_v30, 4  ;;  %v4033_v14 = vrot.slane %v4032_v29, 4  ;;  %v4063_v53 = vrot.slane %v4048_v52, 4  ;;  %v4064_v34 = vrot.slane %v4049_v2, 3 }
 0x496   : > { %v3997_v20 = vmax.f32 %v3995_v30, %v3996_v7  ;;  %v4034_v57 = vmax.f32 %v4032_v29, %v4033_v14  ;;  %v4074_v24 = vsel %vm4073_vm5, %v4063_v53, %v4064_v34 }
 0x498   : > { %v3998_v6 = vrot.slane %v3997_v20, 2  ;;  %v4035_v55 = vrot.slane %v4034_v57, 2 }
 0x49a   : > { %v3999_v63 = vmax.f32 %v3997_v20, %v3998_v6  ;;  %v4036_v62 = vmax.f32 %v4034_v57, %v4035_v55 }
 0x49c   : > { %v4000_v35 = vrot.slane %v3999_v63, 1  ;;  %v4037_v9 = vrot.slane %v4036_v62, 1 }
 0x49e   : > { %v4001_v0 = vmax.f32 %v3999_v63, %v4000_v35  ;;  %v4038_v8 = vmax.f32 %v4036_v62, %v4037_v9 }
 0x4a0   : > { %v4042_v50 = vpack.c.bf16 %v4038_v8, %v4001_v0 }
 0x4a2   : > { %v4050_v61 = vunpack.c.l.bf16 %v4042_v50  ;;  %v4051_v15 = vunpack.c.h.bf16 %v4042_v50 }
 0x4a4   : > { %v4065_v59 = vrot.slane %v4050_v61, 2  ;;  %v4066_v54 = vrot.slane %v4051_v15, 1 }
 0x4a6   : > { %v4076_v48 = vsel %vm4075_vm6, %v4065_v59, %v4066_v54 }
 0x4a7   : > { %v4078_v27 = vsel %vm4077_vm7, %v4074_v24, %v4076_v48 }
 0x4a8   : > { %v4080_v4 = vsel %vm4079_vm8, %v5712_v37, %v4078_v27 }
 0x4a9   : > { %4083 = vst [vmem:[%s378_s8] sm:$0xff] %v4080_v4 }
 0x4aa   : > { %4936 = shalt.err (!%p4933_p12)
}
 0x4ab   : > { %4662 = dma.vmem_to_hbm [thread:$0]  (%p5153_p5), %s4098_s27, 128, %s4100_s22, %s4085_s1  }
 0x4ac PF: > { %p4694_p13 = scmp.ge.s32.totalorder %s4999_s29, 2  ;;  %s4111_s14 = sand.u32 1, %s4979_s24  }
 0x4ad   : > { %s4112_s9 = scalar_lea.sflag [#allocation4], %s4111_s14 }
 0x4ae   : > { %p4682_p0 = pnand %p4694_p13, %p5102_p6 }
 0x4b0   : > { %p4683_p3 = pneg %p4682_p0 }
 0x4b2   : > { %4974 = dma.done.wait (%p4683_p3), %s4112_s9, 128  }
 0x4b3   : > { %4976 = vsyncadd (%p4683_p3), %s4112_s9, 4294967168  ;;  %s25_s29 = sadd.s32 1, %s4999_s29   ;;  %s5952_s19 = sld [smem:[#allocation16_spill]] }
 0x4b4   : > { %p22_p7 = scmp.ge.s32.totalorder %s25_s29, 6   ;;  %s5953_s24 = smov %s4983_s25 }
 0x4b5   : > { %s5954_s25 = smov %s4987_s26  ;;  %s5955_s26 = smov %s5162_s23 }
 0x4b6   : > { %s5956_s27 = smov %s4995_s28  ;;  %24 = sbr.rel (!%p22_p7) target bundleno = 13 (0xd), region = 113 }
 0x4b9   : > { %s5957_s28 = smov %s5952_s19 }
 0x4bb   :  { %4118 = vsyncpa [#allocation3], 1 }
 0x4bc   :  { %4120 = vsyncpa [#allocation3 + $0x1], 1 }
 0x4bd   :  { %4121 = vsyncpa [#allocation6], 1 }
 0x4be   :  { %4122 = vsyncpa [#allocation9], 1 }
 0x4bf   :  { %4123 = vsyncpa [#allocation4], 1 }
 0x4c0   :  { %4125 = vsyncpa [#allocation4 + $0x1], 1 }

</bundles_post_ra>
